<compile_context>
chip_gen: v5e
topology: v5e:2x2
jax: 0.10.0
libtpu: 0.0.40
codegen_flags: <defaults>
</compile_context>

<pallas_src>
import functools

import jax
import jax.numpy as jnp
import numpy as np
from jax.experimental import pallas as pl
from jax.experimental.pallas import tpu as pltpu

EPS = 1e-3  # matches nn.BatchNorm2d(eps=0.001)


# ----------------------------------------------------------------------------------
# Fused Pallas kernel: all 7 conv+BN+ReLU layers + 3x3 maxpool in one invocation.
# ----------------------------------------------------------------------------------
def _inception_kernel(
    x_ref,        # (N*H, W*Cin)            lane-dense NHWC input slab
    wf_ref,       # (W*Cin, W*(c1+r3+r5))   fused block-diag 1x1 weights (b1 | b2-red | b3-red)
    w21_ref,      # (3, W*r3, W*o3)         banded 3x3 weight, branch2
    w31_ref,      # (3, W*r5, W*o5)         banded 3x3 weight, branch3 first
    w32_ref,      # (3, W*o5, W*o5)         banded 3x3 weight, branch3 second
    w40_ref,      # (W*Cin, W*cp)           block-diag 1x1 weight, branch4 (after pool)
    g10, b10, g20, b20, g21, b21, g30, b30, g31, b31, g32, b32, g40, b40,   # (1, c) BN
    o_ref,        # (N*H, W*(c1+o3+o5+cp))  branch-major lane-dense output slab
    *, n, hh, ww, cin, c1, r3, o3, r5, o5, cp,
):
    f32 = jnp.float32
    nh = n * hh
    count = float(n * hh * ww)

    # Per-row h index (row = n*H + h); used to mask vertical shifts at image borders.
    row_h = jax.lax.broadcasted_iota(jnp.int32, (nh, 1), 0) % hh

    # Per-channel-count "group" matrices, built once from iota (stay in vregs):
    #   G  (W*c, c): sums the W copies of each channel  -> BN stats reduction on the MXU
    #   GT (c, W*c): broadcasts (1,c) back to (1,W*c)   -> no jnp.tile / lane concat
    def make_group_mats(c):
        ii = jax.lax.broadcasted_iota(jnp.int32, (ww * c, c), 0)
        jj = jax.lax.broadcasted_iota(jnp.int32, (ww * c, c), 1)
        g = (ii % c == jj).astype(f32)
        i2 = jax.lax.broadcasted_iota(jnp.int32, (c, ww * c), 0)
        j2 = jax.lax.broadcasted_iota(jnp.int32, (c, ww * c), 1)
        gt = (j2 % c == i2).astype(f32)
        return g, gt

    gmats = {c: make_group_mats(c) for c in sorted({c1, r3, o3, r5, o5, cp})}

    def bn_relu(yd, c, g_ref, be_ref):
        """Training-mode BatchNorm (biased one-pass var) + ReLU on a (NH, W*c) slab."""
        gm, gtm = gmats[c]
        s = jnp.sum(yd, axis=0, keepdims=True)                      # (1, W*c)
        ss = jnp.sum(yd * yd, axis=0, keepdims=True)                # (1, W*c)
        s = jnp.dot(s, gm, preferred_element_type=f32)              # (1, c)
        ss = jnp.dot(ss, gm, preferred_element_type=f32)            # (1, c)
        mean = s * (1.0 / count)
        var = jnp.maximum(ss * (1.0 / count) - mean * mean, 0.0)    # clamp tiny negatives
        scale = jax.lax.rsqrt(var + EPS) * g_ref[...]               # (1, c)
        shift = be_ref[...] - mean * scale                          # (1, c)
        scale_w = jnp.dot(scale, gtm, preferred_element_type=f32)   # (1, W*c)
        shift_w = jnp.dot(shift, gtm, preferred_element_type=f32)   # (1, W*c)
        return jnp.maximum(yd * scale_w + shift_w, 0.0)

    def vshift(a, dh, fill):
        # out[n, h, :] = a[n, h+dh, :]; rows outside the image -> fill. (sublane shift)
        pad_row = jnp.full((1, a.shape[1]), fill, f32)
        if dh < 0:
            shifted = jnp.concatenate([pad_row, a[:-1, :]], axis=0)
            valid = row_h >= -dh
        else:
            shifted = jnp.concatenate([a[1:, :], pad_row], axis=0)
            valid = row_h < hh - dh
        return jnp.where(valid, shifted, fill)

    def hshift(a, dw, c, fill):
        # out[.., w, :] = a[.., w+dw, :] in the (NH, W*c) layout. (lane shift by c)
        pad_col = jnp.full((a.shape[0], c), fill, f32)
        if dw < 0:
            return jnp.concatenate([pad_col, a[:, :-c]], axis=1)
        return jnp.concatenate([a[:, c:], pad_col], axis=1)

    def conv3x3(a, w3_ref, c_out, g_ref, be_ref):
        # Banded matmuls: horizontal taps + channel contraction folded into B[kh];
        # only the two vertical taps need (cheap, lane-dense) sublane shifts + masks.
        y = jnp.dot(a, w3_ref[1], preferred_element_type=f32)
        y = y + jnp.dot(vshift(a, -1, 0.0), w3_ref[0], preferred_element_type=f32)
        y = y + jnp.dot(vshift(a, +1, 0.0), w3_ref[2], preferred_element_type=f32)
        return bn_relu(y, c_out, g_ref, be_ref)

    def maxpool3x3(a, c):
        # Separable 3x3 / stride-1 / pad-1 max pool (matches nn.MaxPool2d).
        neg = -jnp.inf
        mh = jnp.maximum(a, jnp.maximum(hshift(a, -1, c, neg), hshift(a, +1, c, neg)))
        return jnp.maximum(mh, jnp.maximum(vshift(mh, -1, neg), vshift(mh, +1, neg)))

    x = x_ref[...].astype(f32)

    # ---- branches 1-3 front end: ONE fused matmul for the three 1x1 convs over x ----
    y_f = jnp.dot(x, wf_ref[...], preferred_element_type=f32)      # (NH, W*(c1+r3+r5))
    y1 = bn_relu(y_f[:, : ww * c1], c1, g10, b10)                  # branch1 done
    t2 = bn_relu(y_f[:, ww * c1: ww * (c1 + r3)], r3, g20, b20)    # branch2 reduce
    t3 = bn_relu(y_f[:, ww * (c1 + r3): ww * (c1 + r3 + r5)], r5, g30, b30)  # branch3 reduce

    y2 = conv3x3(t2, w21_ref, o3, g21, b21)                        # branch2: 3x3
    t3 = conv3x3(t3, w31_ref, o5, g31, b31)                        # branch3: 3x3 -> 3x3
    y3 = conv3x3(t3, w32_ref, o5, g32, b32)

    pooled = maxpool3x3(x, cin)                                    # branch4: pool -> 1x1
    y4 = bn_relu(jnp.dot(pooled, w40_ref[...], preferred_element_type=f32), cp, g40, b40)

    # ---- branch-major lane-dense output; every store is full-lane / 128-aligned ----
    e1 = ww * c1
    e2 = e1 + ww * o3
    e3 = e2 + ww * o5
    e4 = e3 + ww * cp
    o_ref[:, 0:e1] = y1.astype(o_ref.dtype)
    o_ref[:, e1:e2] = y2.astype(o_ref.dtype)
    o_ref[:, e2:e3] = y3.astype(o_ref.dtype)
    o_ref[:, e3:e4] = y4.astype(o_ref.dtype)


# ----------------------------------------------------------------------------------
# Wrapper: weight packing for the lane-dense layout, single pallas_call, final NCHW.
# ----------------------------------------------------------------------------------
def _blockdiag_1x1(w, width):
    """(cout, cin, 1, 1) -> block-diagonal (W*cin, W*cout) for the (NH, W*c) layout."""
    cout, cin = int(w.shape[0]), int(w.shape[1])
    wm = w.reshape(cout, cin).T.astype(jnp.float32)                 # (cin, cout)
    return jnp.kron(jnp.eye(width, dtype=jnp.float32), wm)


def _banded_3x3(w, width):
    """(cout, cin, 3, 3) -> (3, W*cin, W*cout); B[kh] is block tri-diagonal over w."""
    mats = []
    for kh in range(3):
        b = None
        for kw in range(3):
            wm = w[:, :, kh, kw].T.astype(jnp.float32)              # (cin, cout)
            band = jnp.kron(jnp.eye(width, k=1 - kw, dtype=jnp.float32), wm)
            b = band if b is None else b + band
        mats.append(b)
    return jnp.stack(mats, axis=0)


def _full_spec(arr):
    zeros = (0,) * arr.ndim
    return pl.BlockSpec(arr.shape, lambda i, _z=zeros: _z)


def inception_block_forward(x_nchw, params):
    """Forward pass of InceptionBlock. Input/output are NCHW like PyTorch."""
    N, Cin, H, W = x_nchw.shape
    p10 = params["b1"][0]
    p20, p21 = params["b2"]
    p30, p31, p32 = params["b3"]
    p40 = params["b4"][0]

    c1 = p10["w"].shape[0]
    r3, o3 = p20["w"].shape[0], p21["w"].shape[0]
    r5, o5 = p30["w"].shape[0], p31["w"].shape[0]
    cp = p40["w"].shape[0]

    # Lane-dense NHWC input slab.
    x_dense = jnp.transpose(x_nchw, (0, 2, 3, 1)).reshape(N * H, W * Cin)

    # Pack weights for the lane-dense layout.
    wf = jnp.concatenate([_blockdiag_1x1(p10["w"], W),
                          _blockdiag_1x1(p20["w"], W),
                          _blockdiag_1x1(p30["w"], W)], axis=1)
    w21 = _banded_3x3(p21["w"], W)
    w31 = _banded_3x3(p31["w"], W)
    w32 = _banded_3x3(p32["w"], W)
    w40 = _blockdiag_1x1(p40["w"], W)

    def bn(p):
        c = p["w"].shape[0]
        return [p["gamma"].reshape(1, c).astype(jnp.float32),
                p["beta"].reshape(1, c).astype(jnp.float32)]

    bn_params = bn(p10) + bn(p20) + bn(p21) + bn(p30) + bn(p31) + bn(p32) + bn(p40)
    inputs = [x_dense, wf, w21, w31, w32, w40] + bn_params

    c_total = c1 + o3 + o5 + cp
    out = pl.pallas_call(
        functools.partial(_inception_kernel, n=N, hh=H, ww=W, cin=Cin,
                          c1=c1, r3=r3, o3=o3, r5=r5, o5=o5, cp=cp),
        out_shape=jax.ShapeDtypeStruct((N * H, W * c_total), jnp.float32),
        grid=(1,),                                   # single step: whole block fused
        in_specs=[_full_spec(a) for a in inputs],
        out_specs=pl.BlockSpec((N * H, W * c_total), lambda i: (0, 0)),
        compiler_params=pltpu.CompilerParams(dimension_semantics=("arbitrary",)),
    )(*inputs)

    # Lane-dense branch slabs -> NCHW channel concat (matches torch.cat(dim=1)).
    parts, off = [], 0
    for cb in (c1, o3, o5, cp):
        yb = out[:, off:off + W * cb].reshape(N, H, W, cb)
        parts.append(jnp.transpose(yb, (0, 3, 1, 2)))
        off += W * cb
    return jnp.concatenate(parts, axis=1)


# ----------------------------------------------------------------------------------
# Parameter construction (deterministic, matches nn module shapes)
# ----------------------------------------------------------------------------------
def make_convblock_params(key, cin, cout, k):
    kw_, kg, kb = jax.random.split(key, 3)
    return {
        "w": jax.random.normal(kw_, (cout, cin, k, k), jnp.float32) * 0.1,
        "gamma": jax.random.uniform(kg, (cout,), jnp.float32, 0.5, 1.5),
        "beta": jax.random.normal(kb, (cout,), jnp.float32) * 0.1,
    }


def make_inception_params(key, in_ch, out_1x1, r3, o3, r5, o5, opool):
    keys = jax.random.split(key, 7)
    return {
        "b1": [make_convblock_params(keys[0], in_ch, out_1x1, 1)],
        "b2": [make_convblock_params(keys[1], in_ch, r3, 1),
               make_convblock_params(keys[2], r3, o3, 3)],
        "b3": [make_convblock_params(keys[3], in_ch, r5, 1),
               make_convblock_params(keys[4], r5, o5, 3),
               make_convblock_params(keys[5], o5, o5, 3)],
        "b4": [make_convblock_params(keys[6], in_ch, opool, 1)],
    }


# ----------------------------------------------------------------------------------
# Pure-JAX reference (mirrors the torch module exactly) for correctness check
# ----------------------------------------------------------------------------------
def ref_convblock(x_nchw, p):
    k = p["w"].shape[-1]
    pad = (k - 1) // 2
    y = jax.lax.conv_general_dilated(
        x_nchw, p["w"], (1, 1), [(pad, pad), (pad, pad)],
        dimension_numbers=("NCHW", "OIHW", "NCHW"))
    mean = y.mean(axis=(0, 2, 3), keepdims=True)
    var = ((y - mean) ** 2).mean(axis=(0, 2, 3), keepdims=True)
    y = ((y - mean) * jax.lax.rsqrt(var + EPS)
         * p["gamma"].reshape(1, -1, 1, 1) + p["beta"].reshape(1, -1, 1, 1))
    return jnp.maximum(y, 0.0)


def ref_branch(x_nchw, blocks):
    y = x_nchw
    for p in blocks:
        y = ref_convblock(y, p)
    return y


def ref_inception(x_nchw, params):
    y1 = ref_branch(x_nchw, params["b1"])
    y2 = ref_branch(x_nchw, params["b2"])
    y3 = ref_branch(x_nchw, params["b3"])
    pooled = jax.lax.reduce_window(
        x_nchw, -jnp.inf, jax.lax.max,
        (1, 1, 3, 3), (1, 1, 1, 1), [(0, 0), (0, 0), (1, 1), (1, 1)])
    y4 = ref_branch(pooled, params["b4"])
    return jnp.concatenate([y1, y2, y3, y4], axis=1)


# ----------------------------------------------------------------------------------
if __name__ == "__main__":
    key = jax.random.PRNGKey(0)
    kx, kp = jax.random.split(key)

    # Small shapes: batch=2, in_channels=4, spatial=16x16
    N, Cin, H, W = 2, 4, 16, 16
    x = jax.random.normal(kx, (N, Cin, H, W), jnp.float32)

    # InceptionBlock(in=4, out_1x1=8, 3x3_red=4, 3x3=8, 5x5_red=4, 5x5=8, pool=8)
    params = make_inception_params(kp, Cin, 8, 4, 8, 4, 8, 8)

    fwd = jax.jit(inception_block_forward)
    out = jax.block_until_ready(fwd(x, params))
    assert out.shape == (N, 8 + 8 + 8 + 8, H, W), out.shape

    ref = jax.block_until_ready(ref_inception(x, params))
    if not np.allclose(np.asarray(out), np.asarray(ref), rtol=1e-3, atol=1e-3):
        raise AssertionError("Pallas InceptionBlock output mismatch vs reference")

    print("KERNEL_OK")
</pallas_src>

<mosaic_0001>
module attributes {stable_mosaic.version = 11 : i64} {
  func.func @_inception_kernel(%arg0: i32, %arg1: memref<32x64xf32, #tpu.memory_space<vmem>>, %arg2: memref<64x256xf32, #tpu.memory_space<vmem>>, %arg3: memref<3x64x128xf32, #tpu.memory_space<vmem>>, %arg4: memref<3x64x128xf32, #tpu.memory_space<vmem>>, %arg5: memref<3x128x128xf32, #tpu.memory_space<vmem>>, %arg6: memref<64x128xf32, #tpu.memory_space<vmem>>, %arg7: memref<1x8xf32, #tpu.memory_space<vmem>>, %arg8: memref<1x8xf32, #tpu.memory_space<vmem>>, %arg9: memref<1x4xf32, #tpu.memory_space<vmem>>, %arg10: memref<1x4xf32, #tpu.memory_space<vmem>>, %arg11: memref<1x8xf32, #tpu.memory_space<vmem>>, %arg12: memref<1x8xf32, #tpu.memory_space<vmem>>, %arg13: memref<1x4xf32, #tpu.memory_space<vmem>>, %arg14: memref<1x4xf32, #tpu.memory_space<vmem>>, %arg15: memref<1x8xf32, #tpu.memory_space<vmem>>, %arg16: memref<1x8xf32, #tpu.memory_space<vmem>>, %arg17: memref<1x8xf32, #tpu.memory_space<vmem>>, %arg18: memref<1x8xf32, #tpu.memory_space<vmem>>, %arg19: memref<1x8xf32, #tpu.memory_space<vmem>>, %arg20: memref<1x8xf32, #tpu.memory_space<vmem>>, %arg21: memref<32x512xf32, #tpu.memory_space<vmem>>) attributes {dimension_semantics = [#tpu.dimension_semantics<arbitrary>], iteration_bounds = array<i64: 1>, scalar_prefetch = 0 : i64, scratch_operands = 0 : i64, tpu.core_type = #tpu.core_type<tc>, window_params = [{pipeline_mode = #tpu.pipeline_mode<synchronous>, transform_indices = @transform_0, window_bounds = array<i64: 32, 64>}, {pipeline_mode = #tpu.pipeline_mode<synchronous>, transform_indices = @transform_1, window_bounds = array<i64: 64, 256>}, {pipeline_mode = #tpu.pipeline_mode<synchronous>, transform_indices = @transform_2, window_bounds = array<i64: 3, 64, 128>}, {pipeline_mode = #tpu.pipeline_mode<synchronous>, transform_indices = @transform_3, window_bounds = array<i64: 3, 64, 128>}, {pipeline_mode = #tpu.pipeline_mode<synchronous>, transform_indices = @transform_4, window_bounds = array<i64: 3, 128, 128>}, {pipeline_mode = #tpu.pipeline_mode<synchronous>, transform_indices = @transform_5, window_bounds = array<i64: 64, 128>}, {pipeline_mode = #tpu.pipeline_mode<synchronous>, transform_indices = @transform_6, window_bounds = array<i64: 1, 8>}, {pipeline_mode = #tpu.pipeline_mode<synchronous>, transform_indices = @transform_7, window_bounds = array<i64: 1, 8>}, {pipeline_mode = #tpu.pipeline_mode<synchronous>, transform_indices = @transform_8, window_bounds = array<i64: 1, 4>}, {pipeline_mode = #tpu.pipeline_mode<synchronous>, transform_indices = @transform_9, window_bounds = array<i64: 1, 4>}, {pipeline_mode = #tpu.pipeline_mode<synchronous>, transform_indices = @transform_10, window_bounds = array<i64: 1, 8>}, {pipeline_mode = #tpu.pipeline_mode<synchronous>, transform_indices = @transform_11, window_bounds = array<i64: 1, 8>}, {pipeline_mode = #tpu.pipeline_mode<synchronous>, transform_indices = @transform_12, window_bounds = array<i64: 1, 4>}, {pipeline_mode = #tpu.pipeline_mode<synchronous>, transform_indices = @transform_13, window_bounds = array<i64: 1, 4>}, {pipeline_mode = #tpu.pipeline_mode<synchronous>, transform_indices = @transform_14, window_bounds = array<i64: 1, 8>}, {pipeline_mode = #tpu.pipeline_mode<synchronous>, transform_indices = @transform_15, window_bounds = array<i64: 1, 8>}, {pipeline_mode = #tpu.pipeline_mode<synchronous>, transform_indices = @transform_16, window_bounds = array<i64: 1, 8>}, {pipeline_mode = #tpu.pipeline_mode<synchronous>, transform_indices = @transform_17, window_bounds = array<i64: 1, 8>}, {pipeline_mode = #tpu.pipeline_mode<synchronous>, transform_indices = @transform_18, window_bounds = array<i64: 1, 8>}, {pipeline_mode = #tpu.pipeline_mode<synchronous>, transform_indices = @transform_19, window_bounds = array<i64: 1, 8>}, {pipeline_mode = #tpu.pipeline_mode<synchronous>, transform_indices = @transform_20, window_bounds = array<i64: 32, 512>}]} {
    %0 = tpu.iota {dimensions = array<i32: 0>} : vector<32x1xi32>
    %c16_i32 = arith.constant 16 : i32
    %c0_i32 = arith.constant 0 : i32
    %1 = arith.cmpi eq, %c16_i32, %c0_i32 : i32
    %c1_i32 = arith.constant 1 : i32
    %2 = arith.select %1, %c1_i32, %c16_i32 : i32
    %3 = vector.broadcast %2 : i32 to vector<32x1xi32>
    %4 = arith.remsi %0, %3 : vector<32x1xi32>
    %c0_i32_0 = arith.constant 0 : i32
    %5 = vector.broadcast %c0_i32_0 : i32 to vector<32x1xi32>
    %6 = arith.cmpi ne, %4, %5 : vector<32x1xi32>
    %c0_i32_1 = arith.constant 0 : i32
    %7 = vector.broadcast %c0_i32_1 : i32 to vector<32x1xi32>
    %8 = arith.cmpi slt, %4, %7 : vector<32x1xi32>
    %c0_i32_2 = arith.constant 0 : i32
    %9 = arith.cmpi slt, %2, %c0_i32_2 : i32
    %10 = vector.broadcast %9 : i1 to vector<32x1xi1>
    %11 = vector.broadcast %10 : vector<32x1xi1> to vector<32x1xi1>
    %12 = arith.xori %8, %11 : vector<32x1xi1>
    %13 = arith.andi %12, %6 : vector<32x1xi1>
    %14 = vector.broadcast %2 : i32 to vector<32x1xi32>
    %15 = arith.addi %4, %14 : vector<32x1xi32>
    %16 = arith.select %13, %15, %4 : vector<32x1xi1>, vector<32x1xi32>
    %17 = tpu.iota {dimensions = array<i32: 0>} : vector<64x4xi32>
    %18 = tpu.iota {dimensions = array<i32: 1>} : vector<64x4xi32>
    %c4_i32 = arith.constant 4 : i32
    %c0_i32_3 = arith.constant 0 : i32
    %19 = arith.cmpi eq, %c4_i32, %c0_i32_3 : i32
    %c1_i32_4 = arith.constant 1 : i32
    %20 = arith.select %19, %c1_i32_4, %c4_i32 : i32
    %21 = vector.broadcast %20 : i32 to vector<64x4xi32>
    %22 = arith.remsi %17, %21 : vector<64x4xi32>
    %c0_i32_5 = arith.constant 0 : i32
    %23 = vector.broadcast %c0_i32_5 : i32 to vector<64x4xi32>
    %24 = arith.cmpi ne, %22, %23 : vector<64x4xi32>
    %c0_i32_6 = arith.constant 0 : i32
    %25 = vector.broadcast %c0_i32_6 : i32 to vector<64x4xi32>
    %26 = arith.cmpi slt, %22, %25 : vector<64x4xi32>
    %c0_i32_7 = arith.constant 0 : i32
    %27 = arith.cmpi slt, %20, %c0_i32_7 : i32
    %28 = vector.broadcast %27 : i1 to vector<64x4xi1>
    %29 = vector.broadcast %28 : vector<64x4xi1> to vector<64x4xi1>
    %30 = arith.xori %26, %29 : vector<64x4xi1>
    %31 = arith.andi %30, %24 : vector<64x4xi1>
    %32 = vector.broadcast %20 : i32 to vector<64x4xi32>
    %33 = arith.addi %22, %32 : vector<64x4xi32>
    %34 = arith.select %31, %33, %22 : vector<64x4xi1>, vector<64x4xi32>
    %35 = arith.cmpi eq, %34, %18 : vector<64x4xi32>
    %36 = arith.extui %35 : vector<64x4xi1> to vector<64x4xi32>
    %37 = arith.sitofp %36 : vector<64x4xi32> to vector<64x4xf32>
    %38 = tpu.iota {dimensions = array<i32: 0>} : vector<4x64xi32>
    %39 = tpu.iota {dimensions = array<i32: 1>} : vector<4x64xi32>
    %c4_i32_8 = arith.constant 4 : i32
    %c0_i32_9 = arith.constant 0 : i32
    %40 = arith.cmpi eq, %c4_i32_8, %c0_i32_9 : i32
    %c1_i32_10 = arith.constant 1 : i32
    %41 = arith.select %40, %c1_i32_10, %c4_i32_8 : i32
    %42 = vector.broadcast %41 : i32 to vector<4x64xi32>
    %43 = arith.remsi %39, %42 : vector<4x64xi32>
    %c0_i32_11 = arith.constant 0 : i32
    %44 = vector.broadcast %c0_i32_11 : i32 to vector<4x64xi32>
    %45 = arith.cmpi ne, %43, %44 : vector<4x64xi32>
    %c0_i32_12 = arith.constant 0 : i32
    %46 = vector.broadcast %c0_i32_12 : i32 to vector<4x64xi32>
    %47 = arith.cmpi slt, %43, %46 : vector<4x64xi32>
    %c0_i32_13 = arith.constant 0 : i32
    %48 = arith.cmpi slt, %41, %c0_i32_13 : i32
    %49 = vector.broadcast %48 : i1 to vector<4x64xi1>
    %50 = vector.broadcast %49 : vector<4x64xi1> to vector<4x64xi1>
    %51 = arith.xori %47, %50 : vector<4x64xi1>
    %52 = arith.andi %51, %45 : vector<4x64xi1>
    %53 = vector.broadcast %41 : i32 to vector<4x64xi32>
    %54 = arith.addi %43, %53 : vector<4x64xi32>
    %55 = arith.select %52, %54, %43 : vector<4x64xi1>, vector<4x64xi32>
    %56 = arith.cmpi eq, %55, %38 : vector<4x64xi32>
    %57 = arith.extui %56 : vector<4x64xi1> to vector<4x64xi32>
    %58 = arith.sitofp %57 : vector<4x64xi32> to vector<4x64xf32>
    %59 = tpu.iota {dimensions = array<i32: 0>} : vector<128x8xi32>
    %60 = tpu.iota {dimensions = array<i32: 1>} : vector<128x8xi32>
    %c8_i32 = arith.constant 8 : i32
    %c0_i32_14 = arith.constant 0 : i32
    %61 = arith.cmpi eq, %c8_i32, %c0_i32_14 : i32
    %c1_i32_15 = arith.constant 1 : i32
    %62 = arith.select %61, %c1_i32_15, %c8_i32 : i32
    %63 = vector.broadcast %62 : i32 to vector<128x8xi32>
    %64 = arith.remsi %59, %63 : vector<128x8xi32>
    %c0_i32_16 = arith.constant 0 : i32
    %65 = vector.broadcast %c0_i32_16 : i32 to vector<128x8xi32>
    %66 = arith.cmpi ne, %64, %65 : vector<128x8xi32>
    %c0_i32_17 = arith.constant 0 : i32
    %67 = vector.broadcast %c0_i32_17 : i32 to vector<128x8xi32>
    %68 = arith.cmpi slt, %64, %67 : vector<128x8xi32>
    %c0_i32_18 = arith.constant 0 : i32
    %69 = arith.cmpi slt, %62, %c0_i32_18 : i32
    %70 = vector.broadcast %69 : i1 to vector<128x8xi1>
    %71 = vector.broadcast %70 : vector<128x8xi1> to vector<128x8xi1>
    %72 = arith.xori %68, %71 : vector<128x8xi1>
    %73 = arith.andi %72, %66 : vector<128x8xi1>
    %74 = vector.broadcast %62 : i32 to vector<128x8xi32>
    %75 = arith.addi %64, %74 : vector<128x8xi32>
    %76 = arith.select %73, %75, %64 : vector<128x8xi1>, vector<128x8xi32>
    %77 = arith.cmpi eq, %76, %60 : vector<128x8xi32>
    %78 = arith.extui %77 : vector<128x8xi1> to vector<128x8xi32>
    %79 = arith.sitofp %78 : vector<128x8xi32> to vector<128x8xf32>
    %80 = tpu.iota {dimensions = array<i32: 0>} : vector<8x128xi32>
    %81 = tpu.iota {dimensions = array<i32: 1>} : vector<8x128xi32>
    %c8_i32_19 = arith.constant 8 : i32
    %c0_i32_20 = arith.constant 0 : i32
    %82 = arith.cmpi eq, %c8_i32_19, %c0_i32_20 : i32
    %c1_i32_21 = arith.constant 1 : i32
    %83 = arith.select %82, %c1_i32_21, %c8_i32_19 : i32
    %84 = vector.broadcast %83 : i32 to vector<8x128xi32>
    %85 = arith.remsi %81, %84 : vector<8x128xi32>
    %c0_i32_22 = arith.constant 0 : i32
    %86 = vector.broadcast %c0_i32_22 : i32 to vector<8x128xi32>
    %87 = arith.cmpi ne, %85, %86 : vector<8x128xi32>
    %c0_i32_23 = arith.constant 0 : i32
    %88 = vector.broadcast %c0_i32_23 : i32 to vector<8x128xi32>
    %89 = arith.cmpi slt, %85, %88 : vector<8x128xi32>
    %c0_i32_24 = arith.constant 0 : i32
    %90 = arith.cmpi slt, %83, %c0_i32_24 : i32
    %91 = vector.broadcast %90 : i1 to vector<8x128xi1>
    %92 = vector.broadcast %91 : vector<8x128xi1> to vector<8x128xi1>
    %93 = arith.xori %89, %92 : vector<8x128xi1>
    %94 = arith.andi %93, %87 : vector<8x128xi1>
    %95 = vector.broadcast %83 : i32 to vector<8x128xi32>
    %96 = arith.addi %85, %95 : vector<8x128xi32>
    %97 = arith.select %94, %96, %85 : vector<8x128xi1>, vector<8x128xi32>
    %98 = arith.cmpi eq, %97, %80 : vector<8x128xi32>
    %99 = arith.extui %98 : vector<8x128xi1> to vector<8x128xi32>
    %100 = arith.sitofp %99 : vector<8x128xi32> to vector<8x128xf32>
    %c0 = arith.constant 0 : index
    %c0_25 = arith.constant 0 : index
    %101 = vector.load %arg1[%c0, %c0_25] : memref<32x64xf32, #tpu.memory_space<vmem>>, vector<32x64xf32>
    %c0_26 = arith.constant 0 : index
    %c0_27 = arith.constant 0 : index
    %102 = vector.load %arg2[%c0_26, %c0_27] : memref<64x256xf32, #tpu.memory_space<vmem>>, vector<64x256xf32>
    %cst = arith.constant dense<0.000000e+00> : vector<32x256xf32>
    %103 = tpu.matmul %101, %102, %cst {dimension_numbers = #tpu.dot_dimension_numbers<[1], [0], [0], [1], [0, 0, 1, 1], [], []>} : vector<32x64xf32>, vector<64x256xf32>, vector<32x256xf32> -> vector<32x256xf32>
    %104 = vector.extract_strided_slice %103 {offsets = [0, 0], sizes = [32, 128], strides = [1, 1]} : vector<32x256xf32> to vector<32x128xf32>
    %cst_28 = arith.constant dense<0.000000e+00> : vector<128xf32>
    %105 = vector.multi_reduction <add>, %104, %cst_28 [0] : vector<32x128xf32> to vector<128xf32>
    %106 = vector.shape_cast %105 : vector<128xf32> to vector<1x128xf32>
    %107 = arith.mulf %104, %104 : vector<32x128xf32>
    %cst_29 = arith.constant dense<0.000000e+00> : vector<128xf32>
    %108 = vector.multi_reduction <add>, %107, %cst_29 [0] : vector<32x128xf32> to vector<128xf32>
    %109 = vector.shape_cast %108 : vector<128xf32> to vector<1x128xf32>
    %cst_30 = arith.constant dense<0.000000e+00> : vector<1x8xf32>
    %110 = tpu.matmul %106, %79, %cst_30 {dimension_numbers = #tpu.dot_dimension_numbers<[1], [0], [0], [1], [0, 0, 1, 1], [], []>} : vector<1x128xf32>, vector<128x8xf32>, vector<1x8xf32> -> vector<1x8xf32>
    %cst_31 = arith.constant dense<0.000000e+00> : vector<1x8xf32>
    %111 = tpu.matmul %109, %79, %cst_31 {dimension_numbers = #tpu.dot_dimension_numbers<[1], [0], [0], [1], [0, 0, 1, 1], [], []>} : vector<1x128xf32>, vector<128x8xf32>, vector<1x8xf32> -> vector<1x8xf32>
    %cst_32 = arith.constant 0.001953125 : f32
    %112 = vector.broadcast %cst_32 : f32 to vector<1x8xf32>
    %113 = arith.mulf %110, %112 : vector<1x8xf32>
    %cst_33 = arith.constant 0.001953125 : f32
    %114 = vector.broadcast %cst_33 : f32 to vector<1x8xf32>
    %115 = arith.mulf %111, %114 : vector<1x8xf32>
    %116 = arith.mulf %113, %113 : vector<1x8xf32>
    %117 = arith.subf %115, %116 : vector<1x8xf32>
    %cst_34 = arith.constant 0.000000e+00 : f32
    %118 = vector.broadcast %cst_34 : f32 to vector<1x8xf32>
    %119 = arith.maximumf %117, %118 : vector<1x8xf32>
    %cst_35 = arith.constant 1.000000e-03 : f32
    %120 = vector.broadcast %cst_35 : f32 to vector<1x8xf32>
    %121 = arith.addf %119, %120 : vector<1x8xf32>
    %122 = math.rsqrt %121 : vector<1x8xf32>
    %c0_36 = arith.constant 0 : index
    %c0_37 = arith.constant 0 : index
    %123 = vector.load %arg7[%c0_36, %c0_37] : memref<1x8xf32, #tpu.memory_space<vmem>>, vector<1x8xf32>
    %124 = arith.mulf %122, %123 : vector<1x8xf32>
    %c0_38 = arith.constant 0 : index
    %c0_39 = arith.constant 0 : index
    %125 = vector.load %arg8[%c0_38, %c0_39] : memref<1x8xf32, #tpu.memory_space<vmem>>, vector<1x8xf32>
    %126 = arith.mulf %113, %124 : vector<1x8xf32>
    %127 = arith.subf %125, %126 : vector<1x8xf32>
    %cst_40 = arith.constant dense<0.000000e+00> : vector<1x128xf32>
    %128 = tpu.matmul %124, %100, %cst_40 {dimension_numbers = #tpu.dot_dimension_numbers<[1], [0], [0], [1], [0, 0, 1, 1], [], []>} : vector<1x8xf32>, vector<8x128xf32>, vector<1x128xf32> -> vector<1x128xf32>
    %cst_41 = arith.constant dense<0.000000e+00> : vector<1x128xf32>
    %129 = tpu.matmul %127, %100, %cst_41 {dimension_numbers = #tpu.dot_dimension_numbers<[1], [0], [0], [1], [0, 0, 1, 1], [], []>} : vector<1x8xf32>, vector<8x128xf32>, vector<1x128xf32> -> vector<1x128xf32>
    %130 = vector.broadcast %128 : vector<1x128xf32> to vector<32x128xf32>
    %131 = arith.mulf %104, %130 : vector<32x128xf32>
    %132 = vector.broadcast %129 : vector<1x128xf32> to vector<32x128xf32>
    %133 = arith.addf %131, %132 : vector<32x128xf32>
    %cst_42 = arith.constant 0.000000e+00 : f32
    %134 = vector.broadcast %cst_42 : f32 to vector<32x128xf32>
    %135 = arith.maximumf %133, %134 : vector<32x128xf32>
    %136 = vector.extract_strided_slice %103 {offsets = [0, 128], sizes = [32, 64], strides = [1, 1]} : vector<32x256xf32> to vector<32x64xf32>
    %cst_43 = arith.constant dense<0.000000e+00> : vector<64xf32>
    %137 = vector.multi_reduction <add>, %136, %cst_43 [0] : vector<32x64xf32> to vector<64xf32>
    %138 = vector.shape_cast %137 : vector<64xf32> to vector<1x64xf32>
    %139 = arith.mulf %136, %136 : vector<32x64xf32>
    %cst_44 = arith.constant dense<0.000000e+00> : vector<64xf32>
    %140 = vector.multi_reduction <add>, %139, %cst_44 [0] : vector<32x64xf32> to vector<64xf32>
    %141 = vector.shape_cast %140 : vector<64xf32> to vector<1x64xf32>
    %cst_45 = arith.constant dense<0.000000e+00> : vector<1x4xf32>
    %142 = tpu.matmul %138, %37, %cst_45 {dimension_numbers = #tpu.dot_dimension_numbers<[1], [0], [0], [1], [0, 0, 1, 1], [], []>} : vector<1x64xf32>, vector<64x4xf32>, vector<1x4xf32> -> vector<1x4xf32>
    %cst_46 = arith.constant dense<0.000000e+00> : vector<1x4xf32>
    %143 = tpu.matmul %141, %37, %cst_46 {dimension_numbers = #tpu.dot_dimension_numbers<[1], [0], [0], [1], [0, 0, 1, 1], [], []>} : vector<1x64xf32>, vector<64x4xf32>, vector<1x4xf32> -> vector<1x4xf32>
    %cst_47 = arith.constant 0.001953125 : f32
    %144 = vector.broadcast %cst_47 : f32 to vector<1x4xf32>
    %145 = arith.mulf %142, %144 : vector<1x4xf32>
    %cst_48 = arith.constant 0.001953125 : f32
    %146 = vector.broadcast %cst_48 : f32 to vector<1x4xf32>
    %147 = arith.mulf %143, %146 : vector<1x4xf32>
    %148 = arith.mulf %145, %145 : vector<1x4xf32>
    %149 = arith.subf %147, %148 : vector<1x4xf32>
    %cst_49 = arith.constant 0.000000e+00 : f32
    %150 = vector.broadcast %cst_49 : f32 to vector<1x4xf32>
    %151 = arith.maximumf %149, %150 : vector<1x4xf32>
    %cst_50 = arith.constant 1.000000e-03 : f32
    %152 = vector.broadcast %cst_50 : f32 to vector<1x4xf32>
    %153 = arith.addf %151, %152 : vector<1x4xf32>
    %154 = math.rsqrt %153 : vector<1x4xf32>
    %c0_51 = arith.constant 0 : index
    %c0_52 = arith.constant 0 : index
    %155 = vector.load %arg9[%c0_51, %c0_52] : memref<1x4xf32, #tpu.memory_space<vmem>>, vector<1x4xf32>
    %156 = arith.mulf %154, %155 : vector<1x4xf32>
    %c0_53 = arith.constant 0 : index
    %c0_54 = arith.constant 0 : index
    %157 = vector.load %arg10[%c0_53, %c0_54] : memref<1x4xf32, #tpu.memory_space<vmem>>, vector<1x4xf32>
    %158 = arith.mulf %145, %156 : vector<1x4xf32>
    %159 = arith.subf %157, %158 : vector<1x4xf32>
    %cst_55 = arith.constant dense<0.000000e+00> : vector<1x64xf32>
    %160 = tpu.matmul %156, %58, %cst_55 {dimension_numbers = #tpu.dot_dimension_numbers<[1], [0], [0], [1], [0, 0, 1, 1], [], []>} : vector<1x4xf32>, vector<4x64xf32>, vector<1x64xf32> -> vector<1x64xf32>
    %cst_56 = arith.constant dense<0.000000e+00> : vector<1x64xf32>
    %161 = tpu.matmul %159, %58, %cst_56 {dimension_numbers = #tpu.dot_dimension_numbers<[1], [0], [0], [1], [0, 0, 1, 1], [], []>} : vector<1x4xf32>, vector<4x64xf32>, vector<1x64xf32> -> vector<1x64xf32>
    %162 = vector.broadcast %160 : vector<1x64xf32> to vector<32x64xf32>
    %163 = arith.mulf %136, %162 : vector<32x64xf32>
    %164 = vector.broadcast %161 : vector<1x64xf32> to vector<32x64xf32>
    %165 = arith.addf %163, %164 : vector<32x64xf32>
    %cst_57 = arith.constant 0.000000e+00 : f32
    %166 = vector.broadcast %cst_57 : f32 to vector<32x64xf32>
    %167 = arith.maximumf %165, %166 : vector<32x64xf32>
    %168 = vector.extract_strided_slice %103 {offsets = [0, 192], sizes = [32, 64], strides = [1, 1]} : vector<32x256xf32> to vector<32x64xf32>
    %cst_58 = arith.constant dense<0.000000e+00> : vector<64xf32>
    %169 = vector.multi_reduction <add>, %168, %cst_58 [0] : vector<32x64xf32> to vector<64xf32>
    %170 = vector.shape_cast %169 : vector<64xf32> to vector<1x64xf32>
    %171 = arith.mulf %168, %168 : vector<32x64xf32>
    %cst_59 = arith.constant dense<0.000000e+00> : vector<64xf32>
    %172 = vector.multi_reduction <add>, %171, %cst_59 [0] : vector<32x64xf32> to vector<64xf32>
    %173 = vector.shape_cast %172 : vector<64xf32> to vector<1x64xf32>
    %cst_60 = arith.constant dense<0.000000e+00> : vector<1x4xf32>
    %174 = tpu.matmul %170, %37, %cst_60 {dimension_numbers = #tpu.dot_dimension_numbers<[1], [0], [0], [1], [0, 0, 1, 1], [], []>} : vector<1x64xf32>, vector<64x4xf32>, vector<1x4xf32> -> vector<1x4xf32>
    %cst_61 = arith.constant dense<0.000000e+00> : vector<1x4xf32>
    %175 = tpu.matmul %173, %37, %cst_61 {dimension_numbers = #tpu.dot_dimension_numbers<[1], [0], [0], [1], [0, 0, 1, 1], [], []>} : vector<1x64xf32>, vector<64x4xf32>, vector<1x4xf32> -> vector<1x4xf32>
    %cst_62 = arith.constant 0.001953125 : f32
    %176 = vector.broadcast %cst_62 : f32 to vector<1x4xf32>
    %177 = arith.mulf %174, %176 : vector<1x4xf32>
    %cst_63 = arith.constant 0.001953125 : f32
    %178 = vector.broadcast %cst_63 : f32 to vector<1x4xf32>
    %179 = arith.mulf %175, %178 : vector<1x4xf32>
    %180 = arith.mulf %177, %177 : vector<1x4xf32>
    %181 = arith.subf %179, %180 : vector<1x4xf32>
    %cst_64 = arith.constant 0.000000e+00 : f32
    %182 = vector.broadcast %cst_64 : f32 to vector<1x4xf32>
    %183 = arith.maximumf %181, %182 : vector<1x4xf32>
    %cst_65 = arith.constant 1.000000e-03 : f32
    %184 = vector.broadcast %cst_65 : f32 to vector<1x4xf32>
    %185 = arith.addf %183, %184 : vector<1x4xf32>
    %186 = math.rsqrt %185 : vector<1x4xf32>
    %c0_66 = arith.constant 0 : index
    %c0_67 = arith.constant 0 : index
    %187 = vector.load %arg13[%c0_66, %c0_67] : memref<1x4xf32, #tpu.memory_space<vmem>>, vector<1x4xf32>
    %188 = arith.mulf %186, %187 : vector<1x4xf32>
    %c0_68 = arith.constant 0 : index
    %c0_69 = arith.constant 0 : index
    %189 = vector.load %arg14[%c0_68, %c0_69] : memref<1x4xf32, #tpu.memory_space<vmem>>, vector<1x4xf32>
    %190 = arith.mulf %177, %188 : vector<1x4xf32>
    %191 = arith.subf %189, %190 : vector<1x4xf32>
    %cst_70 = arith.constant dense<0.000000e+00> : vector<1x64xf32>
    %192 = tpu.matmul %188, %58, %cst_70 {dimension_numbers = #tpu.dot_dimension_numbers<[1], [0], [0], [1], [0, 0, 1, 1], [], []>} : vector<1x4xf32>, vector<4x64xf32>, vector<1x64xf32> -> vector<1x64xf32>
    %cst_71 = arith.constant dense<0.000000e+00> : vector<1x64xf32>
    %193 = tpu.matmul %191, %58, %cst_71 {dimension_numbers = #tpu.dot_dimension_numbers<[1], [0], [0], [1], [0, 0, 1, 1], [], []>} : vector<1x4xf32>, vector<4x64xf32>, vector<1x64xf32> -> vector<1x64xf32>
    %194 = vector.broadcast %192 : vector<1x64xf32> to vector<32x64xf32>
    %195 = arith.mulf %168, %194 : vector<32x64xf32>
    %196 = vector.broadcast %193 : vector<1x64xf32> to vector<32x64xf32>
    %197 = arith.addf %195, %196 : vector<32x64xf32>
    %cst_72 = arith.constant 0.000000e+00 : f32
    %198 = vector.broadcast %cst_72 : f32 to vector<32x64xf32>
    %199 = arith.maximumf %197, %198 : vector<32x64xf32>
    %c1 = arith.constant 1 : index
    %c0_73 = arith.constant 0 : index
    %c0_74 = arith.constant 0 : index
    %200 = vector.load %arg3[%c1, %c0_73, %c0_74] : memref<3x64x128xf32, #tpu.memory_space<vmem>>, vector<1x64x128xf32>
    %201 = vector.shape_cast %200 : vector<1x64x128xf32> to vector<64x128xf32>
    %cst_75 = arith.constant dense<0.000000e+00> : vector<32x128xf32>
    %202 = tpu.matmul %167, %201, %cst_75 {dimension_numbers = #tpu.dot_dimension_numbers<[1], [0], [0], [1], [0, 0, 1, 1], [], []>} : vector<32x64xf32>, vector<64x128xf32>, vector<32x128xf32> -> vector<32x128xf32>
    %cst_76 = arith.constant 0.000000e+00 : f32
    %203 = vector.broadcast %cst_76 : f32 to vector<1x64xf32>
    %204 = vector.extract_strided_slice %167 {offsets = [0, 0], sizes = [31, 64], strides = [1, 1]} : vector<32x64xf32> to vector<31x64xf32>
    %205 = tpu.concatenate %203, %204 in 0 : vector<1x64xf32>, vector<31x64xf32> -> vector<32x64xf32>
    %c1_i32_77 = arith.constant 1 : i32
    %206 = vector.broadcast %c1_i32_77 : i32 to vector<32x1xi32>
    %207 = arith.cmpi sge, %16, %206 : vector<32x1xi32>
    %cst_78 = arith.constant 0.000000e+00 : f32
    %208 = vector.shape_cast %207 : vector<32x1xi1> to vector<32x1xi1>
    %209 = vector.broadcast %208 : vector<32x1xi1> to vector<32x64xi1>
    %210 = vector.broadcast %cst_78 : f32 to vector<32x64xf32>
    %211 = arith.select %209, %205, %210 : vector<32x64xi1>, vector<32x64xf32>
    %c0_79 = arith.constant 0 : index
    %c0_80 = arith.constant 0 : index
    %c0_81 = arith.constant 0 : index
    %212 = vector.load %arg3[%c0_79, %c0_80, %c0_81] : memref<3x64x128xf32, #tpu.memory_space<vmem>>, vector<1x64x128xf32>
    %213 = vector.shape_cast %212 : vector<1x64x128xf32> to vector<64x128xf32>
    %cst_82 = arith.constant dense<0.000000e+00> : vector<32x128xf32>
    %214 = tpu.matmul %211, %213, %cst_82 {dimension_numbers = #tpu.dot_dimension_numbers<[1], [0], [0], [1], [0, 0, 1, 1], [], []>} : vector<32x64xf32>, vector<64x128xf32>, vector<32x128xf32> -> vector<32x128xf32>
    %215 = arith.addf %202, %214 : vector<32x128xf32>
    %cst_83 = arith.constant 0.000000e+00 : f32
    %216 = vector.broadcast %cst_83 : f32 to vector<1x64xf32>
    %217 = vector.extract_strided_slice %167 {offsets = [1, 0], sizes = [31, 64], strides = [1, 1]} : vector<32x64xf32> to vector<31x64xf32>
    %218 = tpu.concatenate %217, %216 in 0 : vector<31x64xf32>, vector<1x64xf32> -> vector<32x64xf32>
    %c15_i32 = arith.constant 15 : i32
    %219 = vector.broadcast %c15_i32 : i32 to vector<32x1xi32>
    %220 = arith.cmpi slt, %16, %219 : vector<32x1xi32>
    %cst_84 = arith.constant 0.000000e+00 : f32
    %221 = vector.shape_cast %220 : vector<32x1xi1> to vector<32x1xi1>
    %222 = vector.broadcast %221 : vector<32x1xi1> to vector<32x64xi1>
    %223 = vector.broadcast %cst_84 : f32 to vector<32x64xf32>
    %224 = arith.select %222, %218, %223 : vector<32x64xi1>, vector<32x64xf32>
    %c2 = arith.constant 2 : index
    %c0_85 = arith.constant 0 : index
    %c0_86 = arith.constant 0 : index
    %225 = vector.load %arg3[%c2, %c0_85, %c0_86] : memref<3x64x128xf32, #tpu.memory_space<vmem>>, vector<1x64x128xf32>
    %226 = vector.shape_cast %225 : vector<1x64x128xf32> to vector<64x128xf32>
    %cst_87 = arith.constant dense<0.000000e+00> : vector<32x128xf32>
    %227 = tpu.matmul %224, %226, %cst_87 {dimension_numbers = #tpu.dot_dimension_numbers<[1], [0], [0], [1], [0, 0, 1, 1], [], []>} : vector<32x64xf32>, vector<64x128xf32>, vector<32x128xf32> -> vector<32x128xf32>
    %228 = arith.addf %215, %227 : vector<32x128xf32>
    %cst_88 = arith.constant dense<0.000000e+00> : vector<128xf32>
    %229 = vector.multi_reduction <add>, %228, %cst_88 [0] : vector<32x128xf32> to vector<128xf32>
    %230 = vector.shape_cast %229 : vector<128xf32> to vector<1x128xf32>
    %231 = arith.mulf %228, %228 : vector<32x128xf32>
    %cst_89 = arith.constant dense<0.000000e+00> : vector<128xf32>
    %232 = vector.multi_reduction <add>, %231, %cst_89 [0] : vector<32x128xf32> to vector<128xf32>
    %233 = vector.shape_cast %232 : vector<128xf32> to vector<1x128xf32>
    %cst_90 = arith.constant dense<0.000000e+00> : vector<1x8xf32>
    %234 = tpu.matmul %230, %79, %cst_90 {dimension_numbers = #tpu.dot_dimension_numbers<[1], [0], [0], [1], [0, 0, 1, 1], [], []>} : vector<1x128xf32>, vector<128x8xf32>, vector<1x8xf32> -> vector<1x8xf32>
    %cst_91 = arith.constant dense<0.000000e+00> : vector<1x8xf32>
    %235 = tpu.matmul %233, %79, %cst_91 {dimension_numbers = #tpu.dot_dimension_numbers<[1], [0], [0], [1], [0, 0, 1, 1], [], []>} : vector<1x128xf32>, vector<128x8xf32>, vector<1x8xf32> -> vector<1x8xf32>
    %cst_92 = arith.constant 0.001953125 : f32
    %236 = vector.broadcast %cst_92 : f32 to vector<1x8xf32>
    %237 = arith.mulf %234, %236 : vector<1x8xf32>
    %cst_93 = arith.constant 0.001953125 : f32
    %238 = vector.broadcast %cst_93 : f32 to vector<1x8xf32>
    %239 = arith.mulf %235, %238 : vector<1x8xf32>
    %240 = arith.mulf %237, %237 : vector<1x8xf32>
    %241 = arith.subf %239, %240 : vector<1x8xf32>
    %cst_94 = arith.constant 0.000000e+00 : f32
    %242 = vector.broadcast %cst_94 : f32 to vector<1x8xf32>
    %243 = arith.maximumf %241, %242 : vector<1x8xf32>
    %cst_95 = arith.constant 1.000000e-03 : f32
    %244 = vector.broadcast %cst_95 : f32 to vector<1x8xf32>
    %245 = arith.addf %243, %244 : vector<1x8xf32>
    %246 = math.rsqrt %245 : vector<1x8xf32>
    %c0_96 = arith.constant 0 : index
    %c0_97 = arith.constant 0 : index
    %247 = vector.load %arg11[%c0_96, %c0_97] : memref<1x8xf32, #tpu.memory_space<vmem>>, vector<1x8xf32>
    %248 = arith.mulf %246, %247 : vector<1x8xf32>
    %c0_98 = arith.constant 0 : index
    %c0_99 = arith.constant 0 : index
    %249 = vector.load %arg12[%c0_98, %c0_99] : memref<1x8xf32, #tpu.memory_space<vmem>>, vector<1x8xf32>
    %250 = arith.mulf %237, %248 : vector<1x8xf32>
    %251 = arith.subf %249, %250 : vector<1x8xf32>
    %cst_100 = arith.constant dense<0.000000e+00> : vector<1x128xf32>
    %252 = tpu.matmul %248, %100, %cst_100 {dimension_numbers = #tpu.dot_dimension_numbers<[1], [0], [0], [1], [0, 0, 1, 1], [], []>} : vector<1x8xf32>, vector<8x128xf32>, vector<1x128xf32> -> vector<1x128xf32>
    %cst_101 = arith.constant dense<0.000000e+00> : vector<1x128xf32>
    %253 = tpu.matmul %251, %100, %cst_101 {dimension_numbers = #tpu.dot_dimension_numbers<[1], [0], [0], [1], [0, 0, 1, 1], [], []>} : vector<1x8xf32>, vector<8x128xf32>, vector<1x128xf32> -> vector<1x128xf32>
    %254 = vector.broadcast %252 : vector<1x128xf32> to vector<32x128xf32>
    %255 = arith.mulf %228, %254 : vector<32x128xf32>
    %256 = vector.broadcast %253 : vector<1x128xf32> to vector<32x128xf32>
    %257 = arith.addf %255, %256 : vector<32x128xf32>
    %cst_102 = arith.constant 0.000000e+00 : f32
    %258 = vector.broadcast %cst_102 : f32 to vector<32x128xf32>
    %259 = arith.maximumf %257, %258 : vector<32x128xf32>
    %c1_103 = arith.constant 1 : index
    %c0_104 = arith.constant 0 : index
    %c0_105 = arith.constant 0 : index
    %260 = vector.load %arg4[%c1_103, %c0_104, %c0_105] : memref<3x64x128xf32, #tpu.memory_space<vmem>>, vector<1x64x128xf32>
    %261 = vector.shape_cast %260 : vector<1x64x128xf32> to vector<64x128xf32>
    %cst_106 = arith.constant dense<0.000000e+00> : vector<32x128xf32>
    %262 = tpu.matmul %199, %261, %cst_106 {dimension_numbers = #tpu.dot_dimension_numbers<[1], [0], [0], [1], [0, 0, 1, 1], [], []>} : vector<32x64xf32>, vector<64x128xf32>, vector<32x128xf32> -> vector<32x128xf32>
    %cst_107 = arith.constant 0.000000e+00 : f32
    %263 = vector.broadcast %cst_107 : f32 to vector<1x64xf32>
    %264 = vector.extract_strided_slice %199 {offsets = [0, 0], sizes = [31, 64], strides = [1, 1]} : vector<32x64xf32> to vector<31x64xf32>
    %265 = tpu.concatenate %263, %264 in 0 : vector<1x64xf32>, vector<31x64xf32> -> vector<32x64xf32>
    %c1_i32_108 = arith.constant 1 : i32
    %266 = vector.broadcast %c1_i32_108 : i32 to vector<32x1xi32>
    %267 = arith.cmpi sge, %16, %266 : vector<32x1xi32>
    %cst_109 = arith.constant 0.000000e+00 : f32
    %268 = vector.shape_cast %267 : vector<32x1xi1> to vector<32x1xi1>
    %269 = vector.broadcast %268 : vector<32x1xi1> to vector<32x64xi1>
    %270 = vector.broadcast %cst_109 : f32 to vector<32x64xf32>
    %271 = arith.select %269, %265, %270 : vector<32x64xi1>, vector<32x64xf32>
    %c0_110 = arith.constant 0 : index
    %c0_111 = arith.constant 0 : index
    %c0_112 = arith.constant 0 : index
    %272 = vector.load %arg4[%c0_110, %c0_111, %c0_112] : memref<3x64x128xf32, #tpu.memory_space<vmem>>, vector<1x64x128xf32>
    %273 = vector.shape_cast %272 : vector<1x64x128xf32> to vector<64x128xf32>
    %cst_113 = arith.constant dense<0.000000e+00> : vector<32x128xf32>
    %274 = tpu.matmul %271, %273, %cst_113 {dimension_numbers = #tpu.dot_dimension_numbers<[1], [0], [0], [1], [0, 0, 1, 1], [], []>} : vector<32x64xf32>, vector<64x128xf32>, vector<32x128xf32> -> vector<32x128xf32>
    %275 = arith.addf %262, %274 : vector<32x128xf32>
    %cst_114 = arith.constant 0.000000e+00 : f32
    %276 = vector.broadcast %cst_114 : f32 to vector<1x64xf32>
    %277 = vector.extract_strided_slice %199 {offsets = [1, 0], sizes = [31, 64], strides = [1, 1]} : vector<32x64xf32> to vector<31x64xf32>
    %278 = tpu.concatenate %277, %276 in 0 : vector<31x64xf32>, vector<1x64xf32> -> vector<32x64xf32>
    %c15_i32_115 = arith.constant 15 : i32
    %279 = vector.broadcast %c15_i32_115 : i32 to vector<32x1xi32>
    %280 = arith.cmpi slt, %16, %279 : vector<32x1xi32>
    %cst_116 = arith.constant 0.000000e+00 : f32
    %281 = vector.shape_cast %280 : vector<32x1xi1> to vector<32x1xi1>
    %282 = vector.broadcast %281 : vector<32x1xi1> to vector<32x64xi1>
    %283 = vector.broadcast %cst_116 : f32 to vector<32x64xf32>
    %284 = arith.select %282, %278, %283 : vector<32x64xi1>, vector<32x64xf32>
    %c2_117 = arith.constant 2 : index
    %c0_118 = arith.constant 0 : index
    %c0_119 = arith.constant 0 : index
    %285 = vector.load %arg4[%c2_117, %c0_118, %c0_119] : memref<3x64x128xf32, #tpu.memory_space<vmem>>, vector<1x64x128xf32>
    %286 = vector.shape_cast %285 : vector<1x64x128xf32> to vector<64x128xf32>
    %cst_120 = arith.constant dense<0.000000e+00> : vector<32x128xf32>
    %287 = tpu.matmul %284, %286, %cst_120 {dimension_numbers = #tpu.dot_dimension_numbers<[1], [0], [0], [1], [0, 0, 1, 1], [], []>} : vector<32x64xf32>, vector<64x128xf32>, vector<32x128xf32> -> vector<32x128xf32>
    %288 = arith.addf %275, %287 : vector<32x128xf32>
    %cst_121 = arith.constant dense<0.000000e+00> : vector<128xf32>
    %289 = vector.multi_reduction <add>, %288, %cst_121 [0] : vector<32x128xf32> to vector<128xf32>
    %290 = vector.shape_cast %289 : vector<128xf32> to vector<1x128xf32>
    %291 = arith.mulf %288, %288 : vector<32x128xf32>
    %cst_122 = arith.constant dense<0.000000e+00> : vector<128xf32>
    %292 = vector.multi_reduction <add>, %291, %cst_122 [0] : vector<32x128xf32> to vector<128xf32>
    %293 = vector.shape_cast %292 : vector<128xf32> to vector<1x128xf32>
    %cst_123 = arith.constant dense<0.000000e+00> : vector<1x8xf32>
    %294 = tpu.matmul %290, %79, %cst_123 {dimension_numbers = #tpu.dot_dimension_numbers<[1], [0], [0], [1], [0, 0, 1, 1], [], []>} : vector<1x128xf32>, vector<128x8xf32>, vector<1x8xf32> -> vector<1x8xf32>
    %cst_124 = arith.constant dense<0.000000e+00> : vector<1x8xf32>
    %295 = tpu.matmul %293, %79, %cst_124 {dimension_numbers = #tpu.dot_dimension_numbers<[1], [0], [0], [1], [0, 0, 1, 1], [], []>} : vector<1x128xf32>, vector<128x8xf32>, vector<1x8xf32> -> vector<1x8xf32>
    %cst_125 = arith.constant 0.001953125 : f32
    %296 = vector.broadcast %cst_125 : f32 to vector<1x8xf32>
    %297 = arith.mulf %294, %296 : vector<1x8xf32>
    %cst_126 = arith.constant 0.001953125 : f32
    %298 = vector.broadcast %cst_126 : f32 to vector<1x8xf32>
    %299 = arith.mulf %295, %298 : vector<1x8xf32>
    %300 = arith.mulf %297, %297 : vector<1x8xf32>
    %301 = arith.subf %299, %300 : vector<1x8xf32>
    %cst_127 = arith.constant 0.000000e+00 : f32
    %302 = vector.broadcast %cst_127 : f32 to vector<1x8xf32>
    %303 = arith.maximumf %301, %302 : vector<1x8xf32>
    %cst_128 = arith.constant 1.000000e-03 : f32
    %304 = vector.broadcast %cst_128 : f32 to vector<1x8xf32>
    %305 = arith.addf %303, %304 : vector<1x8xf32>
    %306 = math.rsqrt %305 : vector<1x8xf32>
    %c0_129 = arith.constant 0 : index
    %c0_130 = arith.constant 0 : index
    %307 = vector.load %arg15[%c0_129, %c0_130] : memref<1x8xf32, #tpu.memory_space<vmem>>, vector<1x8xf32>
    %308 = arith.mulf %306, %307 : vector<1x8xf32>
    %c0_131 = arith.constant 0 : index
    %c0_132 = arith.constant 0 : index
    %309 = vector.load %arg16[%c0_131, %c0_132] : memref<1x8xf32, #tpu.memory_space<vmem>>, vector<1x8xf32>
    %310 = arith.mulf %297, %308 : vector<1x8xf32>
    %311 = arith.subf %309, %310 : vector<1x8xf32>
    %cst_133 = arith.constant dense<0.000000e+00> : vector<1x128xf32>
    %312 = tpu.matmul %308, %100, %cst_133 {dimension_numbers = #tpu.dot_dimension_numbers<[1], [0], [0], [1], [0, 0, 1, 1], [], []>} : vector<1x8xf32>, vector<8x128xf32>, vector<1x128xf32> -> vector<1x128xf32>
    %cst_134 = arith.constant dense<0.000000e+00> : vector<1x128xf32>
    %313 = tpu.matmul %311, %100, %cst_134 {dimension_numbers = #tpu.dot_dimension_numbers<[1], [0], [0], [1], [0, 0, 1, 1], [], []>} : vector<1x8xf32>, vector<8x128xf32>, vector<1x128xf32> -> vector<1x128xf32>
    %314 = vector.broadcast %312 : vector<1x128xf32> to vector<32x128xf32>
    %315 = arith.mulf %288, %314 : vector<32x128xf32>
    %316 = vector.broadcast %313 : vector<1x128xf32> to vector<32x128xf32>
    %317 = arith.addf %315, %316 : vector<32x128xf32>
    %cst_135 = arith.constant 0.000000e+00 : f32
    %318 = vector.broadcast %cst_135 : f32 to vector<32x128xf32>
    %319 = arith.maximumf %317, %318 : vector<32x128xf32>
    %c1_136 = arith.constant 1 : index
    %c0_137 = arith.constant 0 : index
    %c0_138 = arith.constant 0 : index
    %320 = vector.load %arg5[%c1_136, %c0_137, %c0_138] : memref<3x128x128xf32, #tpu.memory_space<vmem>>, vector<1x128x128xf32>
    %321 = vector.shape_cast %320 : vector<1x128x128xf32> to vector<128x128xf32>
    %cst_139 = arith.constant dense<0.000000e+00> : vector<32x128xf32>
    %322 = tpu.matmul %319, %321, %cst_139 {dimension_numbers = #tpu.dot_dimension_numbers<[1], [0], [0], [1], [0, 0, 1, 1], [], []>} : vector<32x128xf32>, vector<128x128xf32>, vector<32x128xf32> -> vector<32x128xf32>
    %cst_140 = arith.constant 0.000000e+00 : f32
    %323 = vector.broadcast %cst_140 : f32 to vector<1x128xf32>
    %324 = vector.extract_strided_slice %319 {offsets = [0, 0], sizes = [31, 128], strides = [1, 1]} : vector<32x128xf32> to vector<31x128xf32>
    %325 = tpu.concatenate %323, %324 in 0 : vector<1x128xf32>, vector<31x128xf32> -> vector<32x128xf32>
    %c1_i32_141 = arith.constant 1 : i32
    %326 = vector.broadcast %c1_i32_141 : i32 to vector<32x1xi32>
    %327 = arith.cmpi sge, %16, %326 : vector<32x1xi32>
    %cst_142 = arith.constant 0.000000e+00 : f32
    %328 = vector.shape_cast %327 : vector<32x1xi1> to vector<32x1xi1>
    %329 = vector.broadcast %328 : vector<32x1xi1> to vector<32x128xi1>
    %330 = vector.broadcast %cst_142 : f32 to vector<32x128xf32>
    %331 = arith.select %329, %325, %330 : vector<32x128xi1>, vector<32x128xf32>
    %c0_143 = arith.constant 0 : index
    %c0_144 = arith.constant 0 : index
    %c0_145 = arith.constant 0 : index
    %332 = vector.load %arg5[%c0_143, %c0_144, %c0_145] : memref<3x128x128xf32, #tpu.memory_space<vmem>>, vector<1x128x128xf32>
    %333 = vector.shape_cast %332 : vector<1x128x128xf32> to vector<128x128xf32>
    %cst_146 = arith.constant dense<0.000000e+00> : vector<32x128xf32>
    %334 = tpu.matmul %331, %333, %cst_146 {dimension_numbers = #tpu.dot_dimension_numbers<[1], [0], [0], [1], [0, 0, 1, 1], [], []>} : vector<32x128xf32>, vector<128x128xf32>, vector<32x128xf32> -> vector<32x128xf32>
    %335 = arith.addf %322, %334 : vector<32x128xf32>
    %cst_147 = arith.constant 0.000000e+00 : f32
    %336 = vector.broadcast %cst_147 : f32 to vector<1x128xf32>
    %337 = vector.extract_strided_slice %319 {offsets = [1, 0], sizes = [31, 128], strides = [1, 1]} : vector<32x128xf32> to vector<31x128xf32>
    %338 = tpu.concatenate %337, %336 in 0 : vector<31x128xf32>, vector<1x128xf32> -> vector<32x128xf32>
    %c15_i32_148 = arith.constant 15 : i32
    %339 = vector.broadcast %c15_i32_148 : i32 to vector<32x1xi32>
    %340 = arith.cmpi slt, %16, %339 : vector<32x1xi32>
    %cst_149 = arith.constant 0.000000e+00 : f32
    %341 = vector.shape_cast %340 : vector<32x1xi1> to vector<32x1xi1>
    %342 = vector.broadcast %341 : vector<32x1xi1> to vector<32x128xi1>
    %343 = vector.broadcast %cst_149 : f32 to vector<32x128xf32>
    %344 = arith.select %342, %338, %343 : vector<32x128xi1>, vector<32x128xf32>
    %c2_150 = arith.constant 2 : index
    %c0_151 = arith.constant 0 : index
    %c0_152 = arith.constant 0 : index
    %345 = vector.load %arg5[%c2_150, %c0_151, %c0_152] : memref<3x128x128xf32, #tpu.memory_space<vmem>>, vector<1x128x128xf32>
    %346 = vector.shape_cast %345 : vector<1x128x128xf32> to vector<128x128xf32>
    %cst_153 = arith.constant dense<0.000000e+00> : vector<32x128xf32>
    %347 = tpu.matmul %344, %346, %cst_153 {dimension_numbers = #tpu.dot_dimension_numbers<[1], [0], [0], [1], [0, 0, 1, 1], [], []>} : vector<32x128xf32>, vector<128x128xf32>, vector<32x128xf32> -> vector<32x128xf32>
    %348 = arith.addf %335, %347 : vector<32x128xf32>
    %cst_154 = arith.constant dense<0.000000e+00> : vector<128xf32>
    %349 = vector.multi_reduction <add>, %348, %cst_154 [0] : vector<32x128xf32> to vector<128xf32>
    %350 = vector.shape_cast %349 : vector<128xf32> to vector<1x128xf32>
    %351 = arith.mulf %348, %348 : vector<32x128xf32>
    %cst_155 = arith.constant dense<0.000000e+00> : vector<128xf32>
    %352 = vector.multi_reduction <add>, %351, %cst_155 [0] : vector<32x128xf32> to vector<128xf32>
    %353 = vector.shape_cast %352 : vector<128xf32> to vector<1x128xf32>
    %cst_156 = arith.constant dense<0.000000e+00> : vector<1x8xf32>
    %354 = tpu.matmul %350, %79, %cst_156 {dimension_numbers = #tpu.dot_dimension_numbers<[1], [0], [0], [1], [0, 0, 1, 1], [], []>} : vector<1x128xf32>, vector<128x8xf32>, vector<1x8xf32> -> vector<1x8xf32>
    %cst_157 = arith.constant dense<0.000000e+00> : vector<1x8xf32>
    %355 = tpu.matmul %353, %79, %cst_157 {dimension_numbers = #tpu.dot_dimension_numbers<[1], [0], [0], [1], [0, 0, 1, 1], [], []>} : vector<1x128xf32>, vector<128x8xf32>, vector<1x8xf32> -> vector<1x8xf32>
    %cst_158 = arith.constant 0.001953125 : f32
    %356 = vector.broadcast %cst_158 : f32 to vector<1x8xf32>
    %357 = arith.mulf %354, %356 : vector<1x8xf32>
    %cst_159 = arith.constant 0.001953125 : f32
    %358 = vector.broadcast %cst_159 : f32 to vector<1x8xf32>
    %359 = arith.mulf %355, %358 : vector<1x8xf32>
    %360 = arith.mulf %357, %357 : vector<1x8xf32>
    %361 = arith.subf %359, %360 : vector<1x8xf32>
    %cst_160 = arith.constant 0.000000e+00 : f32
    %362 = vector.broadcast %cst_160 : f32 to vector<1x8xf32>
    %363 = arith.maximumf %361, %362 : vector<1x8xf32>
    %cst_161 = arith.constant 1.000000e-03 : f32
    %364 = vector.broadcast %cst_161 : f32 to vector<1x8xf32>
    %365 = arith.addf %363, %364 : vector<1x8xf32>
    %366 = math.rsqrt %365 : vector<1x8xf32>
    %c0_162 = arith.constant 0 : index
    %c0_163 = arith.constant 0 : index
    %367 = vector.load %arg17[%c0_162, %c0_163] : memref<1x8xf32, #tpu.memory_space<vmem>>, vector<1x8xf32>
    %368 = arith.mulf %366, %367 : vector<1x8xf32>
    %c0_164 = arith.constant 0 : index
    %c0_165 = arith.constant 0 : index
    %369 = vector.load %arg18[%c0_164, %c0_165] : memref<1x8xf32, #tpu.memory_space<vmem>>, vector<1x8xf32>
    %370 = arith.mulf %357, %368 : vector<1x8xf32>
    %371 = arith.subf %369, %370 : vector<1x8xf32>
    %cst_166 = arith.constant dense<0.000000e+00> : vector<1x128xf32>
    %372 = tpu.matmul %368, %100, %cst_166 {dimension_numbers = #tpu.dot_dimension_numbers<[1], [0], [0], [1], [0, 0, 1, 1], [], []>} : vector<1x8xf32>, vector<8x128xf32>, vector<1x128xf32> -> vector<1x128xf32>
    %cst_167 = arith.constant dense<0.000000e+00> : vector<1x128xf32>
    %373 = tpu.matmul %371, %100, %cst_167 {dimension_numbers = #tpu.dot_dimension_numbers<[1], [0], [0], [1], [0, 0, 1, 1], [], []>} : vector<1x8xf32>, vector<8x128xf32>, vector<1x128xf32> -> vector<1x128xf32>
    %374 = vector.broadcast %372 : vector<1x128xf32> to vector<32x128xf32>
    %375 = arith.mulf %348, %374 : vector<32x128xf32>
    %376 = vector.broadcast %373 : vector<1x128xf32> to vector<32x128xf32>
    %377 = arith.addf %375, %376 : vector<32x128xf32>
    %cst_168 = arith.constant 0.000000e+00 : f32
    %378 = vector.broadcast %cst_168 : f32 to vector<32x128xf32>
    %379 = arith.maximumf %377, %378 : vector<32x128xf32>
    %cst_169 = arith.constant 0xFF800000 : f32
    %380 = vector.broadcast %cst_169 : f32 to vector<32x4xf32>
    %381 = vector.extract_strided_slice %101 {offsets = [0, 0], sizes = [32, 60], strides = [1, 1]} : vector<32x64xf32> to vector<32x60xf32>
    %382 = tpu.concatenate %380, %381 in 1 : vector<32x4xf32>, vector<32x60xf32> -> vector<32x64xf32>
    %cst_170 = arith.constant 0xFF800000 : f32
    %383 = vector.broadcast %cst_170 : f32 to vector<32x4xf32>
    %384 = vector.extract_strided_slice %101 {offsets = [0, 4], sizes = [32, 60], strides = [1, 1]} : vector<32x64xf32> to vector<32x60xf32>
    %385 = tpu.concatenate %384, %383 in 1 : vector<32x60xf32>, vector<32x4xf32> -> vector<32x64xf32>
    %386 = arith.maximumf %382, %385 : vector<32x64xf32>
    %387 = arith.maximumf %101, %386 : vector<32x64xf32>
    %cst_171 = arith.constant 0xFF800000 : f32
    %388 = vector.broadcast %cst_171 : f32 to vector<1x64xf32>
    %389 = vector.extract_strided_slice %387 {offsets = [0, 0], sizes = [31, 64], strides = [1, 1]} : vector<32x64xf32> to vector<31x64xf32>
    %390 = tpu.concatenate %388, %389 in 0 : vector<1x64xf32>, vector<31x64xf32> -> vector<32x64xf32>
    %c1_i32_172 = arith.constant 1 : i32
    %391 = vector.broadcast %c1_i32_172 : i32 to vector<32x1xi32>
    %392 = arith.cmpi sge, %16, %391 : vector<32x1xi32>
    %cst_173 = arith.constant 0xFF800000 : f32
    %393 = vector.shape_cast %392 : vector<32x1xi1> to vector<32x1xi1>
    %394 = vector.broadcast %393 : vector<32x1xi1> to vector<32x64xi1>
    %395 = vector.broadcast %cst_173 : f32 to vector<32x64xf32>
    %396 = arith.select %394, %390, %395 : vector<32x64xi1>, vector<32x64xf32>
    %cst_174 = arith.constant 0xFF800000 : f32
    %397 = vector.broadcast %cst_174 : f32 to vector<1x64xf32>
    %398 = vector.extract_strided_slice %387 {offsets = [1, 0], sizes = [31, 64], strides = [1, 1]} : vector<32x64xf32> to vector<31x64xf32>
    %399 = tpu.concatenate %398, %397 in 0 : vector<31x64xf32>, vector<1x64xf32> -> vector<32x64xf32>
    %c15_i32_175 = arith.constant 15 : i32
    %400 = vector.broadcast %c15_i32_175 : i32 to vector<32x1xi32>
    %401 = arith.cmpi slt, %16, %400 : vector<32x1xi32>
    %cst_176 = arith.constant 0xFF800000 : f32
    %402 = vector.shape_cast %401 : vector<32x1xi1> to vector<32x1xi1>
    %403 = vector.broadcast %402 : vector<32x1xi1> to vector<32x64xi1>
    %404 = vector.broadcast %cst_176 : f32 to vector<32x64xf32>
    %405 = arith.select %403, %399, %404 : vector<32x64xi1>, vector<32x64xf32>
    %406 = arith.maximumf %396, %405 : vector<32x64xf32>
    %407 = arith.maximumf %387, %406 : vector<32x64xf32>
    %c0_177 = arith.constant 0 : index
    %c0_178 = arith.constant 0 : index
    %408 = vector.load %arg6[%c0_177, %c0_178] : memref<64x128xf32, #tpu.memory_space<vmem>>, vector<64x128xf32>
    %cst_179 = arith.constant dense<0.000000e+00> : vector<32x128xf32>
    %409 = tpu.matmul %407, %408, %cst_179 {dimension_numbers = #tpu.dot_dimension_numbers<[1], [0], [0], [1], [0, 0, 1, 1], [], []>} : vector<32x64xf32>, vector<64x128xf32>, vector<32x128xf32> -> vector<32x128xf32>
    %cst_180 = arith.constant dense<0.000000e+00> : vector<128xf32>
    %410 = vector.multi_reduction <add>, %409, %cst_180 [0] : vector<32x128xf32> to vector<128xf32>
    %411 = vector.shape_cast %410 : vector<128xf32> to vector<1x128xf32>
    %412 = arith.mulf %409, %409 : vector<32x128xf32>
    %cst_181 = arith.constant dense<0.000000e+00> : vector<128xf32>
    %413 = vector.multi_reduction <add>, %412, %cst_181 [0] : vector<32x128xf32> to vector<128xf32>
    %414 = vector.shape_cast %413 : vector<128xf32> to vector<1x128xf32>
    %cst_182 = arith.constant dense<0.000000e+00> : vector<1x8xf32>
    %415 = tpu.matmul %411, %79, %cst_182 {dimension_numbers = #tpu.dot_dimension_numbers<[1], [0], [0], [1], [0, 0, 1, 1], [], []>} : vector<1x128xf32>, vector<128x8xf32>, vector<1x8xf32> -> vector<1x8xf32>
    %cst_183 = arith.constant dense<0.000000e+00> : vector<1x8xf32>
    %416 = tpu.matmul %414, %79, %cst_183 {dimension_numbers = #tpu.dot_dimension_numbers<[1], [0], [0], [1], [0, 0, 1, 1], [], []>} : vector<1x128xf32>, vector<128x8xf32>, vector<1x8xf32> -> vector<1x8xf32>
    %cst_184 = arith.constant 0.001953125 : f32
    %417 = vector.broadcast %cst_184 : f32 to vector<1x8xf32>
    %418 = arith.mulf %415, %417 : vector<1x8xf32>
    %cst_185 = arith.constant 0.001953125 : f32
    %419 = vector.broadcast %cst_185 : f32 to vector<1x8xf32>
    %420 = arith.mulf %416, %419 : vector<1x8xf32>
    %421 = arith.mulf %418, %418 : vector<1x8xf32>
    %422 = arith.subf %420, %421 : vector<1x8xf32>
    %cst_186 = arith.constant 0.000000e+00 : f32
    %423 = vector.broadcast %cst_186 : f32 to vector<1x8xf32>
    %424 = arith.maximumf %422, %423 : vector<1x8xf32>
    %cst_187 = arith.constant 1.000000e-03 : f32
    %425 = vector.broadcast %cst_187 : f32 to vector<1x8xf32>
    %426 = arith.addf %424, %425 : vector<1x8xf32>
    %427 = math.rsqrt %426 : vector<1x8xf32>
    %c0_188 = arith.constant 0 : index
    %c0_189 = arith.constant 0 : index
    %428 = vector.load %arg19[%c0_188, %c0_189] : memref<1x8xf32, #tpu.memory_space<vmem>>, vector<1x8xf32>
    %429 = arith.mulf %427, %428 : vector<1x8xf32>
    %c0_190 = arith.constant 0 : index
    %c0_191 = arith.constant 0 : index
    %430 = vector.load %arg20[%c0_190, %c0_191] : memref<1x8xf32, #tpu.memory_space<vmem>>, vector<1x8xf32>
    %431 = arith.mulf %418, %429 : vector<1x8xf32>
    %432 = arith.subf %430, %431 : vector<1x8xf32>
    %cst_192 = arith.constant dense<0.000000e+00> : vector<1x128xf32>
    %433 = tpu.matmul %429, %100, %cst_192 {dimension_numbers = #tpu.dot_dimension_numbers<[1], [0], [0], [1], [0, 0, 1, 1], [], []>} : vector<1x8xf32>, vector<8x128xf32>, vector<1x128xf32> -> vector<1x128xf32>
    %cst_193 = arith.constant dense<0.000000e+00> : vector<1x128xf32>
    %434 = tpu.matmul %432, %100, %cst_193 {dimension_numbers = #tpu.dot_dimension_numbers<[1], [0], [0], [1], [0, 0, 1, 1], [], []>} : vector<1x8xf32>, vector<8x128xf32>, vector<1x128xf32> -> vector<1x128xf32>
    %435 = vector.broadcast %433 : vector<1x128xf32> to vector<32x128xf32>
    %436 = arith.mulf %409, %435 : vector<32x128xf32>
    %437 = vector.broadcast %434 : vector<1x128xf32> to vector<32x128xf32>
    %438 = arith.addf %436, %437 : vector<32x128xf32>
    %cst_194 = arith.constant 0.000000e+00 : f32
    %439 = vector.broadcast %cst_194 : f32 to vector<32x128xf32>
    %440 = arith.maximumf %438, %439 : vector<32x128xf32>
    %c0_195 = arith.constant 0 : index
    %c0_196 = arith.constant 0 : index
    %441 = vector.load %arg21[%c0_195, %c0_196] : memref<32x512xf32, #tpu.memory_space<vmem>>, vector<32x128xf32>
    tpu.vector_store %arg21[%c0_195, %c0_196], %135 {strides = array<i32>} : memref<32x512xf32, #tpu.memory_space<vmem>>, vector<32x128xf32>,
    %c0_197 = arith.constant 0 : index
    %c128 = arith.constant 128 : index
    %442 = vector.load %arg21[%c0_197, %c128] : memref<32x512xf32, #tpu.memory_space<vmem>>, vector<32x128xf32>
    tpu.vector_store %arg21[%c0_197, %c128], %259 {strides = array<i32>} : memref<32x512xf32, #tpu.memory_space<vmem>>, vector<32x128xf32>,
    %c0_198 = arith.constant 0 : index
    %c256 = arith.constant 256 : index
    %443 = vector.load %arg21[%c0_198, %c256] : memref<32x512xf32, #tpu.memory_space<vmem>>, vector<32x128xf32>
    tpu.vector_store %arg21[%c0_198, %c256], %379 {strides = array<i32>} : memref<32x512xf32, #tpu.memory_space<vmem>>, vector<32x128xf32>,
    %c0_199 = arith.constant 0 : index
    %c384 = arith.constant 384 : index
    %444 = vector.load %arg21[%c0_199, %c384] : memref<32x512xf32, #tpu.memory_space<vmem>>, vector<32x128xf32>
    tpu.vector_store %arg21[%c0_199, %c384], %440 {strides = array<i32>} : memref<32x512xf32, #tpu.memory_space<vmem>>, vector<32x128xf32>,
    return
  }
  func.func @transform_0(%arg0: i32) -> (i32, i32) {
    %c0_i32 = arith.constant 0 : i32
    %c0_i32_0 = arith.constant 0 : i32
    %c0_i32_1 = arith.constant 0 : i32
    return %c0_i32, %c0_i32_0 : i32, i32
  }
  func.func @transform_1(%arg0: i32) -> (i32, i32) {
    %c0_i32 = arith.constant 0 : i32
    %c0_i32_0 = arith.constant 0 : i32
    %c0_i32_1 = arith.constant 0 : i32
    return %c0_i32, %c0_i32_0 : i32, i32
  }
  func.func @transform_2(%arg0: i32) -> (i32, i32, i32) {
    %c0_i32 = arith.constant 0 : i32
    %c0_i32_0 = arith.constant 0 : i32
    %c0_i32_1 = arith.constant 0 : i32
    %c0_i32_2 = arith.constant 0 : i32
    return %c0_i32, %c0_i32_0, %c0_i32_1 : i32, i32, i32
  }
  func.func @transform_3(%arg0: i32) -> (i32, i32, i32) {
    %c0_i32 = arith.constant 0 : i32
    %c0_i32_0 = arith.constant 0 : i32
    %c0_i32_1 = arith.constant 0 : i32
    %c0_i32_2 = arith.constant 0 : i32
    return %c0_i32, %c0_i32_0, %c0_i32_1 : i32, i32, i32
  }
  func.func @transform_4(%arg0: i32) -> (i32, i32, i32) {
    %c0_i32 = arith.constant 0 : i32
    %c0_i32_0 = arith.constant 0 : i32
    %c0_i32_1 = arith.constant 0 : i32
    %c0_i32_2 = arith.constant 0 : i32
    return %c0_i32, %c0_i32_0, %c0_i32_1 : i32, i32, i32
  }
  func.func @transform_5(%arg0: i32) -> (i32, i32) {
    %c0_i32 = arith.constant 0 : i32
    %c0_i32_0 = arith.constant 0 : i32
    %c0_i32_1 = arith.constant 0 : i32
    return %c0_i32, %c0_i32_0 : i32, i32
  }
  func.func @transform_6(%arg0: i32) -> (i32, i32) {
    %c0_i32 = arith.constant 0 : i32
    %c0_i32_0 = arith.constant 0 : i32
    %c0_i32_1 = arith.constant 0 : i32
    return %c0_i32, %c0_i32_0 : i32, i32
  }
  func.func @transform_7(%arg0: i32) -> (i32, i32) {
    %c0_i32 = arith.constant 0 : i32
    %c0_i32_0 = arith.constant 0 : i32
    %c0_i32_1 = arith.constant 0 : i32
    return %c0_i32, %c0_i32_0 : i32, i32
  }
  func.func @transform_8(%arg0: i32) -> (i32, i32) {
    %c0_i32 = arith.constant 0 : i32
    %c0_i32_0 = arith.constant 0 : i32
    %c0_i32_1 = arith.constant 0 : i32
    return %c0_i32, %c0_i32_0 : i32, i32
  }
  func.func @transform_9(%arg0: i32) -> (i32, i32) {
    %c0_i32 = arith.constant 0 : i32
    %c0_i32_0 = arith.constant 0 : i32
    %c0_i32_1 = arith.constant 0 : i32
    return %c0_i32, %c0_i32_0 : i32, i32
  }
  func.func @transform_10(%arg0: i32) -> (i32, i32) {
    %c0_i32 = arith.constant 0 : i32
    %c0_i32_0 = arith.constant 0 : i32
    %c0_i32_1 = arith.constant 0 : i32
    return %c0_i32, %c0_i32_0 : i32, i32
  }
  func.func @transform_11(%arg0: i32) -> (i32, i32) {
    %c0_i32 = arith.constant 0 : i32
    %c0_i32_0 = arith.constant 0 : i32
    %c0_i32_1 = arith.constant 0 : i32
    return %c0_i32, %c0_i32_0 : i32, i32
  }
  func.func @transform_12(%arg0: i32) -> (i32, i32) {
    %c0_i32 = arith.constant 0 : i32
    %c0_i32_0 = arith.constant 0 : i32
    %c0_i32_1 = arith.constant 0 : i32
    return %c0_i32, %c0_i32_0 : i32, i32
  }
  func.func @transform_13(%arg0: i32) -> (i32, i32) {
    %c0_i32 = arith.constant 0 : i32
    %c0_i32_0 = arith.constant 0 : i32
    %c0_i32_1 = arith.constant 0 : i32
    return %c0_i32, %c0_i32_0 : i32, i32
  }
  func.func @transform_14(%arg0: i32) -> (i32, i32) {
    %c0_i32 = arith.constant 0 : i32
    %c0_i32_0 = arith.constant 0 : i32
    %c0_i32_1 = arith.constant 0 : i32
    return %c0_i32, %c0_i32_0 : i32, i32
  }
  func.func @transform_15(%arg0: i32) -> (i32, i32) {
    %c0_i32 = arith.constant 0 : i32
    %c0_i32_0 = arith.constant 0 : i32
    %c0_i32_1 = arith.constant 0 : i32
    return %c0_i32, %c0_i32_0 : i32, i32
  }
  func.func @transform_16(%arg0: i32) -> (i32, i32) {
    %c0_i32 = arith.constant 0 : i32
    %c0_i32_0 = arith.constant 0 : i32
    %c0_i32_1 = arith.constant 0 : i32
    return %c0_i32, %c0_i32_0 : i32, i32
  }
  func.func @transform_17(%arg0: i32) -> (i32, i32) {
    %c0_i32 = arith.constant 0 : i32
    %c0_i32_0 = arith.constant 0 : i32
    %c0_i32_1 = arith.constant 0 : i32
    return %c0_i32, %c0_i32_0 : i32, i32
  }
  func.func @transform_18(%arg0: i32) -> (i32, i32) {
    %c0_i32 = arith.constant 0 : i32
    %c0_i32_0 = arith.constant 0 : i32
    %c0_i32_1 = arith.constant 0 : i32
    return %c0_i32, %c0_i32_0 : i32, i32
  }
  func.func @transform_19(%arg0: i32) -> (i32, i32) {
    %c0_i32 = arith.constant 0 : i32
    %c0_i32_0 = arith.constant 0 : i32
    %c0_i32_1 = arith.constant 0 : i32
    return %c0_i32, %c0_i32_0 : i32, i32
  }
  func.func @transform_20(%arg0: i32) -> (i32, i32) {
    %c0_i32 = arith.constant 0 : i32
    %c0_i32_0 = arith.constant 0 : i32
    %c0_i32_1 = arith.constant 0 : i32
    return %c0_i32, %c0_i32_0 : i32, i32
  }
}

</mosaic_0001>

<bundles_post_ra>
// kernel: inception_block_forward.1
= control target key start
LH: loop header
LB: loop body
LE: loop exit
PB: predicated region body
PF: predicated region fallthrough
CT: control target
= control target key end

     0   :  { %vm4523_vm0 = vcmask 523264   ;;  %v65_v20 = vlaneseq  ;;  %v4584_v26 = vmov 0  ;;  %v2785_v29 = vmov 1.0   ;;  %s2788_s29 = smov 4   ;;  %s4500_s1 = inlined_call_operand.vmem [shape: f32[64,256], index: 1, kind: input, shape index: {}]   ;;  %s4501_s0 = inlined_call_operand.vmem [shape: f32[32,64], index: 0, kind: input, shape index: {}]   ;;  %s4502_s6 = inlined_call_operand.vmem [shape: f32[1,8], index: 6, kind: input, shape index: {}]   ;;  %s4503_s7 = inlined_call_operand.vmem [shape: f32[1,8], index: 7, kind: input, shape index: {}]   ;;  %s4504_s8 = inlined_call_operand.vmem [shape: f32[1,4], index: 8, kind: input, shape index: {}]   ;;  %s4505_s9 = inlined_call_operand.vmem [shape: f32[1,4], index: 9, kind: input, shape index: {}]   ;;  %s4506_s2 = inlined_call_operand.vmem [shape: f32[3,64,128], index: 2, kind: input, shape index: {}]   ;;  %s4507_s12 = inlined_call_operand.vmem [shape: f32[1,4], index: 12, kind: input, shape index: {}]   ;;  %s4508_s13 = inlined_call_operand.vmem [shape: f32[1,4], index: 13, kind: input, shape index: {}]   ;;  %s4509_s20 = inlined_call_operand.vmem [shape: f32[32,512], index: 20, kind: output, shape index: {}]   ;;  %s4510_s3 = inlined_call_operand.vmem [shape: f32[3,64,128], index: 3, kind: input, shape index: {}]   ;;  %s4511_s10 = inlined_call_operand.vmem [shape: f32[1,8], index: 10, kind: input, shape index: {}]   ;;  %s4512_s11 = inlined_call_operand.vmem [shape: f32[1,8], index: 11, kind: input, shape index: {}]   ;;  %s4513_s4 = inlined_call_operand.vmem [shape: f32[3,128,128], index: 4, kind: input, shape index: {}]   ;;  %s4514_s14 = inlined_call_operand.vmem [shape: f32[1,8], index: 14, kind: input, shape index: {}]   ;;  %s4515_s15 = inlined_call_operand.vmem [shape: f32[1,8], index: 15, kind: input, shape index: {}]   ;;  %s4516_s5 = inlined_call_operand.vmem [shape: f32[64,128], index: 5, kind: input, shape index: {}]   ;;  %s4517_s16 = inlined_call_operand.vmem [shape: f32[1,8], index: 16, kind: input, shape index: {}]   ;;  %s4518_s17 = inlined_call_operand.vmem [shape: f32[1,8], index: 17, kind: input, shape index: {}]   ;;  %s4519_s18 = inlined_call_operand.vmem [shape: f32[1,8], index: 18, kind: input, shape index: {}]   ;;  %s4520_s19 = inlined_call_operand.vmem [shape: f32[1,8], index: 19, kind: input, shape index: {}]  }
   0x1   :  { %4577 = sst [smem:[#allocation2_spill]] %s4500_s1  ;;  %v4586_v30 = vmov 0  ;;  %v4588_v33 = vmov 0  ;;  %v4596_v45 = vmov 0  ;;  %v4598_v50 = vmov 0  ;;  %s2786_s1 = smov 64  }
   0x2   :  { %4578 = sst [smem:[#allocation3_spill]] %s4501_s0  ;;  %v2963_v21 = vshrl.u32 %v65_v20, 7  ;;  %v2966_v23 = vand.u32 127, %v65_v20  ;;  %v4602_v53 = vmov 0  ;;  %v4604_v57 = vmov 0 }
   0x3   :  { %4579 = sst [smem:[#allocation4_spill]] %s4502_s6  ;;  %v4608_v62 = vmov 0  ;;  %v4624_v20 = vmov 0 }
   0x4   :  { %4580 = sst [smem:[#allocation5_spill]] %s4503_s7  ;;  %v266_v22 = vadd.s32 120, %v2963_v21  ;;  %v265_v25 = vadd.s32 112, %v2963_v21  ;;  %v264_v28 = vadd.s32 104, %v2963_v21  ;;  %v263_v32 = vadd.s32 96, %v2963_v21 }
   0x5   :  { %4581 = sst [smem:[#allocation6_spill]] %s4504_s8  ;;  %v262_v35 = vadd.s32 88, %v2963_v21  ;;  %v261_v38 = vadd.s32 80, %v2963_v21  ;;  %v260_v41 = vadd.s32 72, %v2963_v21  ;;  %v259_v44 = vadd.s32 64, %v2963_v21 }
   0x6   :  { %s4582_s23 = sld [smem:[#allocation2_spill]]  ;;  %v376_v24 = vand.u32 7, %v266_v22  ;;  %v369_v27 = vand.u32 7, %v265_v25  ;;  %v362_v31 = vand.u32 7, %v264_v28  ;;  %v355_v34 = vand.u32 7, %v263_v32 }
   0x7   :  { %s4583_s26 = sld [smem:[#allocation3_spill]]  ;;  %v348_v37 = vand.u32 7, %v262_v35  ;;  %v341_v40 = vand.u32 7, %v261_v38  ;;  %v334_v43 = vand.u32 7, %v260_v41  ;;  %v121_v46 = vadd.s32 56, %v2963_v21 }
   0x8   :  { %vm2970_vm1 = vcmp.eq.s32.totalorder %v376_v24, %v2966_v23  ;;  %vm2982_vm2 = vcmp.eq.s32.totalorder %v369_v27, %v2966_v23  ;;  %vm2994_vm3 = vcmp.eq.s32.totalorder %v362_v31, %v2966_v23  ;;  %vm3006_vm4 = vcmp.eq.s32.totalorder %v355_v34, %v2966_v23  ;;  %s4653_s22 = sld [smem:[#allocation4_spill]] }
   0x9   :  { %v4585_v26 = vsel %vm2970_vm1, 4294967295, %v4584_v26  ;;  %2442 = vmatpush.msk.msra.mxu2 %vm2970_vm1, %v2785_v29  ;;  %2458 = vmatpush.msk.msra.mxu3 %vm2970_vm1, %v2785_v29  ;;  %v4587_v30 = vsel %vm2982_vm2, 4294967295, %v4586_v30  ;;  %v4589_v33 = vsel %vm2994_vm3, 4294967295, %v4588_v33  ;;  %vm3018_vm5 = vcmp.eq.s32.totalorder %v348_v37, %v2966_v23  ;;  %s4654_s25 = sld [smem:[#allocation5_spill]] }
   0xa   :  { %vm3030_vm6 = vcmp.eq.s32.totalorder %v341_v40, %v2966_v23  ;;  %vm3042_vm7 = vcmp.eq.s32.totalorder %v334_v43, %v2966_v23  ;;  %v327_v47 = vand.u32 7, %v259_v44  ;;  %v177_v48 = vand.u32 3, %v121_v46  ;;  %s4655_s28 = sld [smem:[#allocation6_spill]] }
   0xb   :  { %2443 = vmatpush.msk.msra.mxu2 %vm2982_vm2, %v2785_v29  ;;  %2459 = vmatpush.msk.msra.mxu3 %vm2982_vm2, %v2785_v29  ;;  %v4597_v45 = vsel %vm3042_vm7, 4294967295, %v4596_v45  ;;  %v320_v49 = vand.u32 7, %v121_v46  ;;  %v120_v51 = vadd.s32 48, %v2963_v21  ;;  %v119_v55 = vadd.s32 40, %v2963_v21 }
   0xc   :  { %v540_v0 = vld [vmem:[%s4582_s23 + $0x70] sm:$0xff]  ;;  %v541_v1 = vld [vmem:[%s4582_s23 + $0x78] sm:$0xff]  ;;  %v538_v2 = vld [vmem:[%s4582_s23 + $0x60] sm:$0xff]  ;;  %vm3054_vm8 = vcmp.eq.s32.totalorder %v327_v47, %v2966_v23  ;;  %vm3066_vm9 = vcmp.eq.s32.totalorder %v177_v48, %v2966_v23  ;;  %v118_v59 = vadd.s32 32, %v2963_v21  ;;  %v4628_v24 = vmov 0 }
   0xd   :  { %563 = vmatpush.msra.mxu0 %v540_v0  ;;  %592 = vmatpush.msra.mxu1 %v541_v1  ;;  %v539_v3 = vld [vmem:[%s4582_s23 + $0x68] sm:$0xff]  ;;  %v536_v4 = vld [vmem:[%s4582_s23 + $0x50] sm:$0xff]  ;;  %v537_v5 = vld [vmem:[%s4582_s23 + $0x58] sm:$0xff]  ;;  %v4599_v50 = vsel %vm3054_vm8, 4294967295, %v4598_v50  ;;  %vm3071_vm10 = vcmp.eq.s32.totalorder %v320_v49, %v2966_v23  ;;  %v313_v54 = vand.u32 7, %v120_v51  ;;  %v170_v56 = vand.u32 3, %v120_v51 }
   0xe   :  { %v534_v6 = vld [vmem:[%s4582_s23 + $0x40] sm:$0xff]  ;;  %v535_v7 = vld [vmem:[%s4582_s23 + $0x48] sm:$0xff]  ;;  %v532_v8 = vld [vmem:[%s4582_s23 + $0x30] sm:$0xff]  ;;  %2444 = vmatpush.msk.msra.mxu2 %vm2994_vm3, %v2785_v29  ;;  %2460 = vmatpush.msk.msra.mxu3 %vm2994_vm3, %v2785_v29  ;;  %v4603_v53 = vsel %vm3071_vm10, 4294967295, %v4602_v53  ;;  %v306_v58 = vand.u32 7, %v119_v55  ;;  %v163_v61 = vand.u32 3, %v119_v55 }
   0xf   :  { %564 = vmatpush.msra.mxu0 %v538_v2  ;;  %593 = vmatpush.msra.mxu1 %v539_v3  ;;  %v533_v9 = vld [vmem:[%s4582_s23 + $0x38] sm:$0xff]  ;;  %v530_v10 = vld [vmem:[%s4582_s23 + $0x20] sm:$0xff]  ;;  %v531_v11 = vld [vmem:[%s4582_s23 + $0x28] sm:$0xff]  ;;  %vm3086_vm11 = vcmp.eq.s32.totalorder %v313_v54, %v2966_v23  ;;  %vm3095_vm12 = vcmp.eq.s32.totalorder %v170_v56, %v2966_v23  ;;  %v299_v63 = vand.u32 7, %v118_v59  ;;  %v156_v0 = vand.u32 3, %v118_v59 }
  0x10   :  { %v528_v12 = vld [vmem:[%s4582_s23 + $0x10] sm:$0xff]  ;;  %v529_v13 = vld [vmem:[%s4582_s23 + $0x18] sm:$0xff]  ;;  %v526_v14 = vld [vmem:[%s4582_s23] sm:$0xff]  ;;  %2445 = vmatpush.msk.msra.mxu2 %vm3006_vm4, %v2785_v29  ;;  %2461 = vmatpush.msk.msra.mxu3 %vm3006_vm4, %v2785_v29  ;;  %v4605_v57 = vsel %vm3086_vm11, 4294967295, %v4604_v57  ;;  %vm3106_vm13 = vcmp.eq.s32.totalorder %v306_v58, %v2966_v23  ;;  %v3111_v1 = vadd.s32 24, %v2963_v21  ;;  %vm3120_vm14 = vcmp.eq.s32.totalorder %v163_v61, %v2966_v23 }
  0x11   :  { %565 = vmatpush.msra.mxu0 %v536_v4  ;;  %594 = vmatpush.msra.mxu1 %v537_v5  ;;  %v527_v15 = vld [vmem:[%s4582_s23 + $0x8] sm:$0xff]  ;;  %v522_v16 = vld [vmem:[%s4583_s26] sm:$0xff]  ;;  %v524_v18 = vld [vmem:[%s4583_s26 + $0x10] sm:$0xff]  ;;  %v4609_v62 = vsel %vm3106_vm13, 4294967295, %v4608_v62  ;;  %v3125_v3 = vadd.s32 16, %v2963_v21  ;;  %v3128_v4 = vadd.s32 8, %v2963_v21  ;;  %vm3137_vm15 = vcmp.eq.s32.totalorder %v299_v63, %v2966_v23 }
  0x12   :  { %v523_v17 = vld [vmem:[%s4583_s26 + $0x8] sm:$0xff]  ;;  %v525_v19 = vld [vmem:[%s4583_s26 + $0x18] sm:$0xff]  ;;  %2446 = vmatpush.msk.msra.mxu2 %vm3018_vm5, %v2785_v29  ;;  %2462 = vmatpush.msk.msra.mxu3 %vm3018_vm5, %v2785_v29  ;;  %v4612_v5 = vmov 0  ;;  %v128_v25 = vand.u32 3, %v2963_v21 }
  0x13   :  { %566 = vmatpush.msra.mxu0 %v534_v6  ;;  %595 = vmatpush.msra.mxu1 %v535_v7  ;;  %v4613_v5 = vsel %vm3137_vm15, 4294967295, %v4612_v5  ;;  %v292_v7 = vand.u32 7, %v3111_v1 }
  0x14   :  { %2447 = vmatpush.msk.msra.mxu2 %vm3030_vm6, %v2785_v29  ;;  %2463 = vmatpush.msk.msra.mxu3 %vm3030_vm6, %v2785_v29 }
  0x15   :  { %567 = vmatpush.msra.mxu0 %v532_v8  ;;  %596 = vmatpush.msra.mxu1 %v533_v9  ;;  %v149_v8 = vand.u32 3, %v3111_v1  ;;  %v285_v9 = vand.u32 7, %v3125_v3 }
  0x16   :  { %2448 = vmatpush.msk.msra.mxu2 %vm3042_vm7, %v2785_v29  ;;  %2464 = vmatpush.msk.msra.mxu3 %vm3042_vm7, %v2785_v29 }
  0x17   :  { %568 = vmatpush.msra.mxu0 %v530_v10  ;;  %597 = vmatpush.msra.mxu1 %v531_v11  ;;  %v142_v10 = vand.u32 3, %v3125_v3  ;;  %v278_v11 = vand.u32 7, %v3128_v4 }
  0x18   :  { %2449 = vmatpush.msk.msra.mxu2 %vm3054_vm8, %v2785_v29  ;;  %2465 = vmatpush.msk.msra.mxu3 %vm3054_vm8, %v2785_v29 }
  0x19   :  { %569 = vmatpush.msra.mxu0 %v528_v12  ;;  %598 = vmatpush.msra.mxu1 %v529_v13  ;;  %v135_v12 = vand.u32 3, %v3128_v4  ;;  %vm3208_vm8 = vcmp.eq.s32.totalorder %v278_v11, %v2966_v23 }
  0x1a   :  { %2450 = vmatpush.msk.msra.mxu2 %vm3071_vm10, %v2785_v29  ;;  %2466 = vmatpush.msk.msra.mxu3 %vm3071_vm10, %v2785_v29  ;;  %vm3192_vm10 = vcmp.eq.s32.totalorder %v285_v9, %v2966_v23  ;;  %v4625_v20 = vsel %vm3208_vm8, 4294967295, %v4624_v20 }
  0x1b   :  { %570 = vmatpush.msra.mxu0 %v526_v14  ;;  %599 = vmatpush.msra.mxu1 %v527_v15  ;;  %v4616_v15 = vmov 0  ;;  %vm3213_vm7 = vcmp.eq.s32.totalorder %v135_v12, %v2966_v23 }
  0x1c   :  { %2434 = vmatmul.msk.f32.vlgmr.msra.gmra.mxu0 %vm4523_vm0, %v522_v16  ;;  %2438 = vmatmul.msk.f32.vlgmr.msra.gmra.mxu1 %vm4523_vm0, %v522_v16 }
  0x1d   :  { %2478 = vmatpush.msk.msrb.mxu0 %vm3066_vm9, %v2785_v29  ;;  %2487 = vmatpush.msk.msrb.mxu1 %vm3066_vm9, %v2785_v29 }
  0x1e   :  { %2451 = vmatpush.msk.msra.mxu2 %vm3086_vm11, %v2785_v29  ;;  %2467 = vmatpush.msk.msra.mxu3 %vm3086_vm11, %v2785_v29  ;;  %vm3174_vm11 = vcmp.eq.s32.totalorder %v149_v8, %v2966_v23 }
  0x1f   :  { %2479 = vmatpush.msk.msrb.mxu0 %vm3095_vm12, %v2785_v29  ;;  %2488 = vmatpush.msk.msrb.mxu1 %vm3095_vm12, %v2785_v29 }
  0x20   :  { %2452 = vmatpush.msk.msra.mxu2 %vm3106_vm13, %v2785_v29  ;;  %2468 = vmatpush.msk.msra.mxu3 %vm3106_vm13, %v2785_v29  ;;  %vm3169_vm13 = vcmp.eq.s32.totalorder %v292_v7, %v2966_v23 }
  0x21   :  { %2480 = vmatpush.msk.msrb.mxu0 %vm3120_vm14, %v2785_v29  ;;  %2489 = vmatpush.msk.msrb.mxu1 %vm3120_vm14, %v2785_v29  ;;  %v4617_v15 = vsel %vm3169_vm13, 4294967295, %v4616_v15 }
  0x22   :  { %2453 = vmatpush.msk.msra.mxu2 %vm3137_vm15, %v2785_v29  ;;  %2469 = vmatpush.msk.msra.mxu3 %vm3137_vm15, %v2785_v29  ;;  %vm3197_vm15 = vcmp.eq.s32.totalorder %v142_v10, %v2966_v23 }
  0x24   :  { %2435 = vmatmul.msk.f32.gmra.mxu0 %vm4523_vm0, %v523_v17  ;;  %2439 = vmatmul.msk.f32.gmra.mxu1 %vm4523_vm0, %v523_v17  ;;  %v271_v17 = vand.u32 7, %v2963_v21 }
  0x25   :  { %2454 = vmatpush.msk.msra.mxu2 %vm3169_vm13, %v2785_v29  ;;  %2470 = vmatpush.msk.msra.mxu3 %vm3169_vm13, %v2785_v29 }
  0x26   :  { %vm3230_vm13 = vcmp.eq.s32.totalorder %v271_v17, %v2966_v23 }
  0x27   :  { %2455 = vmatpush.msk.msra.mxu2 %vm3192_vm10, %v2785_v29  ;;  %2471 = vmatpush.msk.msra.mxu3 %vm3192_vm10, %v2785_v29  ;;  %v4629_v24 = vsel %vm3230_vm13, 4294967295, %v4628_v24 }
  0x29   :  { %2456 = vmatpush.msk.msra.mxu2 %vm3208_vm8, %v2785_v29  ;;  %2472 = vmatpush.msk.msra.mxu3 %vm3208_vm8, %v2785_v29 }
  0x2b   :  { %2457 = vmatpush.msk.msra.mxu2 %vm3230_vm13, %v2785_v29  ;;  %2473 = vmatpush.msk.msra.mxu3 %vm3230_vm13, %v2785_v29 }
  0x2c   :  { %2436 = vmatmul.msk.f32.gmra.mxu0 %vm4523_vm0, %v524_v18  ;;  %2440 = vmatmul.msk.f32.gmra.mxu1 %vm4523_vm0, %v524_v18  ;;  %v4620_v18 = vmov 0 }
  0x2d   :  { %v4621_v18 = vsel %vm3192_vm10, 4294967295, %v4620_v18  ;;  %vm3245_vm10 = vcmp.eq.s32.totalorder %v128_v25, %v2966_v23 }
  0x34   :  { %2437 = vmatmul.msk.f32.gmra.mxu0 %vm4523_vm0, %v525_v19  ;;  %2441 = vmatmul.msk.f32.gmra.mxu1 %vm4523_vm0, %v525_v19  ;;  %vm3142_vm0 = vcmp.eq.s32.totalorder %v156_v0, %v2966_v23 }
  0x35   :  { %2481 = vmatpush.msk.msrb.mxu0 %vm3142_vm0, %v2785_v29  ;;  %2490 = vmatpush.msk.msrb.mxu1 %vm3142_vm0, %v2785_v29 }
  0x37   :  { %2482 = vmatpush.msk.msrb.mxu0 %vm3174_vm11, %v2785_v29  ;;  %2491 = vmatpush.msk.msrb.mxu1 %vm3174_vm11, %v2785_v29 }
  0x39   :  { %2483 = vmatpush.msk.msrb.mxu0 %vm3197_vm15, %v2785_v29  ;;  %2492 = vmatpush.msk.msrb.mxu1 %vm3197_vm15, %v2785_v29 }
  0x3b   :  { %2484 = vmatpush.msk.msrb.mxu0 %vm3213_vm7, %v2785_v29  ;;  %2493 = vmatpush.msk.msrb.mxu1 %vm3213_vm7, %v2785_v29 }
  0x3d   :  { %2485 = vmatpush.msk.msrb.mxu0 %vm3245_vm10, %v2785_v29  ;;  %2494 = vmatpush.msk.msrb.mxu1 %vm3245_vm10, %v2785_v29 }
  0x3f   :  { %2500 = vmatpush.msk.msra.mxu0 %vm3066_vm9, %v2785_v29  ;;  %2509 = vmatpush.msk.msra.mxu1 %vm3066_vm9, %v2785_v29  ;;  %vm919_vm9 = vcmask 1048064  }
  0x41   :  { %2501 = vmatpush.msk.msra.mxu0 %vm3095_vm12, %v2785_v29  ;;  %2510 = vmatpush.msk.msra.mxu1 %vm3095_vm12, %v2785_v29  ;;  %vm4632_vm12 = vcmask 523264  }
  0x43   :  { %2502 = vmatpush.msk.msra.mxu0 %vm3120_vm14, %v2785_v29  ;;  %2511 = vmatpush.msk.msra.mxu1 %vm3120_vm14, %v2785_v29 }
  0x45   :  { %2503 = vmatpush.msk.msra.mxu0 %vm3142_vm0, %v2785_v29  ;;  %2512 = vmatpush.msk.msra.mxu1 %vm3142_vm0, %v2785_v29  ;;  %vm4633_vm0 = vmmov %vm4632_vm12 }
  0x46   :  { %vm4634_vm14 = vmmov %vm4633_vm0 }
  0x47   :  { %2504 = vmatpush.msk.msra.mxu0 %vm3174_vm11, %v2785_v29  ;;  %2513 = vmatpush.msk.msra.mxu1 %vm3174_vm11, %v2785_v29  ;;  %vm4636_vm11 = vmmov %vm4633_vm0 }
  0x49   :  { %2505 = vmatpush.msk.msra.mxu0 %vm3197_vm15, %v2785_v29  ;;  %2514 = vmatpush.msk.msra.mxu1 %vm3197_vm15, %v2785_v29  ;;  %vm4637_vm15 = vmmov %vm4633_vm0 }
  0x4b   :  { %2506 = vmatpush.msk.msra.mxu0 %vm3213_vm7, %v2785_v29  ;;  %2515 = vmatpush.msk.msra.mxu1 %vm3213_vm7, %v2785_v29  ;;  %vm4638_vm7 = vmmov %vm4633_vm0 }
  0x4d   :  { %2507 = vmatpush.msk.msra.mxu0 %vm3245_vm10, %v2785_v29  ;;  %2516 = vmatpush.msk.msra.mxu1 %vm3245_vm10, %v2785_v29  ;;  %vm4639_vm10 = vmmov %vm4633_vm0 }
  0x99   :  { %v3158_v13 = vpop.f32.mrf.mxu0  ;;  %v3160_v14 = vpop.f32.mrf.mxu1 }
  0x9a   :  { %v770_v34 = vmul.f32 %v3160_v14, %v3160_v14  ;;  %v622_v38 = vmul.f32 %v3158_v13, %v3158_v13  ;;  %v757_v43 = vsel %vm4633_vm0, %v3160_v14, 0.0  ;;  %v920_v49 = vsel %vm919_vm9, %v3160_v14, 0.0 }
  0x9c   :  { %v933_v59 = vsel %vm919_vm9, %v770_v34, 0.0 }
  0xa1   :  { %v3252_v28 = vpop.f32.mrf.mxu0  ;;  %v3254_v31 = vpop.f32.mrf.mxu1 }
  0xa2   :  { %v771_v32 = vmul.f32 %v3254_v31, %v3254_v31  ;;  %v623_v40 = vmul.f32 %v3252_v28, %v3252_v28  ;;  %v758_v41 = vsel %vm4632_vm12, %v3254_v31, 0.0  ;;  %v921_v46 = vsel %vm919_vm9, %v3254_v31, 0.0  ;;  %vm4635_vm12 = vmmov %vm4633_vm0 }
  0xa3   :  { %v774_v48 = vsel %vm4635_vm12, %v770_v34, 0.0  ;;  %v613_v54 = vadd.f32 %v3252_v28, %v3158_v13  ;;  %v759_v55 = vadd.f32 %v758_v41, %v757_v43  ;;  %v922_v63 = vadd.f32 %v921_v46, %v920_v49 }
  0xa4   :  { %v775_v44 = vsel %vm4634_vm14, %v771_v32, 0.0  ;;  %v934_v51 = vsel %vm919_vm9, %v771_v32, 0.0  ;;  %v626_v60 = vadd.f32 %v623_v40, %v622_v38  ;;  %vm4641_vm14 = vnez %v4597_v45 }
  0xa5   :  { %v776_v61 = vadd.f32 %v775_v44, %v774_v48  ;;  %v935_v0 = vadd.f32 %v934_v51, %v933_v59  ;;  %vm4642_vm12 = vnez %v4599_v50 }
  0xa9   :  { %v3290_v35 = vpop.f32.mrf.mxu0  ;;  %v3292_v37 = vpop.f32.mrf.mxu1 }
  0xaa   :  { %v772_v47 = vmul.f32 %v3292_v37, %v3292_v37  ;;  %v624_v52 = vmul.f32 %v3290_v35, %v3290_v35  ;;  %v760_v56 = vsel %vm4636_vm11, %v3292_v37, 0.0  ;;  %v923_v58 = vsel %vm919_vm9, %v3292_v37, 0.0 }
  0xab   :  { %v614_v2 = vadd.f32 %v613_v54, %v3290_v35  ;;  %v761_v9 = vadd.f32 %v760_v56, %v759_v55  ;;  %v924_v12 = vadd.f32 %v923_v58, %v922_v63  ;;  %vm4643_vm11 = vnez %v4603_v53 }
  0xac   :  { %v777_v6 = vsel %vm4637_vm15, %v772_v47, 0.0  ;;  %v936_v7 = vsel %vm919_vm9, %v772_v47, 0.0  ;;  %v627_v8 = vadd.f32 %v626_v60, %v624_v52  ;;  %vm4644_vm15 = vnez %v4605_v57 }
  0xad   :  { %v778_v25 = vadd.f32 %v777_v6, %v776_v61  ;;  %v937_v32 = vadd.f32 %v936_v7, %v935_v0 }
  0xb1   :  { %v3347_v10 = vpop.f32.mrf.mxu0  ;;  %v3349_v11 = vpop.f32.mrf.mxu1 }
  0xb2   :  { %v615_v16 = vadd.f32 %v614_v2, %v3347_v10  ;;  %v625_v17 = vmul.f32 %v3347_v10, %v3347_v10  ;;  %v762_v19 = vsel %vm4638_vm7, %v3349_v11, 0.0  ;;  %v773_v22 = vmul.f32 %v3349_v11, %v3349_v11 }
  0xb3   :  { %v763_v34 = vadd.f32 %v762_v19, %v761_v9  ;;  %v925_v38 = vsel %vm919_vm9, %v3349_v11, 0.0  ;;  %vm4645_vm7 = vnez %v4609_v62 }
  0xb4   :  { %v616_v40 = vrot.slane %v615_v16, 4  ;;  %v628_v27 = vadd.f32 %v627_v8, %v625_v17  ;;  %v779_v41 = vsel %vm4639_vm10, %v773_v22, 0.0  ;;  %v938_v43 = vsel %vm919_vm9, %v773_v22, 0.0  ;;  %vm4640_vm9 = vmmov %vm4633_vm0 }
  0xb5   :  { %v764_v44 = vrot.slane %v763_v34, 4  ;;  %v780_v46 = vadd.f32 %v779_v41, %v778_v25  ;;  %v926_v47 = vadd.f32 %v925_v38, %v924_v12  ;;  %v939_v48 = vadd.f32 %v938_v43, %v937_v32 }
  0xb6   :  { %v617_v49 = vadd.f32 %v616_v40, %v615_v16  ;;  %v629_v51 = vrot.slane %v628_v27, 4  ;;  %vm4646_vm10 = vnez %v4613_v5 }
  0xb7   :  { %v927_v52 = vrot.slane %v926_v47, 4  ;;  %v765_v54 = vadd.f32 %v764_v44, %v763_v34  ;;  %v781_v55 = vrot.slane %v780_v46, 4  ;;  %v940_v56 = vrot.slane %v939_v48, 4 }
  0xb8   :  { %v618_v58 = vrot.slane %v617_v49, 2  ;;  %v630_v59 = vadd.f32 %v629_v51, %v628_v27  ;;  %v511_v51 = vand.u32 7, %v2966_v23 }
  0xb9   :  { %v928_v60 = vadd.f32 %v927_v52, %v926_v47  ;;  %v766_v61 = vrot.slane %v765_v54, 2  ;;  %v782_v63 = vadd.f32 %v781_v55, %v780_v46  ;;  %v941_v0 = vadd.f32 %v940_v56, %v939_v48 }
  0xba   :  { %v619_v2 = vadd.f32 %v618_v58, %v617_v49  ;;  %v631_v6 = vrot.slane %v630_v59, 2 }
  0xbb   :  { %v929_v7 = vrot.slane %v928_v60, 2  ;;  %v767_v8 = vadd.f32 %v766_v61, %v765_v54  ;;  %v783_v9 = vrot.slane %v782_v63, 2  ;;  %v942_v25 = vrot.slane %v941_v0, 2 }
  0xbc   :  { %v620_v17 = vrot.slane %v619_v2, 1  ;;  %v632_v12 = vadd.f32 %v631_v6, %v630_v59  ;;  %v4650_v54 = vmov 0  ;;  %v248_v61 = vand.u32 3, %v2966_v23 }
  0xbd   :  { %v930_v19 = vadd.f32 %v929_v7, %v928_v60  ;;  %v768_v16 = vrot.slane %v767_v8, 1  ;;  %v784_v22 = vadd.f32 %v783_v9, %v782_v63  ;;  %v943_v46 = vadd.f32 %v942_v25, %v941_v0 }
  0xbe   :  { %v621_v32 = vadd.f32 %v620_v17, %v619_v2  ;;  %v633_v34 = vrot.slane %v632_v12, 1 }
  0xbf   :  { %v931_v38 = vrot.slane %v930_v19, 1  ;;  %v769_v40 = vadd.f32 %v768_v16, %v767_v8  ;;  %v785_v27 = vrot.slane %v784_v22, 1  ;;  %v944_v47 = vrot.slane %v943_v46, 1 }
  0xc0   :  { %651 = vmatmul.f32.vlgmr.msra.gmra.mxu2 %v621_v32  ;;  %v634_v41 = vadd.f32 %v633_v34, %v632_v12  ;;  %v2787_v8 = vmov 0.0  }
  0xc1   :  { %v932_v43 = vadd.f32 %v931_v38, %v930_v19  ;;  %2486 = vmatmul.msk.f32.vlgmr.msrb.gmra.mxu0 %vm4640_vm9, %v769_v40  ;;  %v786_v44 = vadd.f32 %v785_v27, %v784_v22  ;;  %v945_v48 = vadd.f32 %v944_v47, %v943_v46  ;;  %vm4647_vm9 = vnez %v4617_v15 }
  0xc2   :  { %671 = vmatmul.f32.vlgmr.msra.gmra.mxu3 %v634_v41 }
  0xc3   :  { %947 = vrot.lane.b32.xlu0 %v932_v43, %s2786_s1  ;;  %2495 = vmatmul.msk.f32.vlgmr.msrb.gmra.mxu1 %vm4633_vm0, %v786_v44  ;;  %vm4648_vm0 = vnez %v4621_v18 }
  0xc4   :  { %2550 = vmatpush.msk.msrb.mxu1 %vm2970_vm1, %v2785_v29 }
  0xc6   :  { %2551 = vmatpush.msk.msrb.mxu1 %vm2982_vm2, %v2785_v29 }
  0xc8   :  { %2552 = vmatpush.msk.msrb.mxu1 %vm2994_vm3, %v2785_v29 }
  0xca   :  { %2553 = vmatpush.msk.msrb.mxu1 %vm3006_vm4, %v2785_v29 }
  0xcb   :  { %972 = vrot.lane.b32.xlu0 %v945_v48, %s2786_s1 }
  0xcc   :  { %2554 = vmatpush.msk.msrb.mxu1 %vm3018_vm5, %v2785_v29 }
  0xce   :  { %2555 = vmatpush.msk.msrb.mxu1 %vm3030_vm6, %v2785_v29 }
  0xd0   :  { %2556 = vmatpush.msk.msrb.mxu1 %vm4641_vm14, %v2785_v29 }
  0xd2   :  { %2557 = vmatpush.msk.msrb.mxu1 %vm4642_vm12, %v2785_v29  ;;  %vm4656_vm12 = vcmask 1043456  }
  0xd4   :  { %2558 = vmatpush.msk.msrb.mxu1 %vm4643_vm11, %v2785_v29 }
  0xd6   :  { %2559 = vmatpush.msk.msrb.mxu1 %vm4644_vm15, %v2785_v29  ;;  %vm4546_vm15 = vcmask 64512  }
  0xd8   :  { %2560 = vmatpush.msk.msrb.mxu1 %vm4645_vm7, %v2785_v29  ;;  %vm4649_vm7 = vcmask 523264  }
  0xda   :  { %2561 = vmatpush.msk.msrb.mxu1 %vm4646_vm10, %v2785_v29 }
  0xdc   :  { %2562 = vmatpush.msk.msrb.mxu1 %vm4647_vm9, %v2785_v29  ;;  %vm3423_vm9 = vcmp.eq.s32.totalorder %v511_v51, %v2963_v21 }
  0xdd   :  { %v4651_v54 = vsel %vm3423_vm9, 4294967295, %v4650_v54  ;;  %2474 = vmatpush.msk.msrb.mxu2 %vm3423_vm9, %v2785_v29  ;;  %2476 = vmatpush.msk.msrb.mxu3 %vm3423_vm9, %v2785_v29 }
  0xde   :  { %2563 = vmatpush.msk.msrb.mxu1 %vm4648_vm0, %v2785_v29  ;;  %vm4652_vm0 = vmmov %vm4649_vm7 }
  0xe0   :  { %2564 = vmatpush.msk.msrb.mxu1 %vm3208_vm8, %v2785_v29 }
  0xe2   :  { %2565 = vmatpush.msk.msrb.mxu1 %vm3230_vm13, %v2785_v29 }
 0x135   :  { %v948_v49 = vpop.permute.xlu0 %947 }
 0x136   :  { %2508 = vmatmul.msk.f32.vlgmr.msra.gmra.mxu0 %vm4649_vm7, %v948_v49  ;;  %vm4542_vm7 = vcmask 1043456   ;;  %v691_v49 = vld [vmem:[%s4653_s22] sm:$0x1] }
 0x13d   :  { %v973_v52 = vpop.permute.xlu0 %972 }
 0x13e   :  { %2517 = vmatmul.msk.f32.vlgmr.msra.gmra.mxu1 %vm4652_vm0, %v973_v52  ;;  %v807_v55 = vpop.f32.mrf.mxu0  ;;  %vm256_vm0 = vcmp.eq.s32.totalorder %v248_v61, %v2963_v21 }
 0x13f   :  { %v3431_v56 = vmul.f32 0.001953125, %v807_v55  ;;  %2582 = vmatpush.msk.msra.mxu1 %vm3423_vm9, %v2785_v29  ;;  %v2416_v9 = vsel %vm256_vm0, 1.0, %v2787_v8 }
 0x140   :  { %v830_v58 = vpop.f32.mrf.mxu1  ;;  %2496 = vmatpush.msk.msra.mxu2 %vm4542_vm7, %v2416_v9  ;;  %2498 = vmatpush.msk.msra.mxu3 %vm4542_vm7, %v2416_v9 }
 0x141   :  { %v835_v59 = vmul.f32 %v3431_v56, %v3431_v56  ;;  %v834_v60 = vmul.f32 0.001953125, %v830_v58  ;;  %v693_v58 = vld [vmem:[%s4654_s25] sm:$0x1] }
 0x143   :  { %v836_v63 = vsub.f32 %v834_v60, %v835_v59  ;;  %v652_v0 = vpop.f32.mrf.mxu2  ;;  %v849_v59 = vld [vmem:[%s4655_s28] sm:$0x1] }
 0x144   :  { %v675_v2 = vmul.f32 0.001953125, %v652_v0 }
 0x145   :  { %v837_v6 = vmax.f32 %v836_v63, 0.0  ;;  %v672_v7 = vpop.f32.mrf.mxu3 }
 0x146   :  { %v677_v17 = vmul.f32 %v675_v2, %v675_v2  ;;  %v676_v12 = vmul.f32 0.001953125, %v672_v7 }
 0x147   :  { %v838_v19 = vadd.f32 0.001, %v837_v6  ;;  %v851_v6 = vld [vmem:[%s4505_s9] sm:$0x1] }
 0x148   :  { %v678_v16 = vsub.f32 %v676_v12, %v677_v17 }
 0x149   :  { %2767 = vrsqrt.f32 %v838_v19  ;;  %vm845_vm10 = vweird.f32 %v838_v19 }
 0x14a   :  { %v679_v23 = vmax.f32 %v678_v16, 0.0 }
 0x14c   :  { %v680_v22 = vadd.f32 0.001, %v679_v23 }
 0x14e   :  { %2769 = vrsqrt.f32 %v680_v22  ;;  %vm687_vm7 = vweird.f32 %v680_v22 }
 0x14f   :  { %v2768_v25 = vpop.eup %2767 }
 0x150   :  { %v840_v32 = vmul.f32 %v2768_v25, %v838_v19  ;;  %vm846_vm13 = vweird.f32 %v2768_v25 }
 0x151   :  { %vm847_vm11 = vmor %vm845_vm10, %vm846_vm13 }
 0x152   :  { %v841_v34 = vmul.f32 %v2768_v25, %v840_v32  ;;  %vm4657_vm13 = vmmov %vm4656_vm12 }
 0x154   :  { %v2770_v38 = vpop.eup %2769  ;;  %v842_v40 = vmul.f32 0.5, %v841_v34  ;;  %v2528_v34 = vld [vmem:[%s4506_s2 + $0x70] sm:$0xff] }
 0x155   :  { %v682_v27 = vmul.f32 %v2770_v38, %v680_v22  ;;  %vm688_vm0 = vweird.f32 %v2770_v38 }
 0x156   :  { %v843_v43 = vsub.f32 1.5, %v842_v40  ;;  %vm689_vm8 = vmor %vm687_vm7, %vm688_vm0  ;;  %vm4658_vm7 = vnez %v4599_v50  ;;  %vm4659_vm0 = vnez %v4603_v53 }
 0x157   :  { %v683_v41 = vmul.f32 %v2770_v38, %v682_v27  ;;  %v1134_v27 = vld [vmem:[%s4506_s2 + $0x38] sm:$0xff] }
 0x158   :  { %v844_v47 = vmul.f32 %v2768_v25, %v843_v43  ;;  %v2544_v43 = vld [vmem:[%s4506_s2 + $0xb0] sm:$0xff] }
 0x159   :  { %v684_v44 = vmul.f32 0.5, %v683_v41  ;;  %v2527_v41 = vld [vmem:[%s4506_s2 + $0x68] sm:$0xff] }
 0x15a   :  { %v848_v55 = vsel %vm847_vm11, %v2768_v25, %v844_v47  ;;  %v2529_v25 = vld [vmem:[%s4506_s2 + $0x78] sm:$0xff]  ;;  %v2526_v47 = vld [vmem:[%s4506_s2 + $0x60] sm:$0xff] }
 0x15b   :  { %v685_v46 = vsub.f32 1.5, %v684_v44  ;;  %v850_v63 = vmul.f32 %v849_v59, %v848_v55  ;;  %v2525_v55 = vld [vmem:[%s4506_s2 + $0x58] sm:$0xff] }
 0x15d   :  { %v686_v48 = vmul.f32 %v2770_v38, %v685_v46  ;;  %v852_v0 = vmul.f32 %v850_v63, %v3431_v56  ;;  %v1133_v46 = vld [vmem:[%s4506_s2 + $0x30] sm:$0xff] }
 0x15f   :  { %v690_v51 = vsel %vm689_vm8, %v2770_v38, %v686_v48  ;;  %vm4545_vm8 = vcmask 31744   ;;  %v853_v7 = vsub.f32 %v851_v6, %v852_v0  ;;  %v2545_v38 = vld [vmem:[%s4506_s2 + $0xb8] sm:$0xff]  ;;  %v2543_v48 = vld [vmem:[%s4506_s2 + $0xa8] sm:$0xff] }
 0x160   :  { %v692_v52 = vmul.f32 %v691_v49, %v690_v51  ;;  %1271 = vmatpush.msrb.mxu0 %v2545_v38  ;;  %v1012_v51 = vld [vmem:[%s4507_s12] sm:$0x1]  ;;  %v2541_v0 = vld [vmem:[%s4506_s2 + $0x98] sm:$0xff] }
 0x161   :  { %v1130_v6 = vld [vmem:[%s4506_s2 + $0x18] sm:$0xff] }
 0x162   :  { %2475 = vmatmul.msk.f32.vlgmr.msrb.gmra.mxu2 %vm4546_vm15, %v692_v52  ;;  %v694_v60 = vmul.f32 %v692_v52, %v675_v2  ;;  %1272 = vmatpush.msrb.mxu0 %v2544_v43  ;;  %v1132_v52 = vld [vmem:[%s4506_s2 + $0x28] sm:$0xff] }
 0x163   :  { %2518 = vmatpush.msk.msrb.mxu2 %vm4656_vm12, %v2416_v9 }
 0x164   :  { %v695_v61 = vsub.f32 %v693_v58, %v694_v60  ;;  %1273 = vmatpush.msrb.mxu0 %v2543_v48  ;;  %v2542_v58 = vld [vmem:[%s4506_s2 + $0xa0] sm:$0xff] }
 0x165   :  { %v1131_v60 = vld [vmem:[%s4506_s2 + $0x20] sm:$0xff] }
 0x166   :  { %2477 = vmatmul.msk.f32.vlgmr.msrb.gmra.mxu3 %vm4546_vm15, %v695_v61  ;;  %1274 = vmatpush.msrb.mxu0 %v2542_v58  ;;  %v2524_v61 = vld [vmem:[%s4506_s2 + $0x50] sm:$0xff]  ;;  %vm4663_vm15 = vcmask 523264  }
 0x167   :  { %2520 = vmatpush.msk.msrb.mxu3 %vm4657_vm13, %v2416_v9  ;;  %vm4660_vm13 = vnez %v4605_v57 }
 0x168   :  { %1275 = vmatpush.msrb.mxu0 %v2541_v0 }
 0x16a   :  { %2497 = vmatmul.msk.f32.vlgmr.msra.gmra.mxu2 %vm4545_vm8, %v850_v63 }
 0x16b   :  { %1155 = vmatpush.msra.mxu2 %v1134_v27 }
 0x16d   :  { %1156 = vmatpush.msra.mxu2 %v1133_v46 }
 0x16e   :  { %2499 = vmatmul.msk.f32.vlgmr.msra.gmra.mxu3 %vm4545_vm8, %v853_v7  ;;  %v2523_v7 = vld [vmem:[%s4506_s2 + $0x48] sm:$0xff] }
 0x16f   :  { %1192 = vmatpush.msra.mxu3 %v2529_v25  ;;  %1157 = vmatpush.msra.mxu2 %v1132_v52 }
 0x171   :  { %1193 = vmatpush.msra.mxu3 %v2528_v34  ;;  %1158 = vmatpush.msra.mxu2 %v1131_v60 }
 0x173   :  { %1194 = vmatpush.msra.mxu3 %v2527_v41  ;;  %1159 = vmatpush.msra.mxu2 %v1130_v6  ;;  %v74_v6 = vand.u32 15, %v2963_v21  ;;  %v4664_v21 = vmov 0 }
 0x175   :  { %1195 = vmatpush.msra.mxu3 %v2526_v47 }
 0x177   :  { %1196 = vmatpush.msra.mxu3 %v2525_v55 }
 0x179   :  { %1197 = vmatpush.msra.mxu3 %v2524_v61 }
 0x17b   :  { %1198 = vmatpush.msra.mxu3 %v2523_v7 }
 0x1b3   :  { %v968_v2 = vpop.f32.mrf.mxu0 }
 0x1b4   :  { %v996_v8 = vmul.f32 0.001953125, %v968_v2  ;;  %v1014_v2 = vld [vmem:[%s4508_s13] sm:$0x1]  ;;  %s2789_s13 = smov 124  }
 0x1b6   :  { %v998_v12 = vmul.f32 %v996_v8, %v996_v8 }
 0x1bb   :  { %v993_v17 = vpop.f32.mrf.mxu1 }
 0x1bc   :  { %v997_v19 = vmul.f32 0.001953125, %v993_v17  ;;  %v2540_v17 = vld [vmem:[%s4506_s2 + $0x90] sm:$0xff] }
 0x1bd   :  { %1276 = vmatpush.msrb.mxu0 %v2540_v17 }
 0x1be   :  { %v999_v16 = vsub.f32 %v997_v19, %v998_v12  ;;  %v2522_v12 = vld [vmem:[%s4506_s2 + $0x40] sm:$0xff] }
 0x1bf   :  { %1199 = vmatpush.msra.mxu3 %v2522_v12 }
 0x1c0   :  { %v1000_v23 = vmax.f32 %v999_v16, 0.0  ;;  %v1129_v16 = vld [vmem:[%s4506_s2 + $0x10] sm:$0xff] }
 0x1c1   :  { %1160 = vmatpush.msra.mxu2 %v1129_v16 }
 0x1c2   :  { %v1001_v22 = vadd.f32 0.001, %v1000_v23  ;;  %v2539_v23 = vld [vmem:[%s4506_s2 + $0x88] sm:$0xff] }
 0x1c3   :  { %1277 = vmatpush.msrb.mxu0 %v2539_v23 }
 0x1c4   :  { %2771 = vrsqrt.f32 %v1001_v22  ;;  %vm1008_vm11 = vweird.f32 %v1001_v22 }
 0x1ca   :  { %v2772_v9 = vpop.eup %2771 }
 0x1cb   :  { %v1003_v56 = vmul.f32 %v2772_v9, %v1001_v22  ;;  %vm1009_vm12 = vweird.f32 %v2772_v9 }
 0x1cc   :  { %vm1010_vm10 = vmor %vm1008_vm11, %vm1009_vm12  ;;  %vm4661_vm12 = vnez %v4609_v62  ;;  %vm4662_vm11 = vnez %v4613_v5 }
 0x1cd   :  { %v1004_v32 = vmul.f32 %v2772_v9, %v1003_v56  ;;  %v1127_v56 = vld [vmem:[%s4506_s2] sm:$0xff] }
 0x1cf   :  { %v1005_v40 = vmul.f32 0.5, %v1004_v32 }
 0x1d1   :  { %v1006_v44 = vsub.f32 1.5, %v1005_v40 }
 0x1d3   :  { %v1007_v49 = vmul.f32 %v2772_v9, %v1006_v44 }
 0x1d5   :  { %v1011_v59 = vsel %vm1010_vm10, %v2772_v9, %v1007_v49  ;;  %v1128_v9 = vld [vmem:[%s4506_s2 + $0x8] sm:$0xff]  ;;  %vm4549_vm10 = vcmask 1046528  }
 0x1d6   :  { %v1013_v63 = vmul.f32 %v1012_v51, %v1011_v59  ;;  %1161 = vmatpush.msra.mxu2 %v1128_v9 }
 0x1d8   :  { %2519 = vmatmul.msk.f32.vlgmr.msrb.gmra.mxu2 %vm4545_vm8, %v1013_v63  ;;  %v1015_v19 = vmul.f32 %v1013_v63, %v996_v8  ;;  %v2538_v8 = vld [vmem:[%s4506_s2 + $0x80] sm:$0xff] }
 0x1d9   :  { %1278 = vmatpush.msrb.mxu0 %v2538_v8  ;;  %1162 = vmatpush.msra.mxu2 %v1127_v56  ;;  %v81_v8 = vand.u32 15, %v3128_v4 }
 0x1da   :  { %v1016_v22 = vsub.f32 %v1014_v2, %v1015_v19 }
 0x1db   :  { %2566 = vmatpush.msk.msrb.mxu2 %vm2970_vm1, %v2785_v29 }
 0x1dc   :  { %2521 = vmatmul.msk.f32.vlgmr.msrb.gmra.mxu3 %vm4545_vm8, %v1016_v22  ;;  %vm4550_vm8 = vcmask 1040384  }
 0x1dd   :  { %2584 = vmatpush.msk.msrb.mxu3 %vm3423_vm9, %v2785_v29  ;;  %2567 = vmatpush.msk.msrb.mxu2 %vm2982_vm2, %v2785_v29  ;;  %vm3604_vm9 = vcmp.ge.s32.totalorder %v74_v6, 1 }
 0x1de   :  { %v4665_v21 = vsel %vm3604_vm9, 4294967295, %v4664_v21 }
 0x1df   :  { %2568 = vmatpush.msk.msrb.mxu2 %vm2994_vm3, %v2785_v29 }
 0x1e1   :  { %2569 = vmatpush.msk.msrb.mxu2 %vm3006_vm4, %v2785_v29 }
 0x1e3   :  { %2570 = vmatpush.msk.msrb.mxu2 %vm3018_vm5, %v2785_v29 }
 0x1e5   :  { %v717_v25 = vpop.f32.mrf.mxu2  ;;  %2571 = vmatpush.msk.msrb.mxu2 %vm3030_vm6, %v2785_v29 }
 0x1e6   :  { %v743_v32 = vperm.slane %v717_v25, 0 }
 0x1e7   :  { %2572 = vmatpush.msk.msrb.mxu2 %vm4641_vm14, %v2785_v29 }
 0x1e8   :  { %v744_v34 = vmul.f32 %v743_v32, %v3158_v13  ;;  %v745_v40 = vmul.f32 %v743_v32, %v3252_v28  ;;  %v746_v27 = vmul.f32 %v743_v32, %v3290_v35  ;;  %v747_v41 = vmul.f32 %v743_v32, %v3347_v10 }
 0x1e9   :  { %v740_v38 = vpop.f32.mrf.mxu3  ;;  %2573 = vmatpush.msk.msrb.mxu2 %vm4658_vm7, %v2785_v29 }
 0x1ea   :  { %v748_v43 = vperm.slane %v740_v38, 0 }
 0x1eb   :  { %2574 = vmatpush.msk.msrb.mxu2 %vm4659_vm0, %v2785_v29 }
 0x1ec   :  { %v749_v44 = vadd.f32 %v748_v43, %v744_v34  ;;  %v750_v46 = vadd.f32 %v748_v43, %v745_v40  ;;  %v751_v47 = vadd.f32 %v748_v43, %v746_v27  ;;  %v752_v48 = vadd.f32 %v748_v43, %v747_v41 }
 0x1ed   :  { %v879_v13 = vpop.f32.mrf.mxu2  ;;  %2575 = vmatpush.msk.msrb.mxu2 %vm4660_vm13, %v2785_v29  ;;  %v4672_v34 = vmov 0  ;;  %v88_v43 = vand.u32 15, %v3125_v3 }
 0x1ee   :  { %v753_v49 = vmax.f32 %v749_v44, 0.0  ;;  %v754_v28 = vmax.f32 %v750_v46, 0.0  ;;  %v755_v51 = vmax.f32 %v751_v47, 0.0  ;;  %v756_v35 = vmax.f32 %v752_v48, 0.0 }
 0x1ef   :  { %v905_v10 = vperm.slane %v879_v13, 0  ;;  %2576 = vmatpush.msk.msrb.mxu2 %vm4661_vm12, %v2785_v29  ;;  %vm4666_vm12 = vnez %v4617_v15  ;;  %v4679_v48 = vmov 0 }
 0x1f0   :  { %2388 = vst [vmem:[%s4509_s20] sm:$0xff] %v753_v49  ;;  %v95_v49 = vand.u32 15, %v3111_v1 }
 0x1f1   :  { %2389 = vst [vmem:[%s4509_s20 + $0x20] sm:$0xff] %v754_v28  ;;  %v902_v52 = vpop.f32.mrf.mxu3  ;;  %v906_v55 = vmul.f32 %v905_v10, %v3160_v14  ;;  %v907_v58 = vmul.f32 %v905_v10, %v3254_v31  ;;  %v908_v59 = vmul.f32 %v905_v10, %v3292_v37  ;;  %2577 = vmatpush.msk.msrb.mxu2 %vm4662_vm11, %v2785_v29  ;;  %vm4668_vm11 = vcmask 523264  }
 0x1f2   :  { %2390 = vst [vmem:[%s4509_s20 + $0x40] sm:$0xff] %v755_v51  ;;  %v910_v60 = vperm.slane %v902_v52, 0  ;;  %v909_v25 = vmul.f32 %v905_v10, %v3349_v11  ;;  %v4685_v51 = vmov 0 }
 0x1f3   :  { %2391 = vst [vmem:[%s4509_s20 + $0x60] sm:$0xff] %v756_v35  ;;  %2578 = vmatpush.msk.msrb.mxu2 %vm4666_vm12, %v2785_v29 }
 0x1f4   :  { %v911_v61 = vadd.f32 %v910_v60, %v906_v55  ;;  %v912_v63 = vadd.f32 %v910_v60, %v907_v58  ;;  %v913_v0 = vadd.f32 %v910_v60, %v908_v59  ;;  %v914_v32 = vadd.f32 %v910_v60, %v909_v25 }
 0x1f6   :  { %v915_v7 = vmax.f32 %v911_v61, 0.0  ;;  %v916_v2 = vmax.f32 %v912_v63, 0.0  ;;  %v917_v17 = vmax.f32 %v913_v0, 0.0  ;;  %v918_v40 = vmax.f32 %v914_v32, 0.0 }
 0x1f8   :  { %2534 = vmatmul.msk.f32.vlgmr.msra.gmra.mxu3 %vm4663_vm15, %v915_v7  ;;  %v1214_v12 = vrot.slane %v915_v7, 1  ;;  %v1215_v19 = vrot.slane %v916_v2, 1  ;;  %v1099_v16 = vrot.slane %v915_v7, 7  ;;  %vm4667_vm15 = vnez %v4621_v18 }
 0x1f9   :  { %2614 = vmatpush.msk.msra.mxu3 %vm2970_vm1, %v2785_v29  ;;  %2579 = vmatpush.msk.msrb.mxu2 %vm4667_vm15, %v2785_v29  ;;  %v1217_v56 = vrot.slane %v917_v17, 1  ;;  %v1100_v38 = vrot.slane %v916_v2, 7  ;;  %v1102_v44 = vrot.slane %v917_v17, 7  ;;  %v1219_v46 = vrot.slane %v918_v40, 1 }
 0x1fa   :  { %v1216_v23 = vsel %vm4549_vm10, %v1214_v12, %v1215_v19  ;;  %v1110_v22 = vsel %vm4550_vm8, 0.0, %v1099_v16  ;;  %vm4669_vm10 = vmmov %vm4668_vm11  ;;  %vm4670_vm8 = vnez %v4625_v20  ;;  %v1104_v35 = vrot.slane %v918_v40, 7 }
 0x1fb   :  { %2546 = vmatmul.msk.f32.vlgmr.msrb.gmra.mxu0 %vm4668_vm11, %v1216_v23  ;;  %v1123_v9 = vsel %vm3604_vm9, %v1110_v22, 0.0  ;;  %2615 = vmatpush.msk.msra.mxu3 %vm2982_vm2, %v2785_v29  ;;  %vm4671_vm11 = vcmask 1046528   ;;  %vm3635_vm9 = vcmp.lt.s32.totalorder %v81_v8, 15  ;;  %vm4674_vm2 = vnez %v4629_v24  ;;  %vm4677_vm1 = vmmov %vm4669_vm10 }
 0x1fc   :  { %2530 = vmatmul.msk.f32.vlgmr.msra.gmra.mxu2 %vm4669_vm10, %v1123_v9  ;;  %v1218_v4 = vsel %vm4671_vm11, %v1215_v19, %v1217_v56  ;;  %v4673_v34 = vsel %vm3635_vm9, 4294967295, %v4672_v34  ;;  %vm4675_vm11 = vmmov %vm4669_vm10 }
 0x1fd   :  { %2580 = vmatpush.msk.msrb.mxu2 %vm4670_vm8, %v2785_v29  ;;  %2616 = vmatpush.msk.msra.mxu3 %vm2994_vm3, %v2785_v29  ;;  %v1239_v27 = vsel %vm3635_vm9, %v1218_v4, 0.0  ;;  %vm4676_vm3 = vcmask 1040384  }
 0x1fe   :  { %v1101_v41 = vsel %vm4676_vm3, %v1099_v16, %v1100_v38  ;;  %v1103_v47 = vsel %vm4676_vm3, %v1100_v38, %v1102_v44  ;;  %vm4683_vm3 = vnez %v4609_v62 }
 0x1ff   :  { %2581 = vmatpush.msk.msrb.mxu2 %vm4674_vm2, %v2785_v29  ;;  %2617 = vmatpush.msk.msra.mxu3 %vm3006_vm4, %v2785_v29 }
 0x200   :  { %2535 = vmatmul.msk.f32.gmra.mxu3 %vm4669_vm10, %v916_v2  ;;  %vm4678_vm10 = vmmov %vm4677_vm1 }
 0x201   :  { %2618 = vmatpush.msk.msra.mxu3 %vm3018_vm5, %v2785_v29 }
 0x203   :  { %2547 = vmatmul.msk.f32.gmra.mxu0 %vm4675_vm11, %v1239_v27  ;;  %2619 = vmatpush.msk.msra.mxu3 %vm3030_vm6, %v2785_v29  ;;  %vm3666_vm11 = vcmp.ge.s32.totalorder %v88_v43, 1 }
 0x204   :  { %2531 = vmatmul.msk.f32.gmra.mxu2 %vm4677_vm1, %v1101_v41  ;;  %v4680_v48 = vsel %vm3666_vm11, 4294967295, %v4679_v48  ;;  %vm4681_vm1 = vcmask 1046528   ;;  %v1125_v13 = vsel %vm3666_vm11, %v1103_v47, 0.0  ;;  %vm4688_vm11 = vmmov %vm4678_vm10 }
 0x205   :  { %2620 = vmatpush.msk.msra.mxu3 %vm4641_vm14, %v2785_v29  ;;  %v1220_v3 = vsel %vm4681_vm1, %v1217_v56, %v1219_v46  ;;  %vm4682_vm14 = vmmov %vm4678_vm10 }
 0x207   :  { %2621 = vmatpush.msk.msra.mxu3 %vm4658_vm7, %v2785_v29 }
 0x208   :  { %2536 = vmatmul.msk.f32.gmra.mxu3 %vm4678_vm10, %v917_v17 }
 0x209   :  { %2622 = vmatpush.msk.msra.mxu3 %vm4659_vm0, %v2785_v29  ;;  %vm4684_vm0 = vmmov %vm4681_vm1  ;;  %vm3686_vm1 = vcmp.lt.s32.totalorder %v95_v49, 15 }
 0x20a   :  { %v1225_v28 = vsel %vm4684_vm0, %v1219_v46, 0.0  ;;  %v4686_v51 = vsel %vm3686_vm1, 4294967295, %v4685_v51  ;;  %vm4689_vm0 = vcmask 1040384  }
 0x20b   :  { %2548 = vmatmul.msk.f32.gmra.mxu0 %vm4682_vm14, %v1220_v3  ;;  %2623 = vmatpush.msk.msra.mxu3 %vm4660_vm13, %v2785_v29  ;;  %vm4687_vm14 = vnez %v4613_v5  ;;  %v1241_v1 = vsel %vm3686_vm1, %v1225_v28, 0.0  ;;  %v1105_v10 = vsel %vm4689_vm0, %v1102_v44, %v1104_v35 }
 0x20c   :  { %2532 = vmatmul.msk.f32.gmra.mxu2 %vm4678_vm10, %v1125_v13 }
 0x20d   :  { %2624 = vmatpush.msk.msra.mxu3 %vm4683_vm3, %v2785_v29  ;;  %vm4690_vm3 = vmmov %vm4678_vm10 }
 0x20f   :  { %2625 = vmatpush.msk.msra.mxu3 %vm4687_vm14, %v2785_v29 }
 0x210   :  { %2537 = vmatmul.msk.f32.gmra.mxu3 %vm4688_vm11, %v918_v40  ;;  %vm4691_vm11 = vcmask 1046528  }
 0x211   :  { %2626 = vmatpush.msk.msra.mxu3 %vm4666_vm12, %v2785_v29 }
 0x213   :  { %2549 = vmatmul.msk.f32.gmra.mxu0 %vm4678_vm10, %v1241_v1  ;;  %2627 = vmatpush.msk.msra.mxu3 %vm4667_vm15, %v2785_v29 }
 0x214   :  { %2533 = vmatmul.msk.f32.gmra.mxu2 %vm4690_vm3, %v1105_v10  ;;  %vm4692_vm3 = vmmov %vm4691_vm11 }
 0x215   :  { %2628 = vmatpush.msk.msra.mxu3 %vm4670_vm8, %v2785_v29  ;;  %vm4693_vm10 = vmmov %vm4692_vm3 }
 0x216   :  { %vm4694_vm0 = vmmov %vm4692_vm3 }
 0x217   :  { %2629 = vmatpush.msk.msra.mxu3 %vm4674_vm2, %v2785_v29 }
 0x25b   :  { %v1037_v52 = vpop.f32.mrf.mxu2 }
 0x25c   :  { %v1063_v55 = vperm.slane %v1037_v52, 0 }
 0x25e   :  { %1065 = vrot.lane.b32.xlu1 %v1063_v55, %s2786_s1 }
 0x25f   :  { %v1060_v58 = vpop.f32.mrf.mxu3 }
 0x260   :  { %v1072_v59 = vperm.slane %v1060_v58, 0 }
 0x266   :  { %1074 = vrot.lane.b32.xlu1 %v1072_v59, %s2786_s1 }
 0x278   :  { %v1280_v60 = vpop.f32.mrf.mxu0 }
 0x27b   :  { %v1201_v61 = vpop.f32.mrf.mxu3 }
 0x27f   :  { %v1164_v63 = vpop.f32.mrf.mxu2 }
 0x280   :  { %v1283_v6 = vpop.f32.mrf.mxu0  ;;  %v1202_v16 = vadd.f32 %v1201_v61, %v1164_v63 }
 0x282   :  { %v3715_v9 = vadd.f32 %v1280_v60, %v1202_v16 }
 0x283   :  { %v1204_v0 = vpop.f32.mrf.mxu3 }
 0x284   :  { %v1305_v4 = vmul.f32 %v3715_v9, %v3715_v9 }
 0x287   :  { %v1167_v7 = vpop.f32.mrf.mxu2 }
 0x288   :  { %v1205_v17 = vadd.f32 %v1204_v0, %v1167_v7  ;;  %v1286_v12 = vpop.f32.mrf.mxu0 }
 0x28a   :  { %v3713_v22 = vadd.f32 %v1283_v6, %v1205_v17 }
 0x28b   :  { %v1207_v2 = vpop.f32.mrf.mxu3 }
 0x28c   :  { %v1306_v56 = vmul.f32 %v3713_v22, %v3713_v22  ;;  %v1296_v38 = vadd.f32 %v3713_v22, %v3715_v9 }
 0x28e   :  { %v1309_v43 = vadd.f32 %v1306_v56, %v1305_v4 }
 0x28f   :  { %v1170_v19 = vpop.f32.mrf.mxu2 }
 0x290   :  { %v1208_v23 = vadd.f32 %v1207_v2, %v1170_v19  ;;  %v1289_v41 = vpop.f32.mrf.mxu0 }
 0x292   :  { %v3717_v8 = vadd.f32 %v1286_v12, %v1208_v23 }
 0x293   :  { %v1210_v25 = vpop.f32.mrf.mxu3 }
 0x294   :  { %v1307_v40 = vmul.f32 %v3717_v8, %v3717_v8  ;;  %v1297_v44 = vadd.f32 %v1296_v38, %v3717_v8 }
 0x296   :  { %v1310_v47 = vadd.f32 %v1309_v43, %v1307_v40 }
 0x297   :  { %v1173_v32 = vpop.f32.mrf.mxu2 }
 0x298   :  { %v1211_v27 = vadd.f32 %v1210_v25, %v1173_v32 }
 0x29a   :  { %v3728_v46 = vadd.f32 %v1289_v41, %v1211_v27 }
 0x29c   :  { %v1298_v3 = vadd.f32 %v1297_v44, %v3728_v46  ;;  %v1308_v13 = vmul.f32 %v3728_v46, %v3728_v46 }
 0x29e   :  { %v1299_v49 = vrot.slane %v1298_v3, 4  ;;  %v1311_v28 = vadd.f32 %v1310_v47, %v1308_v13 }
 0x2a0   :  { %v1300_v35 = vadd.f32 %v1299_v49, %v1298_v3  ;;  %v1312_v1 = vrot.slane %v1311_v28, 4 }
 0x2a2   :  { %v1301_v10 = vrot.slane %v1300_v35, 2  ;;  %v1313_v52 = vadd.f32 %v1312_v1, %v1311_v28 }
 0x2a4   :  { %v1302_v55 = vadd.f32 %v1301_v10, %v1300_v35  ;;  %v1314_v58 = vrot.slane %v1313_v52, 2 }
 0x2a6   :  { %v1303_v59 = vrot.slane %v1302_v55, 1  ;;  %v1315_v60 = vadd.f32 %v1314_v58, %v1313_v52  ;;  %v2608_v58 = vld [vmem:[%s4510_s3 + $0xb0] sm:$0xff] }
 0x2a8   :  { %v1304_v61 = vadd.f32 %v1303_v59, %v1302_v55  ;;  %v1316_v63 = vrot.slane %v1315_v60, 1  ;;  %v2609_v55 = vld [vmem:[%s4510_s3 + $0xb8] sm:$0xff]  ;;  %v2607_v59 = vld [vmem:[%s4510_s3 + $0xa8] sm:$0xff] }
 0x2a9   :  { %1623 = vmatpush.msra.mxu2 %v2609_v55 }
 0x2aa   :  { %1334 = vmatmul.f32.vlgmr.msrb.gmra.mxu1 %v1304_v61  ;;  %v1317_v0 = vadd.f32 %v1316_v63, %v1315_v60  ;;  %v2606_v60 = vld [vmem:[%s4510_s3 + $0xa0] sm:$0xff]  ;;  %v2605_v61 = vld [vmem:[%s4510_s3 + $0x98] sm:$0xff] }
 0x2ab   :  { %1624 = vmatpush.msra.mxu2 %v2608_v58  ;;  %v1483_v63 = vld [vmem:[%s4510_s3 + $0x38] sm:$0xff] }
 0x2ac   :  { %1354 = vmatmul.f32.vlgmr.msrb.gmra.mxu2 %v1317_v0  ;;  %v2604_v0 = vld [vmem:[%s4510_s3 + $0x90] sm:$0xff]  ;;  %1504 = vmatpush.msra.mxu0 %v1483_v63 }
 0x2ad   :  { %1625 = vmatpush.msra.mxu2 %v2607_v59 }
 0x2af   :  { %1626 = vmatpush.msra.mxu2 %v2606_v60 }
 0x2b1   :  { %1627 = vmatpush.msra.mxu2 %v2605_v61  ;;  %v1374_v61 = vld [vmem:[%s4511_s10] sm:$0x1] }
 0x2b3   :  { %1628 = vmatpush.msra.mxu2 %v2604_v0 }
 0x2d0   :  { %v1066_v6 = vpop.permute.xlu1 %1065 }
 0x2d1   :  { %v1068_v7 = vmul.f32 %v1066_v6, %v3160_v14  ;;  %v1069_v2 = vmul.f32 %v1066_v6, %v3254_v31  ;;  %v1070_v17 = vmul.f32 %v1066_v6, %v3292_v37  ;;  %v1071_v56 = vmul.f32 %v1066_v6, %v3349_v11  ;;  %v1482_v6 = vld [vmem:[%s4510_s3 + $0x30] sm:$0xff] }
 0x2d2   :  { %1505 = vmatpush.msra.mxu0 %v1482_v6 }
 0x2d8   :  { %v1075_v12 = vpop.permute.xlu1 %1074 }
 0x2d9   :  { %v1078_v19 = vadd.f32 %v1075_v12, %v1069_v2  ;;  %v1079_v16 = vadd.f32 %v1075_v12, %v1070_v17  ;;  %v1077_v23 = vadd.f32 %v1075_v12, %v1068_v7  ;;  %v1080_v38 = vadd.f32 %v1075_v12, %v1071_v56  ;;  %v2603_v7 = vld [vmem:[%s4510_s3 + $0x88] sm:$0xff]  ;;  %v2602_v17 = vld [vmem:[%s4510_s3 + $0x80] sm:$0xff] }
 0x2da   :  { %1629 = vmatpush.msra.mxu2 %v2603_v7  ;;  %v1481_v2 = vld [vmem:[%s4510_s3 + $0x28] sm:$0xff]  ;;  %v1480_v12 = vld [vmem:[%s4510_s3 + $0x20] sm:$0xff] }
 0x2db   :  { %v1082_v25 = vmax.f32 %v1078_v19, 0.0  ;;  %v1083_v32 = vmax.f32 %v1079_v16, 0.0  ;;  %v1081_v4 = vmax.f32 %v1077_v23, 0.0  ;;  %v1084_v37 = vmax.f32 %v1080_v38, 0.0  ;;  %1506 = vmatpush.msra.mxu0 %v1481_v2  ;;  %v1479_v19 = vld [vmem:[%s4510_s3 + $0x18] sm:$0xff]  ;;  %v1478_v16 = vld [vmem:[%s4510_s3 + $0x10] sm:$0xff] }
 0x2dc   :  { %1630 = vmatpush.msra.mxu2 %v2602_v17  ;;  %v1477_v23 = vld [vmem:[%s4510_s3 + $0x8] sm:$0xff]  ;;  %v1476_v56 = vld [vmem:[%s4510_s3] sm:$0xff] }
 0x2dd   :  { %1525 = vrot.lane.b32.xlu0 %v1081_v4, %s2786_s1  ;;  %v1570_v40 = vrot.slane %v1081_v4, 1  ;;  %v1571_v27 = vrot.slane %v1082_v25, 1  ;;  %v1573_v41 = vrot.slane %v1083_v32, 1  ;;  %v1575_v11 = vrot.slane %v1084_v37, 1  ;;  %1507 = vmatpush.msra.mxu0 %v1480_v12  ;;  %v2591_v38 = vld [vmem:[%s4510_s3 + $0x68] sm:$0xff] }
 0x2de   :  { %v1452_v44 = vrot.slane %v1081_v4, 7  ;;  %v1453_v3 = vrot.slane %v1082_v25, 7  ;;  %v1455_v35 = vrot.slane %v1083_v32, 7  ;;  %v1457_v10 = vrot.slane %v1084_v37, 7  ;;  %v2592_v4 = vld [vmem:[%s4510_s3 + $0x70] sm:$0xff] }
 0x2df   :  { %v1572_v14 = vsel %vm4691_vm11, %v1570_v40, %v1571_v27  ;;  %v1574_v31 = vsel %vm4692_vm3, %v1571_v27, %v1573_v41  ;;  %v1576_v47 = vsel %vm4693_vm10, %v1573_v41, %v1575_v11  ;;  %v1581_v13 = vsel %vm4694_vm0, %v1575_v11, 0.0  ;;  %1508 = vmatpush.msra.mxu0 %v1479_v19  ;;  %v2590_v27 = vld [vmem:[%s4510_s3 + $0x60] sm:$0xff] }
 0x2e0   :  { %1599 = vrot.lane.b32.xlu2 %v1572_v14, %s2786_s1  ;;  %v1583_v43 = vsel %vm3635_vm9, %v1574_v31, 0.0  ;;  %vm4695_vm11 = vcmask 1040384   ;;  %v1585_v28 = vsel %vm3686_vm1, %v1581_v13, 0.0  ;;  %vm4698_vm0 = vnez %v4585_v26  ;;  %v2589_v14 = vld [vmem:[%s4510_s3 + $0x58] sm:$0xff]  ;;  %v1376_v7 = vld [vmem:[%s4512_s11] sm:$0x1] }
 0x2e1   :  { %1601 = vrot.lane.b32.xlu1 %v1583_v43, %s2786_s1  ;;  %v1454_v49 = vsel %vm4695_vm11, %v1452_v44, %v1453_v3  ;;  %vm4696_vm3 = vmmov %vm4695_vm11  ;;  %1509 = vmatpush.msra.mxu0 %v1478_v16  ;;  %vm4699_vm11 = vnez %v4587_v30  ;;  %v2588_v43 = vld [vmem:[%s4510_s3 + $0x50] sm:$0xff]  ;;  %vm4702_vm1 = vnez %v4603_v53  ;;  %vm4703_vm9 = vcmask 523264  }
 0x2e2   :  { %v1456_v1 = vsel %vm4696_vm3, %v1453_v3, %v1455_v35  ;;  %vm4697_vm10 = vmmov %vm4696_vm3  ;;  %vm4700_vm3 = vnez %v4589_v33  ;;  %v2586_v3 = vld [vmem:[%s4510_s3 + $0x40] sm:$0xff] }
 0x2e3   :  { %v1458_v52 = vsel %vm4697_vm10, %v1455_v35, %v1457_v10  ;;  %1510 = vmatpush.msra.mxu0 %v1477_v23  ;;  %vm4701_vm10 = vnez %v4597_v45 }
 0x2e5   :  { %1527 = vrot.lane.b32.xlu0 %v1082_v25, %s2786_s1  ;;  %1511 = vmatpush.msra.mxu0 %v1476_v56  ;;  %v2593_v25 = vld [vmem:[%s4510_s3 + $0x78] sm:$0xff] }
 0x2e6   :  { %1549 = vmatpush.msrb.mxu1 %v2593_v25 }
 0x2e7   :  { %2630 = vmatpush.msk.msrb.mxu0 %vm4698_vm0, %v2785_v29 }
 0x2e8   :  { %1459 = vrot.lane.b32.xlu2 %v1452_v44, %s2786_s1  ;;  %1550 = vmatpush.msrb.mxu1 %v2592_v4  ;;  %v2587_v44 = vld [vmem:[%s4510_s3 + $0x48] sm:$0xff] }
 0x2e9   :  { %1603 = vrot.lane.b32.xlu1 %v1576_v47, %s2786_s1  ;;  %2631 = vmatpush.msk.msrb.mxu0 %vm4699_vm11, %v2785_v29 }
 0x2ea   :  { %1551 = vmatpush.msrb.mxu1 %v2591_v38 }
 0x2eb   :  { %2632 = vmatpush.msk.msrb.mxu0 %vm4700_vm3, %v2785_v29 }
 0x2ec   :  { %1552 = vmatpush.msrb.mxu1 %v2590_v27 }
 0x2ed   :  { %1529 = vrot.lane.b32.xlu0 %v1083_v32, %s2786_s1  ;;  %2633 = vmatpush.msk.msrb.mxu0 %vm3006_vm4, %v2785_v29 }
 0x2ee   :  { %1553 = vmatpush.msrb.mxu1 %v2589_v14 }
 0x2ef   :  { %2634 = vmatpush.msk.msrb.mxu0 %vm3018_vm5, %v2785_v29 }
 0x2f0   :  { %1461 = vrot.lane.b32.xlu2 %v1454_v49, %s2786_s1  ;;  %1554 = vmatpush.msrb.mxu1 %v2588_v43 }
 0x2f1   :  { %1605 = vrot.lane.b32.xlu1 %v1585_v28, %s2786_s1  ;;  %2635 = vmatpush.msk.msrb.mxu0 %vm3030_vm6, %v2785_v29 }
 0x2f2   :  { %1555 = vmatpush.msrb.mxu1 %v2587_v44 }
 0x2f3   :  { %2636 = vmatpush.msk.msrb.mxu0 %vm4701_vm10, %v2785_v29  ;;  %vm4704_vm10 = vnez %v4609_v62 }
 0x2f4   :  { %1556 = vmatpush.msrb.mxu1 %v2586_v3 }
 0x2f5   :  { %1531 = vrot.lane.b32.xlu0 %v1084_v37, %s2786_s1  ;;  %2637 = vmatpush.msk.msrb.mxu0 %vm4658_vm7, %v2785_v29 }
 0x2f7   :  { %2638 = vmatpush.msk.msrb.mxu0 %vm4702_vm1, %v2785_v29 }
 0x2f8   :  { %1463 = vrot.lane.b32.xlu2 %v1456_v1, %s2786_s1 }
 0x2f9   :  { %2639 = vmatpush.msk.msrb.mxu0 %vm4660_vm13, %v2785_v29  ;;  %vm4707_vm13 = vcmask 523264  }
 0x2fb   :  { %2640 = vmatpush.msk.msrb.mxu0 %vm4704_vm10, %v2785_v29 }
 0x2fd   :  { %2641 = vmatpush.msk.msrb.mxu0 %vm4687_vm14, %v2785_v29  ;;  %vm4706_vm14 = vnez %v4665_v21 }
 0x2ff   :  { %2642 = vmatpush.msk.msrb.mxu0 %vm4666_vm12, %v2785_v29 }
 0x300   :  { %1465 = vrot.lane.b32.xlu2 %v1458_v52, %s2786_s1 }
 0x301   :  { %2643 = vmatpush.msk.msrb.mxu0 %vm4667_vm15, %v2785_v29 }
 0x303   :  { %2644 = vmatpush.msk.msrb.mxu0 %vm4670_vm8, %v2785_v29 }
 0x305   :  { %2645 = vmatpush.msk.msrb.mxu0 %vm4674_vm2, %v2785_v29 }
 0x327   :  { %v1335_v32 = vpop.f32.mrf.mxu1 }
 0x328   :  { %v1358_v40 = vmul.f32 0.001953125, %v1335_v32 }
 0x32a   :  { %v1360_v31 = vmul.f32 %v1358_v40, %v1358_v40 }
 0x32f   :  { %v1355_v41 = vpop.f32.mrf.mxu2 }
 0x330   :  { %v1359_v37 = vmul.f32 0.001953125, %v1355_v41 }
 0x332   :  { %v1361_v11 = vsub.f32 %v1359_v37, %v1360_v31 }
 0x334   :  { %v1362_v47 = vmax.f32 %v1361_v11, 0.0 }
 0x336   :  { %v1363_v13 = vadd.f32 0.001, %v1362_v47 }
 0x338   :  { %2773 = vrsqrt.f32 %v1363_v13  ;;  %vm1370_vm15 = vweird.f32 %v1363_v13 }
 0x33a   :  { %v1600_v49 = vpop.permute.xlu2 %1599 }
 0x33b   :  { %2610 = vmatmul.msk.f32.vlgmr.msra.gmra.mxu2 %vm4703_vm9, %v1600_v49  ;;  %vm4705_vm9 = vcmask 1040384  }
 0x33e   :  { %v2774_v28 = vpop.eup %2773 }
 0x33f   :  { %v1365_v35 = vmul.f32 %v2774_v28, %v1363_v13  ;;  %vm1371_vm10 = vweird.f32 %v2774_v28 }
 0x340   :  { %vm1372_vm8 = vmor %vm1370_vm15, %vm1371_vm10 }
 0x341   :  { %v1366_v1 = vmul.f32 %v2774_v28, %v1365_v35 }
 0x342   :  { %v1460_v10 = vpop.permute.xlu2 %1459 }
 0x343   :  { %v1367_v52 = vmul.f32 0.5, %v1366_v1  ;;  %v1471_v55 = vsel %vm4705_vm9, 0.0, %v1460_v10  ;;  %vm4708_vm9 = vnez %v4651_v54 }
 0x344   :  { %v1472_v58 = vsel %vm4706_vm14, %v1471_v55, 0.0  ;;  %vm4710_vm14 = vcmask 523264  }
 0x345   :  { %v1368_v59 = vsub.f32 1.5, %v1367_v52  ;;  %2594 = vmatmul.msk.f32.vlgmr.msra.gmra.mxu0 %vm4707_vm13, %v1472_v58  ;;  %vm4709_vm13 = vcmask 64512   ;;  %vm4713_vm15 = vmmov %vm4710_vm14 }
 0x346   :  { %2648 = vmatpush.msk.msra.mxu0 %vm4708_vm9, %v2785_v29  ;;  %vm4711_vm2 = vmmov %vm4709_vm13 }
 0x347   :  { %v1369_v60 = vmul.f32 %v2774_v28, %v1368_v59  ;;  %vm4714_vm10 = vmmov %vm4710_vm14 }
 0x349   :  { %v1373_v63 = vsel %vm1372_vm8, %v2774_v28, %v1369_v60  ;;  %vm4712_vm8 = vnez %v4680_v48 }
 0x34a   :  { %v1462_v0 = vpop.permute.xlu2 %1461  ;;  %v1375_v6 = vmul.f32 %v1374_v61, %v1373_v63 }
 0x34c   :  { %2583 = vmatmul.msk.f32.vlgmr.msra.gmra.mxu1 %vm4709_vm13, %v1375_v6  ;;  %v1377_v2 = vmul.f32 %v1375_v6, %v1358_v40  ;;  %vm4715_vm13 = vmmov %vm4714_vm10 }
 0x34d   :  { %2595 = vmatmul.msk.f32.gmra.mxu0 %vm4710_vm14, %v1462_v0  ;;  %vm4716_vm14 = vmmov %vm4714_vm10 }
 0x34e   :  { %v1378_v17 = vsub.f32 %v1376_v7, %v1377_v2 }
 0x34f   :  { %v1526_v12 = vpop.permute.xlu0 %1525 }
 0x350   :  { %2585 = vmatmul.msk.f32.vlgmr.msrb.gmra.mxu3 %vm4711_vm2, %v1378_v17  ;;  %vm4717_vm2 = vmmov %vm4714_vm10 }
 0x351   :  { %2646 = vmatpush.msk.msrb.mxu3 %vm4708_vm9, %v2785_v29  ;;  %vm4718_vm12 = vmmov %vm4717_vm2 }
 0x352   :  { %v1464_v19 = vpop.permute.xlu2 %1463  ;;  %vm4719_vm9 = vmmov %vm4717_vm2 }
 0x353   :  { %v1474_v16 = vsel %vm4712_vm8, %v1464_v19, 0.0  ;;  %v1602_v23 = vpop.permute.xlu1 %1601  ;;  %vm4720_vm8 = vmmov %vm4717_vm2 }
 0x354   :  { %2611 = vmatmul.msk.f32.gmra.mxu2 %vm4713_vm15, %v1602_v23  ;;  %2598 = vmatmul.msk.f32.vlgmr.msrb.gmra.mxu1 %vm4714_vm10, %v1526_v12  ;;  %vm4721_vm15 = vmmov %vm4717_vm2  ;;  %vm4725_vm10 = vnez %v4613_v5 }
 0x355   :  { %2596 = vmatmul.msk.f32.gmra.mxu0 %vm4715_vm13, %v1474_v16  ;;  %vm4726_vm13 = vnez %v4617_v15 }
 0x357   :  { %v1528_v56 = vpop.permute.xlu0 %1527 }
 0x35a   :  { %v1466_v32 = vpop.permute.xlu2 %1465 }
 0x35b   :  { %v1604_v25 = vpop.permute.xlu1 %1603 }
 0x35c   :  { %2612 = vmatmul.msk.f32.gmra.mxu2 %vm4716_vm14, %v1604_v25  ;;  %2599 = vmatmul.msk.f32.gmra.mxu1 %vm4717_vm2, %v1528_v56  ;;  %vm4727_vm14 = vnez %v4621_v18  ;;  %vm4728_vm2 = vnez %v4625_v20 }
 0x35d   :  { %2597 = vmatmul.msk.f32.gmra.mxu0 %vm4718_vm12, %v1466_v32  ;;  %vm4722_vm12 = vnez %v4597_v45 }
 0x35f   :  { %v1530_v4 = vpop.permute.xlu0 %1529 }
 0x363   :  { %v1606_v38 = vpop.permute.xlu1 %1605 }
 0x364   :  { %2613 = vmatmul.msk.f32.gmra.mxu2 %vm4719_vm9, %v1606_v38  ;;  %2600 = vmatmul.msk.f32.gmra.mxu1 %vm4720_vm8, %v1530_v4  ;;  %vm4723_vm9 = vnez %v4605_v57  ;;  %vm4724_vm8 = vnez %v4609_v62 }
 0x367   :  { %v1532_v40 = vpop.permute.xlu0 %1531 }
 0x36c   :  { %2601 = vmatmul.msk.f32.gmra.mxu1 %vm4721_vm15, %v1532_v40  ;;  %vm4729_vm15 = vnez %v4629_v24 }
 0x3be   :  { %v1632_v14 = vpop.f32.mrf.mxu2 }
 0x3c2   :  { %v1513_v41 = vpop.f32.mrf.mxu0 }
 0x3c9   :  { %v1399_v27 = vpop.f32.mrf.mxu1 }
 0x3ca   :  { %v1425_v31 = vperm.slane %v1399_v27, 0  ;;  %v1516_v13 = vpop.f32.mrf.mxu0 }
 0x3cc   :  { %v1426_v11 = vmul.f32 %v1425_v31, %v3715_v9  ;;  %v1427_v44 = vmul.f32 %v1425_v31, %v3713_v22  ;;  %v1428_v47 = vmul.f32 %v1425_v31, %v3717_v8  ;;  %v1429_v49 = vmul.f32 %v1425_v31, %v3728_v46 }
 0x3d1   :  { %v1558_v37 = vpop.f32.mrf.mxu1 }
 0x3d2   :  { %v1519_v22 = vpop.f32.mrf.mxu0  ;;  %v1559_v63 = vadd.f32 %v1558_v37, %v1513_v41 }
 0x3d3   :  { %v1422_v43 = vpop.f32.mrf.mxu3 }
 0x3d4   :  { %v1430_v3 = vperm.slane %v1422_v43, 0  ;;  %v3929_v7 = vadd.f32 %v1632_v14, %v1559_v63 }
 0x3d6   :  { %v1431_v28 = vadd.f32 %v1430_v3, %v1426_v11  ;;  %v1432_v35 = vadd.f32 %v1430_v3, %v1427_v44  ;;  %v1433_v1 = vadd.f32 %v1430_v3, %v1428_v47  ;;  %v1434_v10 = vadd.f32 %v1430_v3, %v1429_v49 }
 0x3d7   :  { %v1635_v52 = vpop.f32.mrf.mxu2  ;;  %v1657_v16 = vmul.f32 %v3929_v7, %v3929_v7 }
 0x3d8   :  { %v1435_v55 = vmax.f32 %v1431_v28, 0.0  ;;  %v1436_v58 = vmax.f32 %v1432_v35, 0.0  ;;  %v1437_v59 = vmax.f32 %v1433_v1, 0.0  ;;  %v1438_v60 = vmax.f32 %v1434_v10, 0.0 }
 0x3d9   :  { %v1561_v61 = vpop.f32.mrf.mxu1 }
 0x3da   :  { %2392 = vst [vmem:[%s4509_s20 + $0x8] sm:$0xff] %v1435_v55  ;;  %v1562_v9 = vadd.f32 %v1561_v61, %v1516_v13  ;;  %v1522_v12 = vpop.f32.mrf.mxu0  ;;  %v2665_v61 = vld [vmem:[%s4513_s4 + $0xf8] sm:$0xff] }
 0x3db   :  { %2393 = vst [vmem:[%s4509_s20 + $0x28] sm:$0xff] %v1436_v58  ;;  %1873 = vmatpush.msrb.mxu2 %v2665_v61  ;;  %v1726_v61 = vld [vmem:[%s4514_s14] sm:$0x1] }
 0x3dc   :  { %2394 = vst [vmem:[%s4509_s20 + $0x48] sm:$0xff] %v1437_v59  ;;  %v3927_v6 = vadd.f32 %v1635_v52, %v1562_v9  ;;  %v1843_v9 = vld [vmem:[%s4513_s4 + $0x78] sm:$0xff] }
 0x3dd   :  { %2395 = vst [vmem:[%s4509_s20 + $0x68] sm:$0xff] %v1438_v60  ;;  %1844 = vmatpush.msra.mxu1 %v1843_v9 }
 0x3de   :  { %v1658_v17 = vmul.f32 %v3927_v6, %v3927_v6  ;;  %v1648_v23 = vadd.f32 %v3927_v6, %v3929_v7 }
 0x3df   :  { %v1638_v8 = vpop.f32.mrf.mxu2 }
 0x3e0   :  { %v1661_v4 = vadd.f32 %v1658_v17, %v1657_v16  ;;  %v2682_v17 = vld [vmem:[%s4513_s4 + $0x170] sm:$0xff] }
 0x3e1   :  { %v1564_v46 = vpop.f32.mrf.mxu1 }
 0x3e2   :  { %v1565_v0 = vadd.f32 %v1564_v46, %v1519_v22  ;;  %v2664_v22 = vld [vmem:[%s4513_s4 + $0xf0] sm:$0xff] }
 0x3e3   :  { %v1842_v46 = vld [vmem:[%s4513_s4 + $0x70] sm:$0xff]  ;;  %1874 = vmatpush.msrb.mxu2 %v2664_v22 }
 0x3e4   :  { %v3931_v2 = vadd.f32 %v1638_v8, %v1565_v0  ;;  %v2683_v8 = vld [vmem:[%s4513_s4 + $0x178] sm:$0xff]  ;;  %v2663_v0 = vld [vmem:[%s4513_s4 + $0xe8] sm:$0xff]  ;;  %1845 = vmatpush.msra.mxu1 %v1842_v46 }
 0x3e5   :  { %1875 = vmatpush.msrb.mxu2 %v2663_v0  ;;  %v4098_v0 = vld [vmem:[%s4583_s26] sm:$0xff] }
 0x3e6   :  { %v1659_v56 = vmul.f32 %v3931_v2, %v3931_v2  ;;  %v1649_v38 = vadd.f32 %v1648_v23, %v3931_v2  ;;  %v2662_v23 = vld [vmem:[%s4513_s4 + $0xe0] sm:$0xff]  ;;  %2111 = vrot.lane.b32.xlu1 %v4098_v0, %s2788_s29  ;;  %2127 = vrot.lane.b32.xlu2 %v4098_v0, %s2789_s13 }
 0x3e7   :  { %v1641_v32 = vpop.f32.mrf.mxu2  ;;  %1876 = vmatpush.msrb.mxu2 %v2662_v23  ;;  %v2674_v23 = vld [vmem:[%s4513_s4 + $0x130] sm:$0xff] }
 0x3e8   :  { %v1662_v27 = vadd.f32 %v1661_v4, %v1659_v56  ;;  %v1840_v56 = vld [vmem:[%s4513_s4 + $0x60] sm:$0xff]  ;;  %v2661_v4 = vld [vmem:[%s4513_s4 + $0xd8] sm:$0xff] }
 0x3e9   :  { %v1567_v19 = vpop.f32.mrf.mxu1  ;;  %1877 = vmatpush.msrb.mxu2 %v2661_v4  ;;  %v2653_v4 = vld [vmem:[%s4513_s4 + $0x98] sm:$0xff] }
 0x3ea   :  { %v1568_v25 = vadd.f32 %v1567_v19, %v1522_v12  ;;  %v1841_v12 = vld [vmem:[%s4513_s4 + $0x68] sm:$0xff] }
 0x3eb   :  { %v2681_v19 = vld [vmem:[%s4513_s4 + $0x168] sm:$0xff]  ;;  %1846 = vmatpush.msra.mxu1 %v1841_v12  ;;  %v4119_v12 = vld [vmem:[%s4583_s26 + $0x18] sm:$0xff] }
 0x3ec   :  { %v3942_v40 = vadd.f32 %v1641_v32, %v1568_v25  ;;  %v2680_v25 = vld [vmem:[%s4513_s4 + $0x160] sm:$0xff] }
 0x3ed   :  { %1847 = vmatpush.msra.mxu1 %v1840_v56  ;;  %v2654_v56 = vld [vmem:[%s4513_s4 + $0xa0] sm:$0xff] }
 0x3ee   :  { %v1650_v41 = vadd.f32 %v1649_v38, %v3942_v40  ;;  %v1660_v14 = vmul.f32 %v3942_v40, %v3942_v40  ;;  %v1839_v38 = vld [vmem:[%s4513_s4 + $0x58] sm:$0xff] }
 0x3ef   :  { %1848 = vmatpush.msra.mxu1 %v1839_v38  ;;  %v1832_v38 = vld [vmem:[%s4513_s4 + $0x20] sm:$0xff] }
 0x3f0   :  { %v1651_v31 = vrot.slane %v1650_v41, 4  ;;  %v1663_v37 = vadd.f32 %v1662_v27, %v1660_v14  ;;  %v2679_v27 = vld [vmem:[%s4513_s4 + $0x158] sm:$0xff]  ;;  %v1838_v14 = vld [vmem:[%s4513_s4 + $0x50] sm:$0xff] }
 0x3f1   :  { %1849 = vmatpush.msra.mxu1 %v1838_v14  ;;  %v1831_v14 = vld [vmem:[%s4513_s4 + $0x18] sm:$0xff] }
 0x3f2   :  { %v1652_v43 = vadd.f32 %v1651_v31, %v1650_v41  ;;  %v1664_v11 = vrot.slane %v1663_v37, 4  ;;  %v2660_v41 = vld [vmem:[%s4513_s4 + $0xd0] sm:$0xff] }
 0x3f3   :  { %v2678_v31 = vld [vmem:[%s4513_s4 + $0x150] sm:$0xff]  ;;  %1878 = vmatpush.msrb.mxu2 %v2660_v41 }
 0x3f4   :  { %v1653_v44 = vrot.slane %v1652_v43, 2  ;;  %v1665_v47 = vadd.f32 %v1664_v11, %v1663_v37  ;;  %v2659_v37 = vld [vmem:[%s4513_s4 + $0xc8] sm:$0xff]  ;;  %v2652_v41 = vld [vmem:[%s4513_s4 + $0x90] sm:$0xff] }
 0x3f5   :  { %v2677_v11 = vld [vmem:[%s4513_s4 + $0x148] sm:$0xff]  ;;  %1879 = vmatpush.msrb.mxu2 %v2659_v37 }
 0x3f6   :  { %v1654_v3 = vadd.f32 %v1653_v44, %v1652_v43  ;;  %v1666_v13 = vrot.slane %v1665_v47, 2  ;;  %v1837_v43 = vld [vmem:[%s4513_s4 + $0x48] sm:$0xff]  ;;  %v2658_v44 = vld [vmem:[%s4513_s4 + $0xc0] sm:$0xff] }
 0x3f7   :  { %1850 = vmatpush.msra.mxu1 %v1837_v43  ;;  %1880 = vmatpush.msrb.mxu2 %v2658_v44  ;;  %v2651_v37 = vld [vmem:[%s4513_s4 + $0x88] sm:$0xff]  ;;  %v1830_v43 = vld [vmem:[%s4513_s4 + $0x10] sm:$0xff]  ;;  %v2650_v44 = vld [vmem:[%s4513_s4 + $0x80] sm:$0xff] }
 0x3f8   :  { %v1655_v49 = vrot.slane %v1654_v3, 1  ;;  %v1667_v28 = vadd.f32 %v1666_v13, %v1665_v47  ;;  %v1836_v47 = vld [vmem:[%s4513_s4 + $0x40] sm:$0xff] }
 0x3f9   :  { %1851 = vmatpush.msra.mxu1 %v1836_v47  ;;  %v1829_v47 = vld [vmem:[%s4513_s4 + $0x8] sm:$0xff] }
 0x3fa   :  { %v1656_v35 = vadd.f32 %v1655_v49, %v1654_v3  ;;  %v1668_v1 = vrot.slane %v1667_v28, 1  ;;  %v2676_v3 = vld [vmem:[%s4513_s4 + $0x140] sm:$0xff]  ;;  %v2657_v49 = vld [vmem:[%s4513_s4 + $0xb8] sm:$0xff] }
 0x3fb   :  { %1881 = vmatpush.msrb.mxu2 %v2657_v49  ;;  %v2668_v49 = vld [vmem:[%s4513_s4 + $0x100] sm:$0xff] }
 0x3fc   :  { %1686 = vmatmul.f32.vlgmr.msra.gmra.mxu3 %v1656_v35  ;;  %v1669_v10 = vadd.f32 %v1668_v1, %v1667_v28  ;;  %v1835_v28 = vld [vmem:[%s4513_s4 + $0x38] sm:$0xff] }
 0x3fd   :  { %1935 = vmatpush.msra.mxu3 %v2683_v8  ;;  %v2675_v1 = vld [vmem:[%s4513_s4 + $0x138] sm:$0xff]  ;;  %1852 = vmatpush.msra.mxu1 %v1835_v28  ;;  %v1728_v8 = vld [vmem:[%s4515_s15] sm:$0x1] }
 0x3fe   :  { %1706 = vmatmul.f32.vlgmr.msrb.gmra.mxu0 %v1669_v10  ;;  %v2656_v10 = vld [vmem:[%s4513_s4 + $0xb0] sm:$0xff] }
 0x3ff   :  { %2686 = vmatpush.msk.msrb.mxu0 %vm4698_vm0, %v2785_v29  ;;  %1936 = vmatpush.msra.mxu3 %v2682_v17  ;;  %v4112_v17 = vld [vmem:[%s4583_s26 + $0x10] sm:$0xff] }
 0x400   :  { %1882 = vmatpush.msrb.mxu2 %v2656_v10  ;;  %2115 = vrot.lane.b32.xlu2 %v4112_v17, %s2788_s29 }
 0x401   :  { %2687 = vmatpush.msk.msrb.mxu0 %vm4699_vm11, %v2785_v29  ;;  %1937 = vmatpush.msra.mxu3 %v2681_v19  ;;  %v2655_v19 = vld [vmem:[%s4513_s4 + $0xa8] sm:$0xff] }
 0x402   :  { %1883 = vmatpush.msrb.mxu2 %v2655_v19 }
 0x403   :  { %2688 = vmatpush.msk.msrb.mxu0 %vm4700_vm3, %v2785_v29  ;;  %1938 = vmatpush.msra.mxu3 %v2680_v25  ;;  %v1833_v25 = vld [vmem:[%s4513_s4 + $0x28] sm:$0xff] }
 0x404   :  { %1884 = vmatpush.msrb.mxu2 %v2654_v56 }
 0x405   :  { %2689 = vmatpush.msk.msrb.mxu0 %vm3006_vm4, %v2785_v29  ;;  %1939 = vmatpush.msra.mxu3 %v2679_v27  ;;  %v2672_v27 = vld [vmem:[%s4513_s4 + $0x120] sm:$0xff] }
 0x406   :  { %1885 = vmatpush.msrb.mxu2 %v2653_v4 }
 0x407   :  { %2690 = vmatpush.msk.msrb.mxu0 %vm3018_vm5, %v2785_v29  ;;  %1940 = vmatpush.msra.mxu3 %v2678_v31  ;;  %v2671_v31 = vld [vmem:[%s4513_s4 + $0x118] sm:$0xff] }
 0x408   :  { %2133 = vrot.lane.b32.xlu2 %v4119_v12, %s2789_s13  ;;  %1886 = vmatpush.msrb.mxu2 %v2652_v41  ;;  %v2199_v41 = vld [vmem:[%s4516_s5 + $0x18] sm:$0xff] }
 0x409   :  { %2691 = vmatpush.msk.msrb.mxu0 %vm3030_vm6, %v2785_v29  ;;  %1941 = vmatpush.msra.mxu3 %v2677_v11  ;;  %v2670_v11 = vld [vmem:[%s4513_s4 + $0x110] sm:$0xff] }
 0x40a   :  { %1887 = vmatpush.msrb.mxu2 %v2651_v37 }
 0x40b   :  { %2692 = vmatpush.msk.msrb.mxu0 %vm4722_vm12, %v2785_v29  ;;  %1942 = vmatpush.msra.mxu3 %v2676_v3  ;;  %v2669_v3 = vld [vmem:[%s4513_s4 + $0x108] sm:$0xff] }
 0x40c   :  { %1888 = vmatpush.msrb.mxu2 %v2650_v44 }
 0x40d   :  { %2693 = vmatpush.msk.msrb.mxu0 %vm4658_vm7, %v2785_v29  ;;  %1943 = vmatpush.msra.mxu3 %v2675_v1 }
 0x40f   :  { %2694 = vmatpush.msk.msrb.mxu0 %vm4702_vm1, %v2785_v29  ;;  %1944 = vmatpush.msra.mxu3 %v2674_v23 }
 0x411   :  { %2695 = vmatpush.msk.msrb.mxu0 %vm4723_vm9, %v2785_v29 }
 0x413   :  { %2696 = vmatpush.msk.msrb.mxu0 %vm4724_vm8, %v2785_v29  ;;  %vm4732_vm8 = vnez %v4651_v54 }
 0x414   :  { %2718 = vmatpush.msk.msra.mxu2 %vm4732_vm8, %v2785_v29 }
 0x415   :  { %2697 = vmatpush.msk.msrb.mxu0 %vm4725_vm10, %v2785_v29 }
 0x417   :  { %2698 = vmatpush.msk.msrb.mxu0 %vm4726_vm13, %v2785_v29  ;;  %vm4730_vm13 = vcmask 64512  }
 0x418   :  { %vm4731_vm10 = vmmov %vm4730_vm13 }
 0x419   :  { %2699 = vmatpush.msk.msrb.mxu0 %vm4727_vm14, %v2785_v29 }
 0x41b   :  { %2700 = vmatpush.msk.msrb.mxu0 %vm4728_vm2, %v2785_v29 }
 0x41d   :  { %2701 = vmatpush.msk.msrb.mxu0 %vm4729_vm15, %v2785_v29 }
 0x47b   :  { %v1707_v52 = vpop.f32.mrf.mxu0 }
 0x47c   :  { %v1711_v59 = vmul.f32 0.001953125, %v1707_v52 }
 0x47f   :  { %v1687_v55 = vpop.f32.mrf.mxu3 }
 0x480   :  { %v3995_v58 = vmul.f32 0.001953125, %v1687_v55 }
 0x482   :  { %v1712_v60 = vmul.f32 %v3995_v58, %v3995_v58 }
 0x484   :  { %v1713_v63 = vsub.f32 %v1711_v59, %v1712_v60 }
 0x486   :  { %v1714_v16 = vmax.f32 %v1713_v63, 0.0 }
 0x488   :  { %v1715_v32 = vadd.f32 0.001, %v1714_v16  ;;  %v1834_v16 = vld [vmem:[%s4513_s4 + $0x30] sm:$0xff] }
 0x489   :  { %1853 = vmatpush.msra.mxu1 %v1834_v16 }
 0x48a   :  { %2775 = vrsqrt.f32 %v1715_v32  ;;  %vm1722_vm2 = vweird.f32 %v1715_v32 }
 0x48b   :  { %1854 = vmatpush.msra.mxu1 %v1833_v25 }
 0x48d   :  { %1855 = vmatpush.msra.mxu1 %v1832_v38  ;;  %v2200_v38 = vld [vmem:[%s4516_s5 + $0x20] sm:$0xff] }
 0x48f   :  { %1856 = vmatpush.msra.mxu1 %v1831_v14  ;;  %v2198_v14 = vld [vmem:[%s4516_s5 + $0x10] sm:$0xff] }
 0x490   :  { %v2776_v13 = vpop.eup %2775 }
 0x491   :  { %v1717_v35 = vmul.f32 %v2776_v13, %v1715_v32  ;;  %vm1723_vm15 = vweird.f32 %v2776_v13  ;;  %v2673_v32 = vld [vmem:[%s4513_s4 + $0x128] sm:$0xff]  ;;  %1857 = vmatpush.msra.mxu1 %v1830_v43 }
 0x492   :  { %vm1724_vm14 = vmor %vm1722_vm2, %vm1723_vm15  ;;  %1945 = vmatpush.msra.mxu3 %v2673_v32  ;;  %vm4736_vm2 = vnez %v4621_v18  ;;  %vm4737_vm15 = vcmask 1040384   ;;  %v2197_v43 = vld [vmem:[%s4516_s5 + $0x8] sm:$0xff] }
 0x493   :  { %v1718_v52 = vmul.f32 %v2776_v13, %v1717_v35  ;;  %1858 = vmatpush.msra.mxu1 %v1829_v47 }
 0x494   :  { %1946 = vmatpush.msra.mxu3 %v2672_v27 }
 0x495   :  { %v1719_v55 = vmul.f32 0.5, %v1718_v52 }
 0x496   :  { %1947 = vmatpush.msra.mxu3 %v2671_v31 }
 0x497   :  { %v1720_v59 = vsub.f32 1.5, %v1719_v55 }
 0x498   :  { %1948 = vmatpush.msra.mxu3 %v2670_v11  ;;  %v2112_v11 = vpop.permute.xlu1 %2111 }
 0x499   :  { %v1721_v60 = vmul.f32 %v2776_v13, %v1720_v59 }
 0x49a   :  { %1949 = vmatpush.msra.mxu3 %v2669_v3  ;;  %v2196_v3 = vld [vmem:[%s4516_s5] sm:$0xff] }
 0x49b   :  { %v1725_v22 = vsel %vm1724_vm14, %v2776_v13, %v1721_v60  ;;  %v1828_v13 = vld [vmem:[%s4513_s4] sm:$0xff]  ;;  %vm4735_vm14 = vnez %v4617_v15 }
 0x49c   :  { %v1727_v9 = vmul.f32 %v1726_v61, %v1725_v22  ;;  %1859 = vmatpush.msra.mxu1 %v1828_v13  ;;  %1950 = vmatpush.msra.mxu3 %v2668_v49 }
 0x49e   :  { %v1729_v46 = vmul.f32 %v1727_v9, %v3995_v58  ;;  %2647 = vmatmul.msk.f32.vlgmr.msrb.gmra.mxu3 %vm4730_vm13, %v1727_v9  ;;  %v4104_v58 = vld [vmem:[%s4583_s26 + $0x8] sm:$0xff]  ;;  %2702 = vmatpush.msk.msrb.mxu1 %vm4698_vm0, %v2785_v29  ;;  %vm4734_vm13 = vnez %v4613_v5 }
 0x49f   :  { %2113 = vrot.lane.b32.xlu0 %v4104_v58, %s2788_s29  ;;  %2129 = vrot.lane.b32.xlu1 %v4104_v58, %s2789_s13 }
 0x4a0   :  { %v1730_v63 = vsub.f32 %v1728_v8, %v1729_v46  ;;  %2726 = vmatpush.msk.msrb.mxu3 %vm4698_vm0, %v2785_v29  ;;  %2703 = vmatpush.msk.msrb.mxu1 %vm4699_vm11, %v2785_v29 }
 0x4a2   :  { %2649 = vmatmul.msk.f32.vlgmr.msra.gmra.mxu0 %vm4731_vm10, %v1730_v63  ;;  %2727 = vmatpush.msk.msrb.mxu3 %vm4699_vm11, %v2785_v29  ;;  %vm4733_vm10 = vnez %v4609_v62 }
 0x4a3   :  { %2720 = vmatpush.msk.msra.mxu0 %vm4732_vm8, %v2785_v29  ;;  %2704 = vmatpush.msk.msrb.mxu1 %vm4700_vm3, %v2785_v29  ;;  %vm4738_vm8 = vcmask 1046528  }
 0x4a4   :  { %2728 = vmatpush.msk.msrb.mxu3 %vm4700_vm3, %v2785_v29 }
 0x4a5   :  { %2705 = vmatpush.msk.msrb.mxu1 %vm3006_vm4, %v2785_v29 }
 0x4a6   :  { %2729 = vmatpush.msk.msrb.mxu3 %vm3006_vm4, %v2785_v29 }
 0x4a7   :  { %2131 = vrot.lane.b32.xlu0 %v4112_v17, %s2789_s13  ;;  %2117 = vrot.lane.b32.xlu1 %v4119_v12, %s2788_s29 }
 0x4a8   :  { %2706 = vmatpush.msk.msrb.mxu1 %vm3018_vm5, %v2785_v29  ;;  %2730 = vmatpush.msk.msrb.mxu3 %vm3018_vm5, %v2785_v29 }
 0x4aa   :  { %2707 = vmatpush.msk.msrb.mxu1 %vm3030_vm6, %v2785_v29  ;;  %2731 = vmatpush.msk.msrb.mxu3 %vm3030_vm6, %v2785_v29 }
 0x4ac   :  { %2708 = vmatpush.msk.msrb.mxu1 %vm4722_vm12, %v2785_v29  ;;  %2732 = vmatpush.msk.msrb.mxu3 %vm4722_vm12, %v2785_v29 }
 0x4ae   :  { %2709 = vmatpush.msk.msrb.mxu1 %vm4658_vm7, %v2785_v29  ;;  %2733 = vmatpush.msk.msrb.mxu3 %vm4658_vm7, %v2785_v29 }
 0x4b0   :  { %2710 = vmatpush.msk.msrb.mxu1 %vm4702_vm1, %v2785_v29  ;;  %2734 = vmatpush.msk.msrb.mxu3 %vm4702_vm1, %v2785_v29 }
 0x4b2   :  { %2711 = vmatpush.msk.msrb.mxu1 %vm4723_vm9, %v2785_v29  ;;  %2735 = vmatpush.msk.msrb.mxu3 %vm4723_vm9, %v2785_v29 }
 0x4b4   :  { %2712 = vmatpush.msk.msrb.mxu1 %vm4733_vm10, %v2785_v29  ;;  %2736 = vmatpush.msk.msrb.mxu3 %vm4733_vm10, %v2785_v29 }
 0x4b6   :  { %2713 = vmatpush.msk.msrb.mxu1 %vm4734_vm13, %v2785_v29  ;;  %2737 = vmatpush.msk.msrb.mxu3 %vm4734_vm13, %v2785_v29  ;;  %vm4740_vm13 = vnez %v4625_v20  ;;  %v2201_v20 = vld [vmem:[%s4516_s5 + $0x28] sm:$0xff] }
 0x4b8   :  { %2714 = vmatpush.msk.msrb.mxu1 %vm4735_vm14, %v2785_v29  ;;  %2738 = vmatpush.msk.msrb.mxu3 %vm4735_vm14, %v2785_v29  ;;  %vm4739_vm14 = vnez %v4665_v21 }
 0x4ba   :  { %2715 = vmatpush.msk.msrb.mxu1 %vm4736_vm2, %v2785_v29  ;;  %2739 = vmatpush.msk.msrb.mxu3 %vm4736_vm2, %v2785_v29 }
 0x4bc   :  { %2716 = vmatpush.msk.msrb.mxu1 %vm4740_vm13, %v2785_v29  ;;  %2740 = vmatpush.msk.msrb.mxu3 %vm4740_vm13, %v2785_v29 }
 0x51f   :  { %v1774_v28 = vpop.f32.mrf.mxu0 }
 0x520   :  { %v1782_v10 = vperm.slane %v1774_v28, 0 }
 0x521   :  { %v1751_v35 = vpop.f32.mrf.mxu3 }
 0x522   :  { %v1777_v1 = vperm.slane %v1751_v35, 0 }
 0x524   :  { %v1778_v52 = vmul.f32 %v1777_v1, %v3929_v7  ;;  %v1779_v55 = vmul.f32 %v1777_v1, %v3927_v6  ;;  %v1780_v59 = vmul.f32 %v1777_v1, %v3931_v2  ;;  %v1781_v46 = vmul.f32 %v1777_v1, %v3942_v40  ;;  %v2114_v1 = vpop.permute.xlu0 %2113 }
 0x526   :  { %v1784_v60 = vadd.f32 %v1782_v10, %v1779_v55  ;;  %v1783_v61 = vadd.f32 %v1782_v10, %v1778_v52  ;;  %v1785_v6 = vadd.f32 %v1782_v10, %v1780_v59  ;;  %v1786_v23 = vadd.f32 %v1782_v10, %v1781_v46  ;;  %v2128_v10 = vpop.permute.xlu2 %2127 }
 0x528   :  { %v1788_v7 = vmax.f32 %v1784_v60, 0.0  ;;  %v1787_v2 = vmax.f32 %v1783_v61, 0.0  ;;  %v1789_v16 = vmax.f32 %v1785_v6, 0.0  ;;  %v1790_v25 = vmax.f32 %v1786_v23, 0.0 }
 0x52a   :  { %1889 = vmatmul.f32.vlgmr.msrb.gmra.mxu2 %v1787_v2  ;;  %v1812_v22 = vrot.slane %v1787_v2, 7  ;;  %v1902_v9 = vrot.slane %v1787_v2, 1  ;;  %v1903_v8 = vrot.slane %v1788_v7, 1  ;;  %v1813_v26 = vrot.slane %v1788_v7, 7 }
 0x52b   :  { %2742 = vmatpush.msk.msrb.mxu2 %vm4698_vm0, %v2785_v29  ;;  %v1905_v40 = vrot.slane %v1789_v16, 1  ;;  %vm4741_vm0 = vnez %v4629_v24  ;;  %v1815_v33 = vrot.slane %v1789_v16, 7  ;;  %v1907_v32 = vrot.slane %v1790_v25, 1 }
 0x52c   :  { %v1823_v63 = vsel %vm4737_vm15, 0.0, %v1812_v22  ;;  %v1904_v19 = vsel %vm4738_vm8, %v1902_v9, %v1903_v8  ;;  %2717 = vmatpush.msk.msrb.mxu1 %vm4741_vm0, %v2785_v29  ;;  %2741 = vmatpush.msk.msrb.mxu3 %vm4741_vm0, %v2785_v29  ;;  %v1817_v39 = vrot.slane %v1790_v25, 7 }
 0x52d   :  { %2666 = vmatmul.msk.f32.vlgmr.msra.gmra.mxu1 %vm4739_vm14, %v1823_v63  ;;  %1951 = vmatmul.f32.vlgmr.msra.gmra.mxu3 %v1904_v19  ;;  %v1906_v56 = vsel %vm4738_vm8, %v1903_v8, %v1905_v40  ;;  %v2130_v8 = vpop.permute.xlu1 %2129 }
 0x52e   :  { %2743 = vmatpush.msk.msrb.mxu2 %vm4699_vm11, %v2785_v29  ;;  %vm4742_vm11 = vmmov %vm4737_vm15  ;;  %vm4743_vm15 = vnez %v4673_v34 }
 0x52f   :  { %v1814_v30 = vsel %vm4742_vm11, %v1812_v22, %v1813_v26 }
 0x530   :  { %2744 = vmatpush.msk.msrb.mxu2 %vm4700_vm3, %v2785_v29  ;;  %vm4745_vm3 = vmmov %vm4738_vm8 }
 0x531   :  { %v1908_v4 = vsel %vm4745_vm3, %v1905_v40, %v1907_v32  ;;  %vm4756_vm8 = vmmov %vm4745_vm3 }
 0x532   :  { %1892 = vmatmul.f32.gmra.mxu2 %v1788_v7 }
 0x533   :  { %2745 = vmatpush.msk.msrb.mxu2 %vm3006_vm4, %v2785_v29  ;;  %vm4744_vm4 = vmmov %vm4742_vm11  ;;  %vm4746_vm11 = vnez %v4680_v48 }
 0x534   :  { %v1816_v36 = vsel %vm4744_vm4, %v1813_v26, %v1815_v33 }
 0x535   :  { %1863 = vmatmul.f32.gmra.mxu1 %v1814_v30  ;;  %2684 = vmatmul.msk.f32.gmra.mxu3 %vm4743_vm15, %v1906_v56 }
 0x536   :  { %2746 = vmatpush.msk.msrb.mxu2 %vm3018_vm5, %v2785_v29  ;;  %vm4747_vm5 = vmmov %vm4744_vm4 }
 0x537   :  { %v1818_v42 = vsel %vm4747_vm5, %v1815_v33, %v1817_v39 }
 0x538   :  { %2747 = vmatpush.msk.msrb.mxu2 %vm3030_vm6, %v2785_v29  ;;  %vm4748_vm6 = vmmov %vm4745_vm3 }
 0x539   :  { %v1913_v45 = vsel %vm4748_vm6, %v1907_v32, 0.0  ;;  %v2132_v32 = vpop.permute.xlu0 %2131  ;;  %vm4759_vm5 = vmmov %vm4748_vm6  ;;  %vm4761_vm6 = vcmask 523264  }
 0x53a   :  { %1895 = vmatmul.f32.gmra.mxu2 %v1789_v16 }
 0x53b   :  { %2748 = vmatpush.msk.msrb.mxu2 %vm4722_vm12, %v2785_v29  ;;  %vm4749_vm12 = vnez %v4686_v51 }
 0x53d   :  { %2667 = vmatmul.msk.f32.gmra.mxu1 %vm4746_vm11, %v1816_v36  ;;  %1957 = vmatmul.f32.gmra.mxu3 %v1908_v4  ;;  %v2116_v36 = vpop.permute.xlu2 %2115 }
 0x53e   :  { %2749 = vmatpush.msk.msrb.mxu2 %vm4658_vm7, %v2785_v29  ;;  %vm4750_vm7 = vnez %v4613_v5  ;;  %v2203_v5 = vld [vmem:[%s4516_s5 + $0x38] sm:$0xff] }
 0x53f   :  { %2224 = vmatpush.msra.mxu1 %v2203_v5 }
 0x540   :  { %2750 = vmatpush.msk.msrb.mxu2 %vm4702_vm1, %v2785_v29  ;;  %vm4751_vm1 = vnez %v4617_v15  ;;  %v2202_v15 = vld [vmem:[%s4516_s5 + $0x30] sm:$0xff] }
 0x541   :  { %2225 = vmatpush.msra.mxu1 %v2202_v15 }
 0x542   :  { %1898 = vmatmul.f32.gmra.mxu2 %v1790_v25 }
 0x543   :  { %2751 = vmatpush.msk.msrb.mxu2 %vm4723_vm9, %v2785_v29  ;;  %2226 = vmatpush.msra.mxu1 %v2201_v20  ;;  %vm2139_vm9 = vcmask 490496  }
 0x544   :  { %v2140_v22 = vsel %vm2139_vm9, %v2128_v10, -inf  ;;  %v2141_v56 = vsel %vm2139_vm9, %v2130_v8, -inf }
 0x545   :  { %1869 = vmatmul.f32.gmra.mxu1 %v1818_v42  ;;  %2685 = vmatmul.msk.f32.gmra.mxu3 %vm4749_vm12, %v1913_v45 }
 0x546   :  { %2752 = vmatpush.msk.msrb.mxu2 %vm4733_vm10, %v2785_v29  ;;  %2227 = vmatpush.msra.mxu1 %v2200_v38  ;;  %vm4752_vm10 = vcmask 31744  }
 0x547   :  { %v2123_v60 = vsel %vm4752_vm10, -inf, %v2112_v11  ;;  %v2118_v11 = vpop.permute.xlu1 %2117 }
 0x548   :  { %2753 = vmatpush.msk.msrb.mxu2 %vm4750_vm7, %v2785_v29  ;;  %2228 = vmatpush.msra.mxu1 %v2199_v41  ;;  %v2144_v26 = vmax.f32 %v2123_v60, %v2140_v22 }
 0x54a   :  { %2754 = vmatpush.msk.msrb.mxu2 %vm4751_vm1, %v2785_v29  ;;  %2229 = vmatpush.msra.mxu1 %v2198_v14  ;;  %v2148_v39 = vmax.f32 %v4098_v0, %v2144_v26  ;;  %vm4763_vm1 = vmmov %vm4759_vm5 }
 0x54c   :  { %2755 = vmatpush.msk.msrb.mxu2 %vm4736_vm2, %v2785_v29  ;;  %2230 = vmatpush.msra.mxu1 %v2197_v43  ;;  %vm4754_vm2 = vmmov %vm4752_vm10  ;;  %v2156_v15 = vrot.slane %v2148_v39, 7  ;;  %v2172_v41 = vrot.slane %v2148_v39, 1 }
 0x54d   :  { %vm4758_vm3 = vmmov %vm4754_vm2 }
 0x54e   :  { %2756 = vmatpush.msk.msrb.mxu2 %vm4740_vm13, %v2785_v29  ;;  %2231 = vmatpush.msra.mxu1 %v2196_v3  ;;  %vm4753_vm13 = vmmov %vm4752_vm10 }
 0x54f   :  { %v2124_v16 = vsel %vm4753_vm13, -inf, %v2114_v1  ;;  %v2126_v1 = vsel %vm4758_vm3, -inf, %v2118_v11  ;;  %vm4765_vm10 = vmmov %vm4763_vm1 }
 0x550   :  { %2757 = vmatpush.msk.msrb.mxu2 %vm4741_vm0, %v2785_v29  ;;  %v2145_v4 = vmax.f32 %v2124_v16, %v2141_v56  ;;  %vm4755_vm0 = vmmov %vm4744_vm4  ;;  %vm4757_vm4 = vnez %v4651_v54 }
 0x551   :  { %v2167_v0 = vsel %vm4755_vm0, -inf, %v2156_v15  ;;  %vm4762_vm7 = vmmov %vm4755_vm0 }
 0x552   :  { %v2149_v5 = vmax.f32 %v4104_v58, %v2145_v4  ;;  %v2168_v58 = vsel %vm4739_vm14, %v2167_v0, -inf  ;;  %vm4760_vm14 = vmmov %vm4755_vm0 }
 0x553   :  { %vm4767_vm13 = vmmov %vm4761_vm6 }
 0x554   :  { %v2173_v14 = vrot.slane %v2149_v5, 1 }
 0x556   :  { %v2174_v3 = vsel %vm4756_vm8, %v2172_v41, %v2173_v14  ;;  %v2048_v41 = vld [vmem:[%s4518_s17] sm:$0x1]  ;;  %vm4769_vm8 = vcmask 64512  }
 0x557   :  { %v2188_v10 = vmax.f32 %v2168_v58, %v2174_v3  ;;  %vm4770_vm3 = vmmov %vm4769_vm8 }
 0x559   :  { %v2192_v60 = vmax.f32 %v2148_v39, %v2188_v10 }
 0x5aa   :  { %v1861_v50 = vpop.f32.mrf.mxu1 }
 0x5ad   :  { %v1890_v53 = vpop.f32.mrf.mxu2 }
 0x5ae   :  { %v1891_v44 = vadd.f32 %v1890_v53, %v1861_v50  ;;  %v2142_v50 = vsel %vm2139_vm9, %v2132_v32, -inf  ;;  %v2125_v53 = vsel %vm4754_vm2, -inf, %v2116_v36  ;;  %vm4768_vm2 = vmmov %vm4761_vm6 }
 0x5b0   :  { %v1952_v57 = vpop.f32.mrf.mxu3 }
 0x5b1   :  { %v4376_v28 = vadd.f32 %v1952_v57, %v1891_v44  ;;  %v2134_v44 = vpop.permute.xlu2 %2133 }
 0x5b2   :  { %v1864_v62 = vpop.f32.mrf.mxu1 }
 0x5b3   :  { %v1977_v6 = vmul.f32 %v4376_v28, %v4376_v28 }
 0x5b5   :  { %v1893_v18 = vpop.f32.mrf.mxu2 }
 0x5b6   :  { %v1894_v31 = vadd.f32 %v1893_v18, %v1864_v62 }
 0x5b8   :  { %v1955_v24 = vpop.f32.mrf.mxu3 }
 0x5b9   :  { %v4374_v49 = vadd.f32 %v1955_v24, %v1894_v31  ;;  %v2146_v24 = vmax.f32 %v2125_v53, %v2142_v50 }
 0x5ba   :  { %v1867_v27 = vpop.f32.mrf.mxu1 }
 0x5bb   :  { %v1978_v52 = vmul.f32 %v4374_v49, %v4374_v49  ;;  %v1968_v7 = vadd.f32 %v4374_v49, %v4376_v28  ;;  %v2150_v31 = vmax.f32 %v4112_v17, %v2146_v24  ;;  %v2143_v17 = vsel %vm2139_vm9, %v2134_v44, -inf  ;;  %vm4764_vm9 = vmmov %vm4761_vm6 }
 0x5bd   :  { %v1896_v37 = vpop.f32.mrf.mxu2  ;;  %v1981_v46 = vadd.f32 %v1978_v52, %v1977_v6  ;;  %v2157_v52 = vrot.slane %v2149_v5, 7 }
 0x5be   :  { %v1897_v47 = vadd.f32 %v1896_v37, %v1867_v27 }
 0x5c0   :  { %v1958_v13 = vpop.f32.mrf.mxu3 }
 0x5c1   :  { %v4378_v35 = vadd.f32 %v1958_v13, %v1897_v47  ;;  %v2175_v13 = vrot.slane %v2150_v31, 1 }
 0x5c2   :  { %v1870_v55 = vpop.f32.mrf.mxu1 }
 0x5c3   :  { %v1979_v2 = vmul.f32 %v4378_v35, %v4378_v35  ;;  %v1969_v63 = vadd.f32 %v1968_v7, %v4378_v35  ;;  %v2159_v7 = vrot.slane %v2150_v31, 7 }
 0x5c5   :  { %v1899_v59 = vpop.f32.mrf.mxu2  ;;  %v1982_v40 = vadd.f32 %v1981_v46, %v1979_v2 }
 0x5c6   :  { %v1900_v61 = vadd.f32 %v1899_v59, %v1870_v55  ;;  %v2147_v55 = vmax.f32 %v2126_v1, %v2143_v17  ;;  %v2176_v59 = vsel %vm4759_vm5, %v2173_v14, %v2175_v13 }
 0x5c7   :  { %v2185_v6 = vsel %vm4743_vm15, %v2176_v59, -inf  ;;  %vm4766_vm15 = vmmov %vm4755_vm0 }
 0x5c8   :  { %v1961_v9 = vpop.f32.mrf.mxu3  ;;  %v2151_v21 = vmax.f32 %v4119_v12, %v2147_v55 }
 0x5c9   :  { %v4391_v19 = vadd.f32 %v1961_v9, %v1900_v61  ;;  %v2158_v61 = vsel %vm4760_vm14, %v2156_v15, %v2157_v52  ;;  %v2160_v9 = vsel %vm4762_vm7, %v2157_v52, %v2159_v7  ;;  %vm4772_vm7 = vmmov %vm4770_vm3 }
 0x5ca   :  { %v2189_v2 = vmax.f32 %v2158_v61, %v2185_v6  ;;  %v2177_v22 = vrot.slane %v2151_v21, 1  ;;  %v2170_v46 = vsel %vm4746_vm11, %v2160_v9, -inf  ;;  %v2161_v16 = vrot.slane %v2151_v21, 7 }
 0x5cb   :  { %v1970_v23 = vadd.f32 %v1969_v63, %v4391_v19  ;;  %v1980_v30 = vmul.f32 %v4391_v19, %v4391_v19 }
 0x5cc   :  { %v2193_v8 = vmax.f32 %v2149_v5, %v2189_v2  ;;  %v2178_v63 = vsel %vm4763_vm1, %v2175_v13, %v2177_v22  ;;  %v2183_v34 = vsel %vm4765_vm10, %v2177_v22, -inf }
 0x5cd   :  { %v1971_v25 = vrot.slane %v1970_v23, 4  ;;  %v1983_v33 = vadd.f32 %v1982_v40, %v1980_v30  ;;  %v2190_v12 = vmax.f32 %v2170_v46, %v2178_v63  ;;  %v2162_v40 = vsel %vm4766_vm15, %v2159_v7, %v2161_v16 }
 0x5cf   :  { %v1972_v42 = vadd.f32 %v1971_v25, %v1970_v23  ;;  %v1984_v45 = vrot.slane %v1983_v33, 4  ;;  %v2194_v26 = vmax.f32 %v2150_v31, %v2190_v12  ;;  %v2187_v23 = vsel %vm4749_vm12, %v2183_v34, -inf }
 0x5d0   :  { %v2191_v30 = vmax.f32 %v2162_v40, %v2187_v23 }
 0x5d1   :  { %v1973_v57 = vrot.slane %v1972_v42, 2  ;;  %v1985_v62 = vadd.f32 %v1984_v45, %v1983_v33 }
 0x5d2   :  { %v2195_v56 = vmax.f32 %v2151_v21, %v2191_v30 }
 0x5d3   :  { %v1974_v18 = vadd.f32 %v1973_v57, %v1972_v42  ;;  %v1986_v20 = vrot.slane %v1985_v62, 2 }
 0x5d5   :  { %v1975_v38 = vrot.slane %v1974_v18, 1  ;;  %v1987_v27 = vadd.f32 %v1986_v20, %v1985_v62  ;;  %v2046_v20 = vld [vmem:[%s4517_s16] sm:$0x1] }
 0x5d7   :  { %v1976_v37 = vadd.f32 %v1975_v38, %v1974_v18  ;;  %v1988_v43 = vrot.slane %v1987_v27, 1 }
 0x5d9   :  { %2006 = vmatmul.f32.vlgmr.msrb.gmra.mxu0 %v1976_v37  ;;  %v1989_v47 = vadd.f32 %v1988_v43, %v1987_v27 }
 0x5da   :  { %2758 = vmatpush.msk.msrb.mxu0 %vm4757_vm4, %v2785_v29 }
 0x5db   :  { %2026 = vmatmul.f32.vlgmr.msrb.gmra.mxu1 %v1989_v47 }
 0x5e3   :  { %2722 = vmatmul.msk.f32.vlgmr.msra.gmra.mxu1 %vm4761_vm6, %v2192_v60  ;;  %vm4771_vm6 = vmmov %vm4770_vm3 }
 0x5eb   :  { %2723 = vmatmul.msk.f32.gmra.mxu1 %vm4764_vm9, %v2193_v8 }
 0x5f3   :  { %2724 = vmatmul.msk.f32.gmra.mxu1 %vm4767_vm13, %v2194_v26 }
 0x5fb   :  { %2725 = vmatmul.msk.f32.gmra.mxu1 %vm4768_vm2, %v2195_v56 }
 0x656   :  { %v2007_v48 = vpop.f32.mrf.mxu0 }
 0x657   :  { %v2030_v25 = vmul.f32 0.001953125, %v2007_v48 }
 0x658   :  { %v2027_v33 = vpop.f32.mrf.mxu1 }
 0x659   :  { %v2032_v32 = vmul.f32 %v2030_v25, %v2030_v25  ;;  %v2031_v36 = vmul.f32 0.001953125, %v2027_v33 }
 0x65b   :  { %v2033_v4 = vsub.f32 %v2031_v36, %v2032_v32 }
 0x65d   :  { %v2034_v39 = vmax.f32 %v2033_v4, 0.0 }
 0x65f   :  { %v2035_v42 = vadd.f32 0.001, %v2034_v39 }
 0x660   :  { %v4429_v45 = vpop.f32.mrf.mxu1 }
 0x661   :  { %2777 = vrsqrt.f32 %v2035_v42  ;;  %vm2042_vm12 = vweird.f32 %v2035_v42  ;;  %v2254_v14 = vmul.f32 %v4429_v45, %v4429_v45 }
 0x667   :  { %v2778_v50 = vpop.eup %2777 }
 0x668   :  { %v2037_v51 = vmul.f32 %v2778_v50, %v2035_v42  ;;  %v4431_v53 = vpop.f32.mrf.mxu1  ;;  %vm2043_vm11 = vweird.f32 %v2778_v50 }
 0x669   :  { %vm2044_vm0 = vmor %vm2042_vm12, %vm2043_vm11  ;;  %v2255_v38 = vmul.f32 %v4431_v53, %v4431_v53  ;;  %v2245_v0 = vadd.f32 %v4431_v53, %v4429_v45 }
 0x66a   :  { %v2038_v57 = vmul.f32 %v2778_v50, %v2037_v51 }
 0x66b   :  { %v2258_v43 = vadd.f32 %v2255_v38, %v2254_v14  ;;  %v2325_v38 = vld [vmem:[%s4520_s19] sm:$0x1] }
 0x66c   :  { %v2039_v62 = vmul.f32 0.5, %v2038_v57 }
 0x66e   :  { %v2040_v5 = vsub.f32 1.5, %v2039_v62 }
 0x670   :  { %v2041_v15 = vmul.f32 %v2778_v50, %v2040_v5  ;;  %v4433_v18 = vpop.f32.mrf.mxu1  ;;  %v2323_v5 = vld [vmem:[%s4519_s18] sm:$0x1] }
 0x671   :  { %v2256_v31 = vmul.f32 %v4433_v18, %v4433_v18  ;;  %v2246_v11 = vadd.f32 %v2245_v0, %v4433_v18 }
 0x672   :  { %v2045_v24 = vsel %vm2044_vm0, %v2778_v50, %v2041_v15 }
 0x673   :  { %v2047_v27 = vmul.f32 %v2046_v20, %v2045_v24  ;;  %v2259_v58 = vadd.f32 %v2258_v43, %v2256_v31 }
 0x675   :  { %2719 = vmatmul.msk.f32.vlgmr.msra.gmra.mxu2 %vm4769_vm8, %v2047_v27  ;;  %v2049_v37 = vmul.f32 %v2047_v27, %v2030_v25 }
 0x677   :  { %v2050_v44 = vsub.f32 %v2048_v41, %v2049_v37 }
 0x678   :  { %v4451_v47 = vpop.f32.mrf.mxu1 }
 0x679   :  { %v2247_v3 = vadd.f32 %v2246_v11, %v4451_v47  ;;  %v2257_v13 = vmul.f32 %v4451_v47, %v4451_v47  ;;  %2721 = vmatmul.msk.f32.vlgmr.msra.gmra.mxu0 %vm4770_vm3, %v2050_v44 }
 0x67a   :  { %2760 = vmatpush.msk.msra.mxu0 %vm4757_vm4, %v2785_v29 }
 0x67b   :  { %v2248_v1 = vrot.slane %v2247_v3, 4  ;;  %v2260_v17 = vadd.f32 %v2259_v58, %v2257_v13 }
 0x67d   :  { %v2249_v10 = vadd.f32 %v2248_v1, %v2247_v3  ;;  %v2261_v52 = vrot.slane %v2260_v17, 4 }
 0x67f   :  { %v2250_v55 = vrot.slane %v2249_v10, 2  ;;  %v2262_v59 = vadd.f32 %v2261_v52, %v2260_v17 }
 0x681   :  { %v2251_v60 = vadd.f32 %v2250_v55, %v2249_v10  ;;  %v2263_v21 = vrot.slane %v2262_v59, 2 }
 0x683   :  { %v2252_v61 = vrot.slane %v2251_v60, 1  ;;  %v2264_v6 = vadd.f32 %v2263_v21, %v2262_v59 }
 0x685   :  { %v2253_v7 = vadd.f32 %v2252_v61, %v2251_v60  ;;  %v2265_v2 = vrot.slane %v2264_v6, 1 }
 0x687   :  { %2283 = vmatmul.f32.vlgmr.msrb.gmra.mxu3 %v2253_v7  ;;  %v2266_v22 = vadd.f32 %v2265_v2, %v2264_v6 }
 0x689   :  { %2303 = vmatmul.f32.vlgmr.msrb.gmra.mxu2 %v2266_v22 }
 0x6f6   :  { %v2094_v9 = vpop.f32.mrf.mxu0 }
 0x6f7   :  { %v2102_v54 = vperm.slane %v2094_v9, 0 }
 0x6f8   :  { %v2071_v8 = vpop.f32.mrf.mxu2 }
 0x6f9   :  { %v2097_v46 = vperm.slane %v2071_v8, 0 }
 0x6fb   :  { %v2098_v29 = vmul.f32 %v2097_v46, %v4376_v28  ;;  %v2099_v63 = vmul.f32 %v2097_v46, %v4374_v49  ;;  %v2100_v12 = vmul.f32 %v2097_v46, %v4378_v35  ;;  %v2101_v16 = vmul.f32 %v2097_v46, %v4391_v19 }
 0x6fd   :  { %v2103_v34 = vadd.f32 %v2102_v54, %v2098_v29  ;;  %v2104_v26 = vadd.f32 %v2102_v54, %v2099_v63  ;;  %v2105_v40 = vadd.f32 %v2102_v54, %v2100_v12  ;;  %v2106_v23 = vadd.f32 %v2102_v54, %v2101_v16 }
 0x6ff   :  { %v2107_v30 = vmax.f32 %v2103_v34, 0.0  ;;  %v2108_v56 = vmax.f32 %v2104_v26, 0.0  ;;  %v2109_v48 = vmax.f32 %v2105_v40, 0.0  ;;  %v2110_v25 = vmax.f32 %v2106_v23, 0.0 }
 0x701   :  { %2396 = vst [vmem:[%s4509_s20 + $0x10] sm:$0xff] %v2107_v30 }
 0x702   :  { %2397 = vst [vmem:[%s4509_s20 + $0x30] sm:$0xff] %v2108_v56 }
 0x703   :  { %2398 = vst [vmem:[%s4509_s20 + $0x50] sm:$0xff] %v2109_v48 }
 0x704   :  { %2399 = vst [vmem:[%s4509_s20 + $0x70] sm:$0xff] %v2110_v25 }
 0x70a   :  { %v2284_v49 = vpop.f32.mrf.mxu3 }
 0x70b   :  { %v2307_v28 = vmul.f32 0.001953125, %v2284_v49 }
 0x70c   :  { %v2304_v35 = vpop.f32.mrf.mxu2 }
 0x70d   :  { %v2309_v19 = vmul.f32 %v2307_v28, %v2307_v28  ;;  %v2308_v33 = vmul.f32 0.001953125, %v2304_v35 }
 0x70f   :  { %v2310_v32 = vsub.f32 %v2308_v33, %v2309_v19 }
 0x711   :  { %v2311_v36 = vmax.f32 %v2310_v32, 0.0 }
 0x713   :  { %v2312_v4 = vadd.f32 0.001, %v2311_v36 }
 0x715   :  { %2779 = vrsqrt.f32 %v2312_v4  ;;  %vm2319_vm5 = vweird.f32 %v2312_v4 }
 0x71b   :  { %v2780_v39 = vpop.eup %2779 }
 0x71c   :  { %v2314_v42 = vmul.f32 %v2780_v39, %v2312_v4  ;;  %vm2320_vm4 = vweird.f32 %v2780_v39 }
 0x71d   :  { %vm2321_vm14 = vmor %vm2319_vm5, %vm2320_vm4 }
 0x71e   :  { %v2315_v50 = vmul.f32 %v2780_v39, %v2314_v42 }
 0x720   :  { %v2316_v51 = vmul.f32 0.5, %v2315_v50 }
 0x722   :  { %v2317_v57 = vsub.f32 1.5, %v2316_v51 }
 0x724   :  { %v2318_v62 = vmul.f32 %v2780_v39, %v2317_v57 }
 0x726   :  { %v2322_v15 = vsel %vm2321_vm14, %v2780_v39, %v2318_v62 }
 0x727   :  { %v2324_v20 = vmul.f32 %v2323_v5, %v2322_v15 }
 0x729   :  { %2759 = vmatmul.msk.f32.vlgmr.msrb.gmra.mxu0 %vm4771_vm6, %v2324_v20  ;;  %v2326_v24 = vmul.f32 %v2324_v20, %v2307_v28 }
 0x72b   :  { %v2327_v27 = vsub.f32 %v2325_v38, %v2326_v24 }
 0x731   :  { %2761 = vmatmul.msk.f32.vlgmr.msra.gmra.mxu0 %vm4772_vm7, %v2327_v27 }
 0x7a6   :  { %v2348_v41 = vpop.f32.mrf.mxu0 }
 0x7a7   :  { %v2374_v14 = vperm.slane %v2348_v41, 0 }
 0x7a9   :  { %v2375_v0 = vmul.f32 %v2374_v14, %v4429_v45  ;;  %v2376_v37 = vmul.f32 %v2374_v14, %v4431_v53  ;;  %v2377_v43 = vmul.f32 %v2374_v14, %v4433_v18  ;;  %v2378_v11 = vmul.f32 %v2374_v14, %v4451_v47 }
 0x7ae   :  { %v2371_v31 = vpop.f32.mrf.mxu0 }
 0x7af   :  { %v2379_v44 = vperm.slane %v2371_v31, 0 }
 0x7b1   :  { %v2380_v58 = vadd.f32 %v2379_v44, %v2375_v0  ;;  %v2381_v3 = vadd.f32 %v2379_v44, %v2376_v37  ;;  %v2382_v13 = vadd.f32 %v2379_v44, %v2377_v43  ;;  %v2383_v1 = vadd.f32 %v2379_v44, %v2378_v11 }
 0x7b3   :  { %v2384_v17 = vmax.f32 %v2380_v58, 0.0  ;;  %v2385_v10 = vmax.f32 %v2381_v3, 0.0  ;;  %v2386_v52 = vmax.f32 %v2382_v13, 0.0  ;;  %v2387_v55 = vmax.f32 %v2383_v1, 0.0 }
 0x7b5   :  { %2400 = vst [vmem:[%s4509_s20 + $0x18] sm:$0xff] %v2384_v17 }
 0x7b6   :  { %2401 = vst [vmem:[%s4509_s20 + $0x38] sm:$0xff] %v2385_v10 }
 0x7b7   :  { %2402 = vst [vmem:[%s4509_s20 + $0x58] sm:$0xff] %v2386_v52 }
 0x7b8   :  { %2403 = vst [vmem:[%s4509_s20 + $0x78] sm:$0xff] %v2387_v55 }

</bundles_post_ra>
